<compile_context>
chip_gen: v7x
topology: tpu7x:2x2x1
jax: 0.10.0
libtpu: 0.0.40
codegen_flags: <defaults>
</compile_context>

<pallas_src>
import functools

import jax
import jax.numpy as jnp
import numpy as np
from jax.experimental import pallas as pl
from jax.experimental.pallas import tpu as pltpu


def _kalman_seq_kernel(m, n, hd, T, inv_gain,
                       # inputs
                       y_ref, x0_ref, hn0_ref,
                       AD_ref, w1f2_ref, w1f4_ref, b1_ref,
                       wih_ref, bih_ref, whh_ref, bhh_ref,
                       w2_ref, b2_ref, w3_ref, b3_ref,
                       # outputs
                       x_out_ref, hn_out_ref):
    f32 = jnp.float32

    x_post = x0_ref[...]      # (B, m)   carried in vregs across the unrolled T loop
    h = hn0_ref[...]          # (B, hd)

    # T is a compile-time constant -> fully unrolled straight-line loop; all ref slices
    # below are static. Weights are read from VMEM per use (tiny loads, no vreg spill).
    for t in range(T):
        y = y_ref[t]          # (B, n) static slice of the T-resident VMEM slab

        # ---- step_prior, fused: x_post @ [A^T | A^T C^T] -> [x_prior | y_prior] ----
        xy = jnp.dot(x_post, AD_ref[...], preferred_element_type=f32)   # (B, m+n)
        x_prior = xy[:, :m]
        y_prior = xy[:, m:]

        # ---- step_KGain_est features: v * rsqrt(max(sum(v*v), 1e-24)) == v/max(||v||,1e-12)
        f4 = x_post - x_prior
        f4 = f4 * jax.lax.rsqrt(jnp.maximum(jnp.sum(f4 * f4, axis=1, keepdims=True), 1e-24))
        dy = y - y_prior
        f2 = dy * jax.lax.rsqrt(jnp.maximum(jnp.sum(dy * dy, axis=1, keepdims=True), 1e-24))

        # ---- linear1 + ReLU (w1 pre-split -> no lane concat of [f2, f4]) ----
        l1 = jnp.maximum(
            jnp.dot(f2, w1f2_ref[...], preferred_element_type=f32)
            + jnp.dot(f4, w1f4_ref[...], preferred_element_type=f32)
            + b1_ref[...], 0.0)                                          # (B, h1)

        # ---- single GRU step: 2 fused gate matmuls; lanes [0:hd|hd:2hd|2hd:3hd] = r|z|n ----
        gi = jnp.dot(l1, wih_ref[...], preferred_element_type=f32) + bih_ref[...]  # (B, 3hd)
        gh = jnp.dot(h, whh_ref[...], preferred_element_type=f32) + bhh_ref[...]   # (B, 3hd)
        r = jax.nn.sigmoid(gi[:, 0:hd] + gh[:, 0:hd])
        z = jax.nn.sigmoid(gi[:, hd:2 * hd] + gh[:, hd:2 * hd])
        ng = jnp.tanh(gi[:, 2 * hd:3 * hd] + r * gh[:, 2 * hd:3 * hd])
        h = (1.0 - z) * ng + z * h                                       # (B, hd)

        # ---- linear2 + ReLU, linear3 (permuted -> K^T flattened), gain scaling ----
        l2 = jnp.maximum(
            jnp.dot(h, w2_ref[...], preferred_element_type=f32) + b2_ref[...], 0.0)
        kg = (jnp.dot(l2, w3_ref[...], preferred_element_type=f32) + b3_ref[...]) * inv_gain
        # kg[b, i*m + j] == K_b[j, i]

        # ---- innovation: x_new = x_prior + K @ dy  (n lane-aligned multiply-adds) ----
        innovation = kg[:, 0:m] * dy[:, 0:1]
        for i in range(1, n):
            innovation = innovation + kg[:, i * m:(i + 1) * m] * dy[:, i:i + 1]
        x_post = x_prior + innovation

        x_out_ref[t] = x_post   # stays in VMEM; single HBM writeback when the block ends

    hn_out_ref[...] = h          # final hidden state written exactly once


def _prep_weights(params, m, n, hd):
    """One-time host-side weight prep: transposes, prior/GRU fusions, K^T permutation."""
    f32 = jnp.float32
    A = params["A"].astype(f32)
    C = params["C"].astype(f32)

    # Fused prior weight: x_post @ [A^T | A^T C^T] = [x_prior | y_prior]
    AD = jnp.concatenate([A.T, A.T @ C.T], axis=1)          # (m, m+n)

    w1 = params["w1"].astype(f32)                            # (h1, m+n), input = [f2(n), f4(m)]
    b1 = params["b1"].astype(f32).reshape(1, -1)
    w1f2_t = w1[:, :n].T                                     # (n, h1)
    w1f4_t = w1[:, n:].T                                     # (m, h1)

    # GRU: single fused ih / hh weights (PyTorch gate order r, z, n along the output lanes)
    wih3 = params["w_ih"].astype(f32).T                      # (h1, 3*hd)
    bih3 = params["b_ih"].astype(f32).reshape(1, -1)         # (1, 3*hd)
    whh3 = params["w_hh"].astype(f32).T                      # (hd, 3*hd)
    bhh3 = params["b_hh"].astype(f32).reshape(1, -1)         # (1, 3*hd)  (n-gate bias must stay inside r*gh_n)

    w2t = params["w2"].astype(f32).T                         # (hd, h2)
    b2 = params["b2"].astype(f32).reshape(1, -1)

    w3 = params["w3"].astype(f32)                            # (m*n, h2)
    b3 = params["b3"].astype(f32)
    h2 = w3.shape[1]
    # linear3 permuted so the flat output is K^T (index i*m + j == K[j, i]).
    w3t_perm = w3.reshape(m, n, h2).transpose(1, 0, 2).reshape(n * m, h2).T   # (h2, n*m)
    b3_perm = b3.reshape(m, n).T.reshape(1, n * m)

    return [AD, w1f2_t, w1f4_t, b1, wih3, bih3, whh3, bhh3, w2t, b2, w3t_perm, b3_perm]


def make_kalman_sequence(params, m, n, hd, gain_scaler, T, B, b_blk=None):
    """Returns run(y_seq (T,B,n), x0 (B,m), hn0 (B,hd)) -> (x_out (T,B,m), hn (B,hd))."""
    if b_blk is None:
        if B > 256 and B % 128 == 0:
            b_blk = 128                 # fill the MXU rows
        elif B >= 16 and B % 2 == 0:
            b_blk = B // 2              # >=2 blocks so the parallel axis shards on v7x megacore
        else:
            b_blk = B
    assert B % b_blk == 0
    weights = _prep_weights(params, m, n, hd)
    inv_gain = 1.0 / float(gain_scaler)
    f32 = jnp.float32

    kernel = functools.partial(_kalman_seq_kernel, m, n, hd, T, inv_gain)

    def resident_spec(shape):
        nd = len(shape)
        return pl.BlockSpec(shape, lambda b: (0,) * nd)

    in_specs = (
        [pl.BlockSpec((T, b_blk, n), lambda b: (0, b, 0)),   # y_seq: whole-T slab per block
         pl.BlockSpec((b_blk, m), lambda b: (b, 0)),         # x0
         pl.BlockSpec((b_blk, hd), lambda b: (b, 0))]        # hn0
        + [resident_spec(tuple(w.shape)) for w in weights]   # weights, resident in VMEM
    )
    out_specs = (
        pl.BlockSpec((T, b_blk, m), lambda b: (0, b, 0)),    # all T posteriors
        pl.BlockSpec((b_blk, hd), lambda b: (b, 0)),         # final hidden state
    )

    call = pl.pallas_call(
        kernel,
        out_shape=(jax.ShapeDtypeStruct((T, B, m), f32),
                   jax.ShapeDtypeStruct((B, hd), f32)),
        grid_spec=pltpu.PrefetchScalarGridSpec(
            num_scalar_prefetch=0,
            grid=(B // b_blk,),
            in_specs=in_specs,
            out_specs=out_specs,
        ),
        compiler_params=pltpu.CompilerParams(
            dimension_semantics=("parallel",)),
    )

    @jax.jit
    def run(y_seq, x0, hn0):
        return call(y_seq.astype(f32), x0.astype(f32), hn0.astype(f32), *weights)

    return run


def reference_sequence(y_seq, x0, hn0, params, m, n, hd, gain_scaler):
    """Pure-JAX batched reference mirroring the torch forward_sequence."""
    A, C = params["A"], params["C"]
    w1, b1 = params["w1"], params["b1"]
    w_ih, b_ih = params["w_ih"], params["b_ih"]
    w_hh, b_hh = params["w_hh"], params["b_hh"]
    w2, b2 = params["w2"], params["b2"]
    w3, b3 = params["w3"], params["b3"]

    def step(carry, y):
        x_post, hn = carry
        x_prior = x_post @ A.T
        y_prior = x_prior @ C.T
        f4 = x_post - x_prior
        f4 = f4 / jnp.maximum(jnp.linalg.norm(f4, axis=1, keepdims=True), 1e-12)
        dy = y - y_prior
        f2 = dy / jnp.maximum(jnp.linalg.norm(dy, axis=1, keepdims=True), 1e-12)
        net_in = jnp.concatenate([f2, f4], axis=1)
        l1 = jax.nn.relu(net_in @ w1.T + b1)
        gi = l1 @ w_ih.T + b_ih
        gh = hn @ w_hh.T + b_hh
        r = jax.nn.sigmoid(gi[:, :hd] + gh[:, :hd])
        z = jax.nn.sigmoid(gi[:, hd:2 * hd] + gh[:, hd:2 * hd])
        ng = jnp.tanh(gi[:, 2 * hd:] + r * gh[:, 2 * hd:])
        h_new = (1.0 - z) * ng + z * hn
        l2 = jax.nn.relu(h_new @ w2.T + b2)
        kg = ((l2 @ w3.T + b3) / gain_scaler).reshape(-1, m, n)
        x_new = x_prior + jnp.einsum('bmn,bn->bm', kg, dy)
        return (x_new, h_new), x_new

    (x_last, h_last), xs = jax.lax.scan(step, (x0, hn0), y_seq)
    return xs, h_last


if __name__ == "__main__":
    # System sizes (KalmanNetNN defaults for m=4, n=2)
    m, n = 4, 2
    h1 = (m + n) * 10 * 8        # 480
    h2 = m * n * 1 * 4           # 32
    hd = m * m + n * n           # 20
    gain_scaler = 10000.0
    T = 8                        # sequence length
    B = 16                       # independent trajectories (batched on sublanes)

    key = jax.random.PRNGKey(0)
    ks = jax.random.split(key, 16)

    def rnd(k, shape, scale=0.1):
        return (scale * jax.random.normal(k, shape)).astype(jnp.float32)

    params = dict(
        A=(0.9 * jnp.eye(m, dtype=jnp.float32) + rnd(ks[0], (m, m), 0.05)),
        C=rnd(ks[1], (n, m), 0.5),
        w1=rnd(ks[2], (h1, m + n)), b1=rnd(ks[3], (h1,)),
        w_ih=rnd(ks[4], (3 * hd, h1)), b_ih=rnd(ks[5], (3 * hd,)),
        w_hh=rnd(ks[6], (3 * hd, hd)), b_hh=rnd(ks[7], (3 * hd,)),
        w2=rnd(ks[8], (h2, hd)), b2=rnd(ks[9], (h2,)),
        w3=rnd(ks[10], (m * n, h2)), b3=rnd(ks[11], (m * n,)),
    )
    x0 = rnd(ks[12], (B, m), 1.0)          # per-trajectory initial_state
    hn0 = rnd(ks[13], (B, hd), 1.0)        # per-trajectory initial GRU hidden
    y_seq = rnd(ks[14], (T, B, n), 1.0)    # observations

    run = make_kalman_sequence(params, m, n, hd, gain_scaler, T, B)
    xs_k, hn_k = run(y_seq, x0, hn0)
    xs_k = jax.block_until_ready(xs_k)
    hn_k = jax.block_until_ready(hn_k)

    xs_r, hn_r = reference_sequence(y_seq, x0, hn0, params, m, n, hd, gain_scaler)

    np.testing.assert_allclose(np.asarray(xs_k), np.asarray(xs_r), rtol=2e-2, atol=2e-2)
    np.testing.assert_allclose(np.asarray(hn_k), np.asarray(hn_r), rtol=2e-2, atol=2e-2)
    assert xs_k.shape == (T, B, m) and hn_k.shape == (B, hd)

    print("KERNEL_OK")
</pallas_src>

<mosaic_0001>
module attributes {stable_mosaic.version = 11 : i64} {
  func.func @_kalman_seq_kernel(%arg0: i32, %arg1: memref<8x8x2xf32, #tpu.memory_space<vmem>>, %arg2: memref<8x4xf32, #tpu.memory_space<vmem>>, %arg3: memref<8x20xf32, #tpu.memory_space<vmem>>, %arg4: memref<4x6xf32, #tpu.memory_space<vmem>>, %arg5: memref<2x480xf32, #tpu.memory_space<vmem>>, %arg6: memref<4x480xf32, #tpu.memory_space<vmem>>, %arg7: memref<1x480xf32, #tpu.memory_space<vmem>>, %arg8: memref<480x60xf32, #tpu.memory_space<vmem>>, %arg9: memref<1x60xf32, #tpu.memory_space<vmem>>, %arg10: memref<20x60xf32, #tpu.memory_space<vmem>>, %arg11: memref<1x60xf32, #tpu.memory_space<vmem>>, %arg12: memref<20x32xf32, #tpu.memory_space<vmem>>, %arg13: memref<1x32xf32, #tpu.memory_space<vmem>>, %arg14: memref<32x8xf32, #tpu.memory_space<vmem>>, %arg15: memref<1x8xf32, #tpu.memory_space<vmem>>, %arg16: memref<8x8x4xf32, #tpu.memory_space<vmem>>, %arg17: memref<8x20xf32, #tpu.memory_space<vmem>>) attributes {dimension_semantics = [#tpu.dimension_semantics<parallel>], iteration_bounds = array<i64: 2>, scalar_prefetch = 0 : i64, scratch_operands = 0 : i64, tpu.core_type = #tpu.core_type<tc>, window_params = [{transform_indices = @transform_0, window_bounds = array<i64: 8, 8, 2>}, {transform_indices = @transform_1, window_bounds = array<i64: 8, 4>}, {transform_indices = @transform_2, window_bounds = array<i64: 8, 20>}, {pipeline_mode = #tpu.pipeline_mode<synchronous>, transform_indices = @transform_3, window_bounds = array<i64: 4, 6>}, {pipeline_mode = #tpu.pipeline_mode<synchronous>, transform_indices = @transform_4, window_bounds = array<i64: 2, 480>}, {pipeline_mode = #tpu.pipeline_mode<synchronous>, transform_indices = @transform_5, window_bounds = array<i64: 4, 480>}, {pipeline_mode = #tpu.pipeline_mode<synchronous>, transform_indices = @transform_6, window_bounds = array<i64: 1, 480>}, {pipeline_mode = #tpu.pipeline_mode<synchronous>, transform_indices = @transform_7, window_bounds = array<i64: 480, 60>}, {pipeline_mode = #tpu.pipeline_mode<synchronous>, transform_indices = @transform_8, window_bounds = array<i64: 1, 60>}, {pipeline_mode = #tpu.pipeline_mode<synchronous>, transform_indices = @transform_9, window_bounds = array<i64: 20, 60>}, {pipeline_mode = #tpu.pipeline_mode<synchronous>, transform_indices = @transform_10, window_bounds = array<i64: 1, 60>}, {pipeline_mode = #tpu.pipeline_mode<synchronous>, transform_indices = @transform_11, window_bounds = array<i64: 20, 32>}, {pipeline_mode = #tpu.pipeline_mode<synchronous>, transform_indices = @transform_12, window_bounds = array<i64: 1, 32>}, {pipeline_mode = #tpu.pipeline_mode<synchronous>, transform_indices = @transform_13, window_bounds = array<i64: 32, 8>}, {pipeline_mode = #tpu.pipeline_mode<synchronous>, transform_indices = @transform_14, window_bounds = array<i64: 1, 8>}, {transform_indices = @transform_15, window_bounds = array<i64: 8, 8, 4>}, {transform_indices = @transform_16, window_bounds = array<i64: 8, 20>}]} {
    %c0 = arith.constant 0 : index
    %c0_0 = arith.constant 0 : index
    %0 = vector.load %arg2[%c0, %c0_0] : memref<8x4xf32, #tpu.memory_space<vmem>>, vector<8x4xf32>
    %c0_1 = arith.constant 0 : index
    %c0_2 = arith.constant 0 : index
    %1 = vector.load %arg3[%c0_1, %c0_2] : memref<8x20xf32, #tpu.memory_space<vmem>>, vector<8x20xf32>
    %c0_3 = arith.constant 0 : index
    %c0_4 = arith.constant 0 : index
    %c0_5 = arith.constant 0 : index
    %2 = vector.load %arg1[%c0_3, %c0_4, %c0_5] : memref<8x8x2xf32, #tpu.memory_space<vmem>>, vector<1x8x2xf32>
    %3 = vector.shape_cast %2 : vector<1x8x2xf32> to vector<8x2xf32>
    %c0_6 = arith.constant 0 : index
    %c0_7 = arith.constant 0 : index
    %4 = vector.load %arg4[%c0_6, %c0_7] : memref<4x6xf32, #tpu.memory_space<vmem>>, vector<4x6xf32>
    %cst = arith.constant dense<0.000000e+00> : vector<8x6xf32>
    %5 = tpu.matmul %0, %4, %cst {dimension_numbers = #tpu.dot_dimension_numbers<[1], [0], [0], [1], [0, 0, 1, 1], [], []>} : vector<8x4xf32>, vector<4x6xf32>, vector<8x6xf32> -> vector<8x6xf32>
    %6 = vector.extract_strided_slice %5 {offsets = [0, 0], sizes = [8, 4], strides = [1, 1]} : vector<8x6xf32> to vector<8x4xf32>
    %7 = vector.extract_strided_slice %5 {offsets = [0, 4], sizes = [8, 2], strides = [1, 1]} : vector<8x6xf32> to vector<8x2xf32>
    %8 = arith.subf %0, %6 : vector<8x4xf32>
    %9 = arith.mulf %8, %8 : vector<8x4xf32>
    %cst_8 = arith.constant dense<0.000000e+00> : vector<8xf32>
    %10 = vector.multi_reduction <add>, %9, %cst_8 [1] : vector<8x4xf32> to vector<8xf32>
    %11 = vector.shape_cast %10 : vector<8xf32> to vector<8x1xf32>
    %cst_9 = arith.constant 1.000000e-24 : f32
    %12 = vector.broadcast %cst_9 : f32 to vector<8x1xf32>
    %13 = arith.maximumf %11, %12 : vector<8x1xf32>
    %14 = math.rsqrt %13 : vector<8x1xf32>
    %15 = vector.broadcast %14 : vector<8x1xf32> to vector<8x4xf32>
    %16 = arith.mulf %8, %15 : vector<8x4xf32>
    %17 = arith.subf %3, %7 : vector<8x2xf32>
    %18 = arith.mulf %17, %17 : vector<8x2xf32>
    %cst_10 = arith.constant dense<0.000000e+00> : vector<8xf32>
    %19 = vector.multi_reduction <add>, %18, %cst_10 [1] : vector<8x2xf32> to vector<8xf32>
    %20 = vector.shape_cast %19 : vector<8xf32> to vector<8x1xf32>
    %cst_11 = arith.constant 1.000000e-24 : f32
    %21 = vector.broadcast %cst_11 : f32 to vector<8x1xf32>
    %22 = arith.maximumf %20, %21 : vector<8x1xf32>
    %23 = math.rsqrt %22 : vector<8x1xf32>
    %24 = vector.broadcast %23 : vector<8x1xf32> to vector<8x2xf32>
    %25 = arith.mulf %17, %24 : vector<8x2xf32>
    %c0_12 = arith.constant 0 : index
    %c0_13 = arith.constant 0 : index
    %26 = vector.load %arg5[%c0_12, %c0_13] : memref<2x480xf32, #tpu.memory_space<vmem>>, vector<2x480xf32>
    %cst_14 = arith.constant dense<0.000000e+00> : vector<8x480xf32>
    %27 = tpu.matmul %25, %26, %cst_14 {dimension_numbers = #tpu.dot_dimension_numbers<[1], [0], [0], [1], [0, 0, 1, 1], [], []>} : vector<8x2xf32>, vector<2x480xf32>, vector<8x480xf32> -> vector<8x480xf32>
    %c0_15 = arith.constant 0 : index
    %c0_16 = arith.constant 0 : index
    %28 = vector.load %arg6[%c0_15, %c0_16] : memref<4x480xf32, #tpu.memory_space<vmem>>, vector<4x480xf32>
    %cst_17 = arith.constant dense<0.000000e+00> : vector<8x480xf32>
    %29 = tpu.matmul %16, %28, %cst_17 {dimension_numbers = #tpu.dot_dimension_numbers<[1], [0], [0], [1], [0, 0, 1, 1], [], []>} : vector<8x4xf32>, vector<4x480xf32>, vector<8x480xf32> -> vector<8x480xf32>
    %30 = arith.addf %27, %29 : vector<8x480xf32>
    %c0_18 = arith.constant 0 : index
    %c0_19 = arith.constant 0 : index
    %31 = vector.load %arg7[%c0_18, %c0_19] : memref<1x480xf32, #tpu.memory_space<vmem>>, vector<1x480xf32>
    %32 = vector.broadcast %31 : vector<1x480xf32> to vector<8x480xf32>
    %33 = arith.addf %30, %32 : vector<8x480xf32>
    %cst_20 = arith.constant 0.000000e+00 : f32
    %34 = vector.broadcast %cst_20 : f32 to vector<8x480xf32>
    %35 = arith.maximumf %33, %34 : vector<8x480xf32>
    %c0_21 = arith.constant 0 : index
    %c0_22 = arith.constant 0 : index
    %36 = vector.load %arg8[%c0_21, %c0_22] : memref<480x60xf32, #tpu.memory_space<vmem>>, vector<480x60xf32>
    %cst_23 = arith.constant dense<0.000000e+00> : vector<8x60xf32>
    %37 = tpu.matmul %35, %36, %cst_23 {dimension_numbers = #tpu.dot_dimension_numbers<[1], [0], [0], [1], [0, 0, 1, 1], [], []>} : vector<8x480xf32>, vector<480x60xf32>, vector<8x60xf32> -> vector<8x60xf32>
    %c0_24 = arith.constant 0 : index
    %c0_25 = arith.constant 0 : index
    %38 = vector.load %arg9[%c0_24, %c0_25] : memref<1x60xf32, #tpu.memory_space<vmem>>, vector<1x60xf32>
    %39 = vector.broadcast %38 : vector<1x60xf32> to vector<8x60xf32>
    %40 = arith.addf %37, %39 : vector<8x60xf32>
    %c0_26 = arith.constant 0 : index
    %c0_27 = arith.constant 0 : index
    %41 = vector.load %arg10[%c0_26, %c0_27] : memref<20x60xf32, #tpu.memory_space<vmem>>, vector<20x60xf32>
    %cst_28 = arith.constant dense<0.000000e+00> : vector<8x60xf32>
    %42 = tpu.matmul %1, %41, %cst_28 {dimension_numbers = #tpu.dot_dimension_numbers<[1], [0], [0], [1], [0, 0, 1, 1], [], []>} : vector<8x20xf32>, vector<20x60xf32>, vector<8x60xf32> -> vector<8x60xf32>
    %c0_29 = arith.constant 0 : index
    %c0_30 = arith.constant 0 : index
    %43 = vector.load %arg11[%c0_29, %c0_30] : memref<1x60xf32, #tpu.memory_space<vmem>>, vector<1x60xf32>
    %44 = vector.broadcast %43 : vector<1x60xf32> to vector<8x60xf32>
    %45 = arith.addf %42, %44 : vector<8x60xf32>
    %46 = vector.extract_strided_slice %40 {offsets = [0, 0], sizes = [8, 20], strides = [1, 1]} : vector<8x60xf32> to vector<8x20xf32>
    %47 = vector.extract_strided_slice %45 {offsets = [0, 0], sizes = [8, 20], strides = [1, 1]} : vector<8x60xf32> to vector<8x20xf32>
    %48 = arith.addf %46, %47 : vector<8x20xf32>
    %49 = arith.negf %48 : vector<8x20xf32>
    %50 = math.exp %49 : vector<8x20xf32>
    %cst_31 = arith.constant 1.000000e+00 : f32
    %51 = vector.broadcast %cst_31 : f32 to vector<8x20xf32>
    %52 = arith.addf %51, %50 : vector<8x20xf32>
    %53 = arith.divf %51, %52 : vector<8x20xf32>
    %54 = vector.extract_strided_slice %40 {offsets = [0, 20], sizes = [8, 20], strides = [1, 1]} : vector<8x60xf32> to vector<8x20xf32>
    %55 = vector.extract_strided_slice %45 {offsets = [0, 20], sizes = [8, 20], strides = [1, 1]} : vector<8x60xf32> to vector<8x20xf32>
    %56 = arith.addf %54, %55 : vector<8x20xf32>
    %57 = arith.negf %56 : vector<8x20xf32>
    %58 = math.exp %57 : vector<8x20xf32>
    %cst_32 = arith.constant 1.000000e+00 : f32
    %59 = vector.broadcast %cst_32 : f32 to vector<8x20xf32>
    %60 = arith.addf %59, %58 : vector<8x20xf32>
    %61 = arith.divf %59, %60 : vector<8x20xf32>
    %62 = vector.extract_strided_slice %40 {offsets = [0, 40], sizes = [8, 20], strides = [1, 1]} : vector<8x60xf32> to vector<8x20xf32>
    %63 = vector.extract_strided_slice %45 {offsets = [0, 40], sizes = [8, 20], strides = [1, 1]} : vector<8x60xf32> to vector<8x20xf32>
    %64 = arith.mulf %53, %63 : vector<8x20xf32>
    %65 = arith.addf %62, %64 : vector<8x20xf32>
    %66 = math.tanh %65 : vector<8x20xf32>
    %cst_33 = arith.constant 1.000000e+00 : f32
    %67 = vector.broadcast %cst_33 : f32 to vector<8x20xf32>
    %68 = arith.subf %67, %61 : vector<8x20xf32>
    %69 = arith.mulf %68, %66 : vector<8x20xf32>
    %70 = arith.mulf %61, %1 : vector<8x20xf32>
    %71 = arith.addf %69, %70 : vector<8x20xf32>
    %c0_34 = arith.constant 0 : index
    %c0_35 = arith.constant 0 : index
    %72 = vector.load %arg12[%c0_34, %c0_35] : memref<20x32xf32, #tpu.memory_space<vmem>>, vector<20x32xf32>
    %cst_36 = arith.constant dense<0.000000e+00> : vector<8x32xf32>
    %73 = tpu.matmul %71, %72, %cst_36 {dimension_numbers = #tpu.dot_dimension_numbers<[1], [0], [0], [1], [0, 0, 1, 1], [], []>} : vector<8x20xf32>, vector<20x32xf32>, vector<8x32xf32> -> vector<8x32xf32>
    %c0_37 = arith.constant 0 : index
    %c0_38 = arith.constant 0 : index
    %74 = vector.load %arg13[%c0_37, %c0_38] : memref<1x32xf32, #tpu.memory_space<vmem>>, vector<1x32xf32>
    %75 = vector.broadcast %74 : vector<1x32xf32> to vector<8x32xf32>
    %76 = arith.addf %73, %75 : vector<8x32xf32>
    %cst_39 = arith.constant 0.000000e+00 : f32
    %77 = vector.broadcast %cst_39 : f32 to vector<8x32xf32>
    %78 = arith.maximumf %76, %77 : vector<8x32xf32>
    %c0_40 = arith.constant 0 : index
    %c0_41 = arith.constant 0 : index
    %79 = vector.load %arg14[%c0_40, %c0_41] : memref<32x8xf32, #tpu.memory_space<vmem>>, vector<32x8xf32>
    %cst_42 = arith.constant dense<0.000000e+00> : vector<8x8xf32>
    %80 = tpu.matmul %78, %79, %cst_42 {dimension_numbers = #tpu.dot_dimension_numbers<[1], [0], [0], [1], [0, 0, 1, 1], [], []>} : vector<8x32xf32>, vector<32x8xf32>, vector<8x8xf32> -> vector<8x8xf32>
    %c0_43 = arith.constant 0 : index
    %c0_44 = arith.constant 0 : index
    %81 = vector.load %arg15[%c0_43, %c0_44] : memref<1x8xf32, #tpu.memory_space<vmem>>, vector<1x8xf32>
    %82 = vector.broadcast %81 : vector<1x8xf32> to vector<8x8xf32>
    %83 = arith.addf %80, %82 : vector<8x8xf32>
    %cst_45 = arith.constant 9.99999974E-5 : f32
    %84 = vector.broadcast %cst_45 : f32 to vector<8x8xf32>
    %85 = arith.mulf %83, %84 : vector<8x8xf32>
    %86 = vector.extract_strided_slice %85 {offsets = [0, 0], sizes = [8, 4], strides = [1, 1]} : vector<8x8xf32> to vector<8x4xf32>
    %87 = vector.extract_strided_slice %17 {offsets = [0, 0], sizes = [8, 1], strides = [1, 1]} : vector<8x2xf32> to vector<8x1xf32>
    %88 = vector.broadcast %87 : vector<8x1xf32> to vector<8x4xf32>
    %89 = arith.mulf %86, %88 : vector<8x4xf32>
    %90 = vector.extract_strided_slice %85 {offsets = [0, 4], sizes = [8, 4], strides = [1, 1]} : vector<8x8xf32> to vector<8x4xf32>
    %91 = vector.extract_strided_slice %17 {offsets = [0, 1], sizes = [8, 1], strides = [1, 1]} : vector<8x2xf32> to vector<8x1xf32>
    %92 = vector.broadcast %91 : vector<8x1xf32> to vector<8x4xf32>
    %93 = arith.mulf %90, %92 : vector<8x4xf32>
    %94 = arith.addf %89, %93 : vector<8x4xf32>
    %95 = arith.addf %6, %94 : vector<8x4xf32>
    %c0_46 = arith.constant 0 : index
    %c0_47 = arith.constant 0 : index
    %c0_48 = arith.constant 0 : index
    %96 = vector.load %arg16[%c0_46, %c0_47, %c0_48] : memref<8x8x4xf32, #tpu.memory_space<vmem>>, vector<1x8x4xf32>
    %97 = vector.shape_cast %96 : vector<1x8x4xf32> to vector<8x4xf32>
    %98 = vector.shape_cast %95 : vector<8x4xf32> to vector<1x8x4xf32>
    tpu.vector_store %arg16[%c0_46, %c0_47, %c0_48], %98 {strides = array<i32>} : memref<8x8x4xf32, #tpu.memory_space<vmem>>, vector<1x8x4xf32>,
    %c1 = arith.constant 1 : index
    %c0_49 = arith.constant 0 : index
    %c0_50 = arith.constant 0 : index
    %99 = vector.load %arg1[%c1, %c0_49, %c0_50] : memref<8x8x2xf32, #tpu.memory_space<vmem>>, vector<1x8x2xf32>
    %100 = vector.shape_cast %99 : vector<1x8x2xf32> to vector<8x2xf32>
    %c0_51 = arith.constant 0 : index
    %c0_52 = arith.constant 0 : index
    %101 = vector.load %arg4[%c0_51, %c0_52] : memref<4x6xf32, #tpu.memory_space<vmem>>, vector<4x6xf32>
    %cst_53 = arith.constant dense<0.000000e+00> : vector<8x6xf32>
    %102 = tpu.matmul %95, %101, %cst_53 {dimension_numbers = #tpu.dot_dimension_numbers<[1], [0], [0], [1], [0, 0, 1, 1], [], []>} : vector<8x4xf32>, vector<4x6xf32>, vector<8x6xf32> -> vector<8x6xf32>
    %103 = vector.extract_strided_slice %102 {offsets = [0, 0], sizes = [8, 4], strides = [1, 1]} : vector<8x6xf32> to vector<8x4xf32>
    %104 = vector.extract_strided_slice %102 {offsets = [0, 4], sizes = [8, 2], strides = [1, 1]} : vector<8x6xf32> to vector<8x2xf32>
    %105 = arith.subf %95, %103 : vector<8x4xf32>
    %106 = arith.mulf %105, %105 : vector<8x4xf32>
    %cst_54 = arith.constant dense<0.000000e+00> : vector<8xf32>
    %107 = vector.multi_reduction <add>, %106, %cst_54 [1] : vector<8x4xf32> to vector<8xf32>
    %108 = vector.shape_cast %107 : vector<8xf32> to vector<8x1xf32>
    %cst_55 = arith.constant 1.000000e-24 : f32
    %109 = vector.broadcast %cst_55 : f32 to vector<8x1xf32>
    %110 = arith.maximumf %108, %109 : vector<8x1xf32>
    %111 = math.rsqrt %110 : vector<8x1xf32>
    %112 = vector.broadcast %111 : vector<8x1xf32> to vector<8x4xf32>
    %113 = arith.mulf %105, %112 : vector<8x4xf32>
    %114 = arith.subf %100, %104 : vector<8x2xf32>
    %115 = arith.mulf %114, %114 : vector<8x2xf32>
    %cst_56 = arith.constant dense<0.000000e+00> : vector<8xf32>
    %116 = vector.multi_reduction <add>, %115, %cst_56 [1] : vector<8x2xf32> to vector<8xf32>
    %117 = vector.shape_cast %116 : vector<8xf32> to vector<8x1xf32>
    %cst_57 = arith.constant 1.000000e-24 : f32
    %118 = vector.broadcast %cst_57 : f32 to vector<8x1xf32>
    %119 = arith.maximumf %117, %118 : vector<8x1xf32>
    %120 = math.rsqrt %119 : vector<8x1xf32>
    %121 = vector.broadcast %120 : vector<8x1xf32> to vector<8x2xf32>
    %122 = arith.mulf %114, %121 : vector<8x2xf32>
    %c0_58 = arith.constant 0 : index
    %c0_59 = arith.constant 0 : index
    %123 = vector.load %arg5[%c0_58, %c0_59] : memref<2x480xf32, #tpu.memory_space<vmem>>, vector<2x480xf32>
    %cst_60 = arith.constant dense<0.000000e+00> : vector<8x480xf32>
    %124 = tpu.matmul %122, %123, %cst_60 {dimension_numbers = #tpu.dot_dimension_numbers<[1], [0], [0], [1], [0, 0, 1, 1], [], []>} : vector<8x2xf32>, vector<2x480xf32>, vector<8x480xf32> -> vector<8x480xf32>
    %c0_61 = arith.constant 0 : index
    %c0_62 = arith.constant 0 : index
    %125 = vector.load %arg6[%c0_61, %c0_62] : memref<4x480xf32, #tpu.memory_space<vmem>>, vector<4x480xf32>
    %cst_63 = arith.constant dense<0.000000e+00> : vector<8x480xf32>
    %126 = tpu.matmul %113, %125, %cst_63 {dimension_numbers = #tpu.dot_dimension_numbers<[1], [0], [0], [1], [0, 0, 1, 1], [], []>} : vector<8x4xf32>, vector<4x480xf32>, vector<8x480xf32> -> vector<8x480xf32>
    %127 = arith.addf %124, %126 : vector<8x480xf32>
    %c0_64 = arith.constant 0 : index
    %c0_65 = arith.constant 0 : index
    %128 = vector.load %arg7[%c0_64, %c0_65] : memref<1x480xf32, #tpu.memory_space<vmem>>, vector<1x480xf32>
    %129 = vector.broadcast %128 : vector<1x480xf32> to vector<8x480xf32>
    %130 = arith.addf %127, %129 : vector<8x480xf32>
    %cst_66 = arith.constant 0.000000e+00 : f32
    %131 = vector.broadcast %cst_66 : f32 to vector<8x480xf32>
    %132 = arith.maximumf %130, %131 : vector<8x480xf32>
    %c0_67 = arith.constant 0 : index
    %c0_68 = arith.constant 0 : index
    %133 = vector.load %arg8[%c0_67, %c0_68] : memref<480x60xf32, #tpu.memory_space<vmem>>, vector<480x60xf32>
    %cst_69 = arith.constant dense<0.000000e+00> : vector<8x60xf32>
    %134 = tpu.matmul %132, %133, %cst_69 {dimension_numbers = #tpu.dot_dimension_numbers<[1], [0], [0], [1], [0, 0, 1, 1], [], []>} : vector<8x480xf32>, vector<480x60xf32>, vector<8x60xf32> -> vector<8x60xf32>
    %c0_70 = arith.constant 0 : index
    %c0_71 = arith.constant 0 : index
    %135 = vector.load %arg9[%c0_70, %c0_71] : memref<1x60xf32, #tpu.memory_space<vmem>>, vector<1x60xf32>
    %136 = vector.broadcast %135 : vector<1x60xf32> to vector<8x60xf32>
    %137 = arith.addf %134, %136 : vector<8x60xf32>
    %c0_72 = arith.constant 0 : index
    %c0_73 = arith.constant 0 : index
    %138 = vector.load %arg10[%c0_72, %c0_73] : memref<20x60xf32, #tpu.memory_space<vmem>>, vector<20x60xf32>
    %cst_74 = arith.constant dense<0.000000e+00> : vector<8x60xf32>
    %139 = tpu.matmul %71, %138, %cst_74 {dimension_numbers = #tpu.dot_dimension_numbers<[1], [0], [0], [1], [0, 0, 1, 1], [], []>} : vector<8x20xf32>, vector<20x60xf32>, vector<8x60xf32> -> vector<8x60xf32>
    %c0_75 = arith.constant 0 : index
    %c0_76 = arith.constant 0 : index
    %140 = vector.load %arg11[%c0_75, %c0_76] : memref<1x60xf32, #tpu.memory_space<vmem>>, vector<1x60xf32>
    %141 = vector.broadcast %140 : vector<1x60xf32> to vector<8x60xf32>
    %142 = arith.addf %139, %141 : vector<8x60xf32>
    %143 = vector.extract_strided_slice %137 {offsets = [0, 0], sizes = [8, 20], strides = [1, 1]} : vector<8x60xf32> to vector<8x20xf32>
    %144 = vector.extract_strided_slice %142 {offsets = [0, 0], sizes = [8, 20], strides = [1, 1]} : vector<8x60xf32> to vector<8x20xf32>
    %145 = arith.addf %143, %144 : vector<8x20xf32>
    %146 = arith.negf %145 : vector<8x20xf32>
    %147 = math.exp %146 : vector<8x20xf32>
    %cst_77 = arith.constant 1.000000e+00 : f32
    %148 = vector.broadcast %cst_77 : f32 to vector<8x20xf32>
    %149 = arith.addf %148, %147 : vector<8x20xf32>
    %150 = arith.divf %148, %149 : vector<8x20xf32>
    %151 = vector.extract_strided_slice %137 {offsets = [0, 20], sizes = [8, 20], strides = [1, 1]} : vector<8x60xf32> to vector<8x20xf32>
    %152 = vector.extract_strided_slice %142 {offsets = [0, 20], sizes = [8, 20], strides = [1, 1]} : vector<8x60xf32> to vector<8x20xf32>
    %153 = arith.addf %151, %152 : vector<8x20xf32>
    %154 = arith.negf %153 : vector<8x20xf32>
    %155 = math.exp %154 : vector<8x20xf32>
    %cst_78 = arith.constant 1.000000e+00 : f32
    %156 = vector.broadcast %cst_78 : f32 to vector<8x20xf32>
    %157 = arith.addf %156, %155 : vector<8x20xf32>
    %158 = arith.divf %156, %157 : vector<8x20xf32>
    %159 = vector.extract_strided_slice %137 {offsets = [0, 40], sizes = [8, 20], strides = [1, 1]} : vector<8x60xf32> to vector<8x20xf32>
    %160 = vector.extract_strided_slice %142 {offsets = [0, 40], sizes = [8, 20], strides = [1, 1]} : vector<8x60xf32> to vector<8x20xf32>
    %161 = arith.mulf %150, %160 : vector<8x20xf32>
    %162 = arith.addf %159, %161 : vector<8x20xf32>
    %163 = math.tanh %162 : vector<8x20xf32>
    %cst_79 = arith.constant 1.000000e+00 : f32
    %164 = vector.broadcast %cst_79 : f32 to vector<8x20xf32>
    %165 = arith.subf %164, %158 : vector<8x20xf32>
    %166 = arith.mulf %165, %163 : vector<8x20xf32>
    %167 = arith.mulf %158, %71 : vector<8x20xf32>
    %168 = arith.addf %166, %167 : vector<8x20xf32>
    %c0_80 = arith.constant 0 : index
    %c0_81 = arith.constant 0 : index
    %169 = vector.load %arg12[%c0_80, %c0_81] : memref<20x32xf32, #tpu.memory_space<vmem>>, vector<20x32xf32>
    %cst_82 = arith.constant dense<0.000000e+00> : vector<8x32xf32>
    %170 = tpu.matmul %168, %169, %cst_82 {dimension_numbers = #tpu.dot_dimension_numbers<[1], [0], [0], [1], [0, 0, 1, 1], [], []>} : vector<8x20xf32>, vector<20x32xf32>, vector<8x32xf32> -> vector<8x32xf32>
    %c0_83 = arith.constant 0 : index
    %c0_84 = arith.constant 0 : index
    %171 = vector.load %arg13[%c0_83, %c0_84] : memref<1x32xf32, #tpu.memory_space<vmem>>, vector<1x32xf32>
    %172 = vector.broadcast %171 : vector<1x32xf32> to vector<8x32xf32>
    %173 = arith.addf %170, %172 : vector<8x32xf32>
    %cst_85 = arith.constant 0.000000e+00 : f32
    %174 = vector.broadcast %cst_85 : f32 to vector<8x32xf32>
    %175 = arith.maximumf %173, %174 : vector<8x32xf32>
    %c0_86 = arith.constant 0 : index
    %c0_87 = arith.constant 0 : index
    %176 = vector.load %arg14[%c0_86, %c0_87] : memref<32x8xf32, #tpu.memory_space<vmem>>, vector<32x8xf32>
    %cst_88 = arith.constant dense<0.000000e+00> : vector<8x8xf32>
    %177 = tpu.matmul %175, %176, %cst_88 {dimension_numbers = #tpu.dot_dimension_numbers<[1], [0], [0], [1], [0, 0, 1, 1], [], []>} : vector<8x32xf32>, vector<32x8xf32>, vector<8x8xf32> -> vector<8x8xf32>
    %c0_89 = arith.constant 0 : index
    %c0_90 = arith.constant 0 : index
    %178 = vector.load %arg15[%c0_89, %c0_90] : memref<1x8xf32, #tpu.memory_space<vmem>>, vector<1x8xf32>
    %179 = vector.broadcast %178 : vector<1x8xf32> to vector<8x8xf32>
    %180 = arith.addf %177, %179 : vector<8x8xf32>
    %cst_91 = arith.constant 9.99999974E-5 : f32
    %181 = vector.broadcast %cst_91 : f32 to vector<8x8xf32>
    %182 = arith.mulf %180, %181 : vector<8x8xf32>
    %183 = vector.extract_strided_slice %182 {offsets = [0, 0], sizes = [8, 4], strides = [1, 1]} : vector<8x8xf32> to vector<8x4xf32>
    %184 = vector.extract_strided_slice %114 {offsets = [0, 0], sizes = [8, 1], strides = [1, 1]} : vector<8x2xf32> to vector<8x1xf32>
    %185 = vector.broadcast %184 : vector<8x1xf32> to vector<8x4xf32>
    %186 = arith.mulf %183, %185 : vector<8x4xf32>
    %187 = vector.extract_strided_slice %182 {offsets = [0, 4], sizes = [8, 4], strides = [1, 1]} : vector<8x8xf32> to vector<8x4xf32>
    %188 = vector.extract_strided_slice %114 {offsets = [0, 1], sizes = [8, 1], strides = [1, 1]} : vector<8x2xf32> to vector<8x1xf32>
    %189 = vector.broadcast %188 : vector<8x1xf32> to vector<8x4xf32>
    %190 = arith.mulf %187, %189 : vector<8x4xf32>
    %191 = arith.addf %186, %190 : vector<8x4xf32>
    %192 = arith.addf %103, %191 : vector<8x4xf32>
    %c1_92 = arith.constant 1 : index
    %c0_93 = arith.constant 0 : index
    %c0_94 = arith.constant 0 : index
    %193 = vector.load %arg16[%c1_92, %c0_93, %c0_94] : memref<8x8x4xf32, #tpu.memory_space<vmem>>, vector<1x8x4xf32>
    %194 = vector.shape_cast %193 : vector<1x8x4xf32> to vector<8x4xf32>
    %195 = vector.shape_cast %192 : vector<8x4xf32> to vector<1x8x4xf32>
    tpu.vector_store %arg16[%c1_92, %c0_93, %c0_94], %195 {strides = array<i32>} : memref<8x8x4xf32, #tpu.memory_space<vmem>>, vector<1x8x4xf32>,
    %c2 = arith.constant 2 : index
    %c0_95 = arith.constant 0 : index
    %c0_96 = arith.constant 0 : index
    %196 = vector.load %arg1[%c2, %c0_95, %c0_96] : memref<8x8x2xf32, #tpu.memory_space<vmem>>, vector<1x8x2xf32>
    %197 = vector.shape_cast %196 : vector<1x8x2xf32> to vector<8x2xf32>
    %c0_97 = arith.constant 0 : index
    %c0_98 = arith.constant 0 : index
    %198 = vector.load %arg4[%c0_97, %c0_98] : memref<4x6xf32, #tpu.memory_space<vmem>>, vector<4x6xf32>
    %cst_99 = arith.constant dense<0.000000e+00> : vector<8x6xf32>
    %199 = tpu.matmul %192, %198, %cst_99 {dimension_numbers = #tpu.dot_dimension_numbers<[1], [0], [0], [1], [0, 0, 1, 1], [], []>} : vector<8x4xf32>, vector<4x6xf32>, vector<8x6xf32> -> vector<8x6xf32>
    %200 = vector.extract_strided_slice %199 {offsets = [0, 0], sizes = [8, 4], strides = [1, 1]} : vector<8x6xf32> to vector<8x4xf32>
    %201 = vector.extract_strided_slice %199 {offsets = [0, 4], sizes = [8, 2], strides = [1, 1]} : vector<8x6xf32> to vector<8x2xf32>
    %202 = arith.subf %192, %200 : vector<8x4xf32>
    %203 = arith.mulf %202, %202 : vector<8x4xf32>
    %cst_100 = arith.constant dense<0.000000e+00> : vector<8xf32>
    %204 = vector.multi_reduction <add>, %203, %cst_100 [1] : vector<8x4xf32> to vector<8xf32>
    %205 = vector.shape_cast %204 : vector<8xf32> to vector<8x1xf32>
    %cst_101 = arith.constant 1.000000e-24 : f32
    %206 = vector.broadcast %cst_101 : f32 to vector<8x1xf32>
    %207 = arith.maximumf %205, %206 : vector<8x1xf32>
    %208 = math.rsqrt %207 : vector<8x1xf32>
    %209 = vector.broadcast %208 : vector<8x1xf32> to vector<8x4xf32>
    %210 = arith.mulf %202, %209 : vector<8x4xf32>
    %211 = arith.subf %197, %201 : vector<8x2xf32>
    %212 = arith.mulf %211, %211 : vector<8x2xf32>
    %cst_102 = arith.constant dense<0.000000e+00> : vector<8xf32>
    %213 = vector.multi_reduction <add>, %212, %cst_102 [1] : vector<8x2xf32> to vector<8xf32>
    %214 = vector.shape_cast %213 : vector<8xf32> to vector<8x1xf32>
    %cst_103 = arith.constant 1.000000e-24 : f32
    %215 = vector.broadcast %cst_103 : f32 to vector<8x1xf32>
    %216 = arith.maximumf %214, %215 : vector<8x1xf32>
    %217 = math.rsqrt %216 : vector<8x1xf32>
    %218 = vector.broadcast %217 : vector<8x1xf32> to vector<8x2xf32>
    %219 = arith.mulf %211, %218 : vector<8x2xf32>
    %c0_104 = arith.constant 0 : index
    %c0_105 = arith.constant 0 : index
    %220 = vector.load %arg5[%c0_104, %c0_105] : memref<2x480xf32, #tpu.memory_space<vmem>>, vector<2x480xf32>
    %cst_106 = arith.constant dense<0.000000e+00> : vector<8x480xf32>
    %221 = tpu.matmul %219, %220, %cst_106 {dimension_numbers = #tpu.dot_dimension_numbers<[1], [0], [0], [1], [0, 0, 1, 1], [], []>} : vector<8x2xf32>, vector<2x480xf32>, vector<8x480xf32> -> vector<8x480xf32>
    %c0_107 = arith.constant 0 : index
    %c0_108 = arith.constant 0 : index
    %222 = vector.load %arg6[%c0_107, %c0_108] : memref<4x480xf32, #tpu.memory_space<vmem>>, vector<4x480xf32>
    %cst_109 = arith.constant dense<0.000000e+00> : vector<8x480xf32>
    %223 = tpu.matmul %210, %222, %cst_109 {dimension_numbers = #tpu.dot_dimension_numbers<[1], [0], [0], [1], [0, 0, 1, 1], [], []>} : vector<8x4xf32>, vector<4x480xf32>, vector<8x480xf32> -> vector<8x480xf32>
    %224 = arith.addf %221, %223 : vector<8x480xf32>
    %c0_110 = arith.constant 0 : index
    %c0_111 = arith.constant 0 : index
    %225 = vector.load %arg7[%c0_110, %c0_111] : memref<1x480xf32, #tpu.memory_space<vmem>>, vector<1x480xf32>
    %226 = vector.broadcast %225 : vector<1x480xf32> to vector<8x480xf32>
    %227 = arith.addf %224, %226 : vector<8x480xf32>
    %cst_112 = arith.constant 0.000000e+00 : f32
    %228 = vector.broadcast %cst_112 : f32 to vector<8x480xf32>
    %229 = arith.maximumf %227, %228 : vector<8x480xf32>
    %c0_113 = arith.constant 0 : index
    %c0_114 = arith.constant 0 : index
    %230 = vector.load %arg8[%c0_113, %c0_114] : memref<480x60xf32, #tpu.memory_space<vmem>>, vector<480x60xf32>
    %cst_115 = arith.constant dense<0.000000e+00> : vector<8x60xf32>
    %231 = tpu.matmul %229, %230, %cst_115 {dimension_numbers = #tpu.dot_dimension_numbers<[1], [0], [0], [1], [0, 0, 1, 1], [], []>} : vector<8x480xf32>, vector<480x60xf32>, vector<8x60xf32> -> vector<8x60xf32>
    %c0_116 = arith.constant 0 : index
    %c0_117 = arith.constant 0 : index
    %232 = vector.load %arg9[%c0_116, %c0_117] : memref<1x60xf32, #tpu.memory_space<vmem>>, vector<1x60xf32>
    %233 = vector.broadcast %232 : vector<1x60xf32> to vector<8x60xf32>
    %234 = arith.addf %231, %233 : vector<8x60xf32>
    %c0_118 = arith.constant 0 : index
    %c0_119 = arith.constant 0 : index
    %235 = vector.load %arg10[%c0_118, %c0_119] : memref<20x60xf32, #tpu.memory_space<vmem>>, vector<20x60xf32>
    %cst_120 = arith.constant dense<0.000000e+00> : vector<8x60xf32>
    %236 = tpu.matmul %168, %235, %cst_120 {dimension_numbers = #tpu.dot_dimension_numbers<[1], [0], [0], [1], [0, 0, 1, 1], [], []>} : vector<8x20xf32>, vector<20x60xf32>, vector<8x60xf32> -> vector<8x60xf32>
    %c0_121 = arith.constant 0 : index
    %c0_122 = arith.constant 0 : index
    %237 = vector.load %arg11[%c0_121, %c0_122] : memref<1x60xf32, #tpu.memory_space<vmem>>, vector<1x60xf32>
    %238 = vector.broadcast %237 : vector<1x60xf32> to vector<8x60xf32>
    %239 = arith.addf %236, %238 : vector<8x60xf32>
    %240 = vector.extract_strided_slice %234 {offsets = [0, 0], sizes = [8, 20], strides = [1, 1]} : vector<8x60xf32> to vector<8x20xf32>
    %241 = vector.extract_strided_slice %239 {offsets = [0, 0], sizes = [8, 20], strides = [1, 1]} : vector<8x60xf32> to vector<8x20xf32>
    %242 = arith.addf %240, %241 : vector<8x20xf32>
    %243 = arith.negf %242 : vector<8x20xf32>
    %244 = math.exp %243 : vector<8x20xf32>
    %cst_123 = arith.constant 1.000000e+00 : f32
    %245 = vector.broadcast %cst_123 : f32 to vector<8x20xf32>
    %246 = arith.addf %245, %244 : vector<8x20xf32>
    %247 = arith.divf %245, %246 : vector<8x20xf32>
    %248 = vector.extract_strided_slice %234 {offsets = [0, 20], sizes = [8, 20], strides = [1, 1]} : vector<8x60xf32> to vector<8x20xf32>
    %249 = vector.extract_strided_slice %239 {offsets = [0, 20], sizes = [8, 20], strides = [1, 1]} : vector<8x60xf32> to vector<8x20xf32>
    %250 = arith.addf %248, %249 : vector<8x20xf32>
    %251 = arith.negf %250 : vector<8x20xf32>
    %252 = math.exp %251 : vector<8x20xf32>
    %cst_124 = arith.constant 1.000000e+00 : f32
    %253 = vector.broadcast %cst_124 : f32 to vector<8x20xf32>
    %254 = arith.addf %253, %252 : vector<8x20xf32>
    %255 = arith.divf %253, %254 : vector<8x20xf32>
    %256 = vector.extract_strided_slice %234 {offsets = [0, 40], sizes = [8, 20], strides = [1, 1]} : vector<8x60xf32> to vector<8x20xf32>
    %257 = vector.extract_strided_slice %239 {offsets = [0, 40], sizes = [8, 20], strides = [1, 1]} : vector<8x60xf32> to vector<8x20xf32>
    %258 = arith.mulf %247, %257 : vector<8x20xf32>
    %259 = arith.addf %256, %258 : vector<8x20xf32>
    %260 = math.tanh %259 : vector<8x20xf32>
    %cst_125 = arith.constant 1.000000e+00 : f32
    %261 = vector.broadcast %cst_125 : f32 to vector<8x20xf32>
    %262 = arith.subf %261, %255 : vector<8x20xf32>
    %263 = arith.mulf %262, %260 : vector<8x20xf32>
    %264 = arith.mulf %255, %168 : vector<8x20xf32>
    %265 = arith.addf %263, %264 : vector<8x20xf32>
    %c0_126 = arith.constant 0 : index
    %c0_127 = arith.constant 0 : index
    %266 = vector.load %arg12[%c0_126, %c0_127] : memref<20x32xf32, #tpu.memory_space<vmem>>, vector<20x32xf32>
    %cst_128 = arith.constant dense<0.000000e+00> : vector<8x32xf32>
    %267 = tpu.matmul %265, %266, %cst_128 {dimension_numbers = #tpu.dot_dimension_numbers<[1], [0], [0], [1], [0, 0, 1, 1], [], []>} : vector<8x20xf32>, vector<20x32xf32>, vector<8x32xf32> -> vector<8x32xf32>
    %c0_129 = arith.constant 0 : index
    %c0_130 = arith.constant 0 : index
    %268 = vector.load %arg13[%c0_129, %c0_130] : memref<1x32xf32, #tpu.memory_space<vmem>>, vector<1x32xf32>
    %269 = vector.broadcast %268 : vector<1x32xf32> to vector<8x32xf32>
    %270 = arith.addf %267, %269 : vector<8x32xf32>
    %cst_131 = arith.constant 0.000000e+00 : f32
    %271 = vector.broadcast %cst_131 : f32 to vector<8x32xf32>
    %272 = arith.maximumf %270, %271 : vector<8x32xf32>
    %c0_132 = arith.constant 0 : index
    %c0_133 = arith.constant 0 : index
    %273 = vector.load %arg14[%c0_132, %c0_133] : memref<32x8xf32, #tpu.memory_space<vmem>>, vector<32x8xf32>
    %cst_134 = arith.constant dense<0.000000e+00> : vector<8x8xf32>
    %274 = tpu.matmul %272, %273, %cst_134 {dimension_numbers = #tpu.dot_dimension_numbers<[1], [0], [0], [1], [0, 0, 1, 1], [], []>} : vector<8x32xf32>, vector<32x8xf32>, vector<8x8xf32> -> vector<8x8xf32>
    %c0_135 = arith.constant 0 : index
    %c0_136 = arith.constant 0 : index
    %275 = vector.load %arg15[%c0_135, %c0_136] : memref<1x8xf32, #tpu.memory_space<vmem>>, vector<1x8xf32>
    %276 = vector.broadcast %275 : vector<1x8xf32> to vector<8x8xf32>
    %277 = arith.addf %274, %276 : vector<8x8xf32>
    %cst_137 = arith.constant 9.99999974E-5 : f32
    %278 = vector.broadcast %cst_137 : f32 to vector<8x8xf32>
    %279 = arith.mulf %277, %278 : vector<8x8xf32>
    %280 = vector.extract_strided_slice %279 {offsets = [0, 0], sizes = [8, 4], strides = [1, 1]} : vector<8x8xf32> to vector<8x4xf32>
    %281 = vector.extract_strided_slice %211 {offsets = [0, 0], sizes = [8, 1], strides = [1, 1]} : vector<8x2xf32> to vector<8x1xf32>
    %282 = vector.broadcast %281 : vector<8x1xf32> to vector<8x4xf32>
    %283 = arith.mulf %280, %282 : vector<8x4xf32>
    %284 = vector.extract_strided_slice %279 {offsets = [0, 4], sizes = [8, 4], strides = [1, 1]} : vector<8x8xf32> to vector<8x4xf32>
    %285 = vector.extract_strided_slice %211 {offsets = [0, 1], sizes = [8, 1], strides = [1, 1]} : vector<8x2xf32> to vector<8x1xf32>
    %286 = vector.broadcast %285 : vector<8x1xf32> to vector<8x4xf32>
    %287 = arith.mulf %284, %286 : vector<8x4xf32>
    %288 = arith.addf %283, %287 : vector<8x4xf32>
    %289 = arith.addf %200, %288 : vector<8x4xf32>
    %c2_138 = arith.constant 2 : index
    %c0_139 = arith.constant 0 : index
    %c0_140 = arith.constant 0 : index
    %290 = vector.load %arg16[%c2_138, %c0_139, %c0_140] : memref<8x8x4xf32, #tpu.memory_space<vmem>>, vector<1x8x4xf32>
    %291 = vector.shape_cast %290 : vector<1x8x4xf32> to vector<8x4xf32>
    %292 = vector.shape_cast %289 : vector<8x4xf32> to vector<1x8x4xf32>
    tpu.vector_store %arg16[%c2_138, %c0_139, %c0_140], %292 {strides = array<i32>} : memref<8x8x4xf32, #tpu.memory_space<vmem>>, vector<1x8x4xf32>,
    %c3 = arith.constant 3 : index
    %c0_141 = arith.constant 0 : index
    %c0_142 = arith.constant 0 : index
    %293 = vector.load %arg1[%c3, %c0_141, %c0_142] : memref<8x8x2xf32, #tpu.memory_space<vmem>>, vector<1x8x2xf32>
    %294 = vector.shape_cast %293 : vector<1x8x2xf32> to vector<8x2xf32>
    %c0_143 = arith.constant 0 : index
    %c0_144 = arith.constant 0 : index
    %295 = vector.load %arg4[%c0_143, %c0_144] : memref<4x6xf32, #tpu.memory_space<vmem>>, vector<4x6xf32>
    %cst_145 = arith.constant dense<0.000000e+00> : vector<8x6xf32>
    %296 = tpu.matmul %289, %295, %cst_145 {dimension_numbers = #tpu.dot_dimension_numbers<[1], [0], [0], [1], [0, 0, 1, 1], [], []>} : vector<8x4xf32>, vector<4x6xf32>, vector<8x6xf32> -> vector<8x6xf32>
    %297 = vector.extract_strided_slice %296 {offsets = [0, 0], sizes = [8, 4], strides = [1, 1]} : vector<8x6xf32> to vector<8x4xf32>
    %298 = vector.extract_strided_slice %296 {offsets = [0, 4], sizes = [8, 2], strides = [1, 1]} : vector<8x6xf32> to vector<8x2xf32>
    %299 = arith.subf %289, %297 : vector<8x4xf32>
    %300 = arith.mulf %299, %299 : vector<8x4xf32>
    %cst_146 = arith.constant dense<0.000000e+00> : vector<8xf32>
    %301 = vector.multi_reduction <add>, %300, %cst_146 [1] : vector<8x4xf32> to vector<8xf32>
    %302 = vector.shape_cast %301 : vector<8xf32> to vector<8x1xf32>
    %cst_147 = arith.constant 1.000000e-24 : f32
    %303 = vector.broadcast %cst_147 : f32 to vector<8x1xf32>
    %304 = arith.maximumf %302, %303 : vector<8x1xf32>
    %305 = math.rsqrt %304 : vector<8x1xf32>
    %306 = vector.broadcast %305 : vector<8x1xf32> to vector<8x4xf32>
    %307 = arith.mulf %299, %306 : vector<8x4xf32>
    %308 = arith.subf %294, %298 : vector<8x2xf32>
    %309 = arith.mulf %308, %308 : vector<8x2xf32>
    %cst_148 = arith.constant dense<0.000000e+00> : vector<8xf32>
    %310 = vector.multi_reduction <add>, %309, %cst_148 [1] : vector<8x2xf32> to vector<8xf32>
    %311 = vector.shape_cast %310 : vector<8xf32> to vector<8x1xf32>
    %cst_149 = arith.constant 1.000000e-24 : f32
    %312 = vector.broadcast %cst_149 : f32 to vector<8x1xf32>
    %313 = arith.maximumf %311, %312 : vector<8x1xf32>
    %314 = math.rsqrt %313 : vector<8x1xf32>
    %315 = vector.broadcast %314 : vector<8x1xf32> to vector<8x2xf32>
    %316 = arith.mulf %308, %315 : vector<8x2xf32>
    %c0_150 = arith.constant 0 : index
    %c0_151 = arith.constant 0 : index
    %317 = vector.load %arg5[%c0_150, %c0_151] : memref<2x480xf32, #tpu.memory_space<vmem>>, vector<2x480xf32>
    %cst_152 = arith.constant dense<0.000000e+00> : vector<8x480xf32>
    %318 = tpu.matmul %316, %317, %cst_152 {dimension_numbers = #tpu.dot_dimension_numbers<[1], [0], [0], [1], [0, 0, 1, 1], [], []>} : vector<8x2xf32>, vector<2x480xf32>, vector<8x480xf32> -> vector<8x480xf32>
    %c0_153 = arith.constant 0 : index
    %c0_154 = arith.constant 0 : index
    %319 = vector.load %arg6[%c0_153, %c0_154] : memref<4x480xf32, #tpu.memory_space<vmem>>, vector<4x480xf32>
    %cst_155 = arith.constant dense<0.000000e+00> : vector<8x480xf32>
    %320 = tpu.matmul %307, %319, %cst_155 {dimension_numbers = #tpu.dot_dimension_numbers<[1], [0], [0], [1], [0, 0, 1, 1], [], []>} : vector<8x4xf32>, vector<4x480xf32>, vector<8x480xf32> -> vector<8x480xf32>
    %321 = arith.addf %318, %320 : vector<8x480xf32>
    %c0_156 = arith.constant 0 : index
    %c0_157 = arith.constant 0 : index
    %322 = vector.load %arg7[%c0_156, %c0_157] : memref<1x480xf32, #tpu.memory_space<vmem>>, vector<1x480xf32>
    %323 = vector.broadcast %322 : vector<1x480xf32> to vector<8x480xf32>
    %324 = arith.addf %321, %323 : vector<8x480xf32>
    %cst_158 = arith.constant 0.000000e+00 : f32
    %325 = vector.broadcast %cst_158 : f32 to vector<8x480xf32>
    %326 = arith.maximumf %324, %325 : vector<8x480xf32>
    %c0_159 = arith.constant 0 : index
    %c0_160 = arith.constant 0 : index
    %327 = vector.load %arg8[%c0_159, %c0_160] : memref<480x60xf32, #tpu.memory_space<vmem>>, vector<480x60xf32>
    %cst_161 = arith.constant dense<0.000000e+00> : vector<8x60xf32>
    %328 = tpu.matmul %326, %327, %cst_161 {dimension_numbers = #tpu.dot_dimension_numbers<[1], [0], [0], [1], [0, 0, 1, 1], [], []>} : vector<8x480xf32>, vector<480x60xf32>, vector<8x60xf32> -> vector<8x60xf32>
    %c0_162 = arith.constant 0 : index
    %c0_163 = arith.constant 0 : index
    %329 = vector.load %arg9[%c0_162, %c0_163] : memref<1x60xf32, #tpu.memory_space<vmem>>, vector<1x60xf32>
    %330 = vector.broadcast %329 : vector<1x60xf32> to vector<8x60xf32>
    %331 = arith.addf %328, %330 : vector<8x60xf32>
    %c0_164 = arith.constant 0 : index
    %c0_165 = arith.constant 0 : index
    %332 = vector.load %arg10[%c0_164, %c0_165] : memref<20x60xf32, #tpu.memory_space<vmem>>, vector<20x60xf32>
    %cst_166 = arith.constant dense<0.000000e+00> : vector<8x60xf32>
    %333 = tpu.matmul %265, %332, %cst_166 {dimension_numbers = #tpu.dot_dimension_numbers<[1], [0], [0], [1], [0, 0, 1, 1], [], []>} : vector<8x20xf32>, vector<20x60xf32>, vector<8x60xf32> -> vector<8x60xf32>
    %c0_167 = arith.constant 0 : index
    %c0_168 = arith.constant 0 : index
    %334 = vector.load %arg11[%c0_167, %c0_168] : memref<1x60xf32, #tpu.memory_space<vmem>>, vector<1x60xf32>
    %335 = vector.broadcast %334 : vector<1x60xf32> to vector<8x60xf32>
    %336 = arith.addf %333, %335 : vector<8x60xf32>
    %337 = vector.extract_strided_slice %331 {offsets = [0, 0], sizes = [8, 20], strides = [1, 1]} : vector<8x60xf32> to vector<8x20xf32>
    %338 = vector.extract_strided_slice %336 {offsets = [0, 0], sizes = [8, 20], strides = [1, 1]} : vector<8x60xf32> to vector<8x20xf32>
    %339 = arith.addf %337, %338 : vector<8x20xf32>
    %340 = arith.negf %339 : vector<8x20xf32>
    %341 = math.exp %340 : vector<8x20xf32>
    %cst_169 = arith.constant 1.000000e+00 : f32
    %342 = vector.broadcast %cst_169 : f32 to vector<8x20xf32>
    %343 = arith.addf %342, %341 : vector<8x20xf32>
    %344 = arith.divf %342, %343 : vector<8x20xf32>
    %345 = vector.extract_strided_slice %331 {offsets = [0, 20], sizes = [8, 20], strides = [1, 1]} : vector<8x60xf32> to vector<8x20xf32>
    %346 = vector.extract_strided_slice %336 {offsets = [0, 20], sizes = [8, 20], strides = [1, 1]} : vector<8x60xf32> to vector<8x20xf32>
    %347 = arith.addf %345, %346 : vector<8x20xf32>
    %348 = arith.negf %347 : vector<8x20xf32>
    %349 = math.exp %348 : vector<8x20xf32>
    %cst_170 = arith.constant 1.000000e+00 : f32
    %350 = vector.broadcast %cst_170 : f32 to vector<8x20xf32>
    %351 = arith.addf %350, %349 : vector<8x20xf32>
    %352 = arith.divf %350, %351 : vector<8x20xf32>
    %353 = vector.extract_strided_slice %331 {offsets = [0, 40], sizes = [8, 20], strides = [1, 1]} : vector<8x60xf32> to vector<8x20xf32>
    %354 = vector.extract_strided_slice %336 {offsets = [0, 40], sizes = [8, 20], strides = [1, 1]} : vector<8x60xf32> to vector<8x20xf32>
    %355 = arith.mulf %344, %354 : vector<8x20xf32>
    %356 = arith.addf %353, %355 : vector<8x20xf32>
    %357 = math.tanh %356 : vector<8x20xf32>
    %cst_171 = arith.constant 1.000000e+00 : f32
    %358 = vector.broadcast %cst_171 : f32 to vector<8x20xf32>
    %359 = arith.subf %358, %352 : vector<8x20xf32>
    %360 = arith.mulf %359, %357 : vector<8x20xf32>
    %361 = arith.mulf %352, %265 : vector<8x20xf32>
    %362 = arith.addf %360, %361 : vector<8x20xf32>
    %c0_172 = arith.constant 0 : index
    %c0_173 = arith.constant 0 : index
    %363 = vector.load %arg12[%c0_172, %c0_173] : memref<20x32xf32, #tpu.memory_space<vmem>>, vector<20x32xf32>
    %cst_174 = arith.constant dense<0.000000e+00> : vector<8x32xf32>
    %364 = tpu.matmul %362, %363, %cst_174 {dimension_numbers = #tpu.dot_dimension_numbers<[1], [0], [0], [1], [0, 0, 1, 1], [], []>} : vector<8x20xf32>, vector<20x32xf32>, vector<8x32xf32> -> vector<8x32xf32>
    %c0_175 = arith.constant 0 : index
    %c0_176 = arith.constant 0 : index
    %365 = vector.load %arg13[%c0_175, %c0_176] : memref<1x32xf32, #tpu.memory_space<vmem>>, vector<1x32xf32>
    %366 = vector.broadcast %365 : vector<1x32xf32> to vector<8x32xf32>
    %367 = arith.addf %364, %366 : vector<8x32xf32>
    %cst_177 = arith.constant 0.000000e+00 : f32
    %368 = vector.broadcast %cst_177 : f32 to vector<8x32xf32>
    %369 = arith.maximumf %367, %368 : vector<8x32xf32>
    %c0_178 = arith.constant 0 : index
    %c0_179 = arith.constant 0 : index
    %370 = vector.load %arg14[%c0_178, %c0_179] : memref<32x8xf32, #tpu.memory_space<vmem>>, vector<32x8xf32>
    %cst_180 = arith.constant dense<0.000000e+00> : vector<8x8xf32>
    %371 = tpu.matmul %369, %370, %cst_180 {dimension_numbers = #tpu.dot_dimension_numbers<[1], [0], [0], [1], [0, 0, 1, 1], [], []>} : vector<8x32xf32>, vector<32x8xf32>, vector<8x8xf32> -> vector<8x8xf32>
    %c0_181 = arith.constant 0 : index
    %c0_182 = arith.constant 0 : index
    %372 = vector.load %arg15[%c0_181, %c0_182] : memref<1x8xf32, #tpu.memory_space<vmem>>, vector<1x8xf32>
    %373 = vector.broadcast %372 : vector<1x8xf32> to vector<8x8xf32>
    %374 = arith.addf %371, %373 : vector<8x8xf32>
    %cst_183 = arith.constant 9.99999974E-5 : f32
    %375 = vector.broadcast %cst_183 : f32 to vector<8x8xf32>
    %376 = arith.mulf %374, %375 : vector<8x8xf32>
    %377 = vector.extract_strided_slice %376 {offsets = [0, 0], sizes = [8, 4], strides = [1, 1]} : vector<8x8xf32> to vector<8x4xf32>
    %378 = vector.extract_strided_slice %308 {offsets = [0, 0], sizes = [8, 1], strides = [1, 1]} : vector<8x2xf32> to vector<8x1xf32>
    %379 = vector.broadcast %378 : vector<8x1xf32> to vector<8x4xf32>
    %380 = arith.mulf %377, %379 : vector<8x4xf32>
    %381 = vector.extract_strided_slice %376 {offsets = [0, 4], sizes = [8, 4], strides = [1, 1]} : vector<8x8xf32> to vector<8x4xf32>
    %382 = vector.extract_strided_slice %308 {offsets = [0, 1], sizes = [8, 1], strides = [1, 1]} : vector<8x2xf32> to vector<8x1xf32>
    %383 = vector.broadcast %382 : vector<8x1xf32> to vector<8x4xf32>
    %384 = arith.mulf %381, %383 : vector<8x4xf32>
    %385 = arith.addf %380, %384 : vector<8x4xf32>
    %386 = arith.addf %297, %385 : vector<8x4xf32>
    %c3_184 = arith.constant 3 : index
    %c0_185 = arith.constant 0 : index
    %c0_186 = arith.constant 0 : index
    %387 = vector.load %arg16[%c3_184, %c0_185, %c0_186] : memref<8x8x4xf32, #tpu.memory_space<vmem>>, vector<1x8x4xf32>
    %388 = vector.shape_cast %387 : vector<1x8x4xf32> to vector<8x4xf32>
    %389 = vector.shape_cast %386 : vector<8x4xf32> to vector<1x8x4xf32>
    tpu.vector_store %arg16[%c3_184, %c0_185, %c0_186], %389 {strides = array<i32>} : memref<8x8x4xf32, #tpu.memory_space<vmem>>, vector<1x8x4xf32>,
    %c4 = arith.constant 4 : index
    %c0_187 = arith.constant 0 : index
    %c0_188 = arith.constant 0 : index
    %390 = vector.load %arg1[%c4, %c0_187, %c0_188] : memref<8x8x2xf32, #tpu.memory_space<vmem>>, vector<1x8x2xf32>
    %391 = vector.shape_cast %390 : vector<1x8x2xf32> to vector<8x2xf32>
    %c0_189 = arith.constant 0 : index
    %c0_190 = arith.constant 0 : index
    %392 = vector.load %arg4[%c0_189, %c0_190] : memref<4x6xf32, #tpu.memory_space<vmem>>, vector<4x6xf32>
    %cst_191 = arith.constant dense<0.000000e+00> : vector<8x6xf32>
    %393 = tpu.matmul %386, %392, %cst_191 {dimension_numbers = #tpu.dot_dimension_numbers<[1], [0], [0], [1], [0, 0, 1, 1], [], []>} : vector<8x4xf32>, vector<4x6xf32>, vector<8x6xf32> -> vector<8x6xf32>
    %394 = vector.extract_strided_slice %393 {offsets = [0, 0], sizes = [8, 4], strides = [1, 1]} : vector<8x6xf32> to vector<8x4xf32>
    %395 = vector.extract_strided_slice %393 {offsets = [0, 4], sizes = [8, 2], strides = [1, 1]} : vector<8x6xf32> to vector<8x2xf32>
    %396 = arith.subf %386, %394 : vector<8x4xf32>
    %397 = arith.mulf %396, %396 : vector<8x4xf32>
    %cst_192 = arith.constant dense<0.000000e+00> : vector<8xf32>
    %398 = vector.multi_reduction <add>, %397, %cst_192 [1] : vector<8x4xf32> to vector<8xf32>
    %399 = vector.shape_cast %398 : vector<8xf32> to vector<8x1xf32>
    %cst_193 = arith.constant 1.000000e-24 : f32
    %400 = vector.broadcast %cst_193 : f32 to vector<8x1xf32>
    %401 = arith.maximumf %399, %400 : vector<8x1xf32>
    %402 = math.rsqrt %401 : vector<8x1xf32>
    %403 = vector.broadcast %402 : vector<8x1xf32> to vector<8x4xf32>
    %404 = arith.mulf %396, %403 : vector<8x4xf32>
    %405 = arith.subf %391, %395 : vector<8x2xf32>
    %406 = arith.mulf %405, %405 : vector<8x2xf32>
    %cst_194 = arith.constant dense<0.000000e+00> : vector<8xf32>
    %407 = vector.multi_reduction <add>, %406, %cst_194 [1] : vector<8x2xf32> to vector<8xf32>
    %408 = vector.shape_cast %407 : vector<8xf32> to vector<8x1xf32>
    %cst_195 = arith.constant 1.000000e-24 : f32
    %409 = vector.broadcast %cst_195 : f32 to vector<8x1xf32>
    %410 = arith.maximumf %408, %409 : vector<8x1xf32>
    %411 = math.rsqrt %410 : vector<8x1xf32>
    %412 = vector.broadcast %411 : vector<8x1xf32> to vector<8x2xf32>
    %413 = arith.mulf %405, %412 : vector<8x2xf32>
    %c0_196 = arith.constant 0 : index
    %c0_197 = arith.constant 0 : index
    %414 = vector.load %arg5[%c0_196, %c0_197] : memref<2x480xf32, #tpu.memory_space<vmem>>, vector<2x480xf32>
    %cst_198 = arith.constant dense<0.000000e+00> : vector<8x480xf32>
    %415 = tpu.matmul %413, %414, %cst_198 {dimension_numbers = #tpu.dot_dimension_numbers<[1], [0], [0], [1], [0, 0, 1, 1], [], []>} : vector<8x2xf32>, vector<2x480xf32>, vector<8x480xf32> -> vector<8x480xf32>
    %c0_199 = arith.constant 0 : index
    %c0_200 = arith.constant 0 : index
    %416 = vector.load %arg6[%c0_199, %c0_200] : memref<4x480xf32, #tpu.memory_space<vmem>>, vector<4x480xf32>
    %cst_201 = arith.constant dense<0.000000e+00> : vector<8x480xf32>
    %417 = tpu.matmul %404, %416, %cst_201 {dimension_numbers = #tpu.dot_dimension_numbers<[1], [0], [0], [1], [0, 0, 1, 1], [], []>} : vector<8x4xf32>, vector<4x480xf32>, vector<8x480xf32> -> vector<8x480xf32>
    %418 = arith.addf %415, %417 : vector<8x480xf32>
    %c0_202 = arith.constant 0 : index
    %c0_203 = arith.constant 0 : index
    %419 = vector.load %arg7[%c0_202, %c0_203] : memref<1x480xf32, #tpu.memory_space<vmem>>, vector<1x480xf32>
    %420 = vector.broadcast %419 : vector<1x480xf32> to vector<8x480xf32>
    %421 = arith.addf %418, %420 : vector<8x480xf32>
    %cst_204 = arith.constant 0.000000e+00 : f32
    %422 = vector.broadcast %cst_204 : f32 to vector<8x480xf32>
    %423 = arith.maximumf %421, %422 : vector<8x480xf32>
    %c0_205 = arith.constant 0 : index
    %c0_206 = arith.constant 0 : index
    %424 = vector.load %arg8[%c0_205, %c0_206] : memref<480x60xf32, #tpu.memory_space<vmem>>, vector<480x60xf32>
    %cst_207 = arith.constant dense<0.000000e+00> : vector<8x60xf32>
    %425 = tpu.matmul %423, %424, %cst_207 {dimension_numbers = #tpu.dot_dimension_numbers<[1], [0], [0], [1], [0, 0, 1, 1], [], []>} : vector<8x480xf32>, vector<480x60xf32>, vector<8x60xf32> -> vector<8x60xf32>
    %c0_208 = arith.constant 0 : index
    %c0_209 = arith.constant 0 : index
    %426 = vector.load %arg9[%c0_208, %c0_209] : memref<1x60xf32, #tpu.memory_space<vmem>>, vector<1x60xf32>
    %427 = vector.broadcast %426 : vector<1x60xf32> to vector<8x60xf32>
    %428 = arith.addf %425, %427 : vector<8x60xf32>
    %c0_210 = arith.constant 0 : index
    %c0_211 = arith.constant 0 : index
    %429 = vector.load %arg10[%c0_210, %c0_211] : memref<20x60xf32, #tpu.memory_space<vmem>>, vector<20x60xf32>
    %cst_212 = arith.constant dense<0.000000e+00> : vector<8x60xf32>
    %430 = tpu.matmul %362, %429, %cst_212 {dimension_numbers = #tpu.dot_dimension_numbers<[1], [0], [0], [1], [0, 0, 1, 1], [], []>} : vector<8x20xf32>, vector<20x60xf32>, vector<8x60xf32> -> vector<8x60xf32>
    %c0_213 = arith.constant 0 : index
    %c0_214 = arith.constant 0 : index
    %431 = vector.load %arg11[%c0_213, %c0_214] : memref<1x60xf32, #tpu.memory_space<vmem>>, vector<1x60xf32>
    %432 = vector.broadcast %431 : vector<1x60xf32> to vector<8x60xf32>
    %433 = arith.addf %430, %432 : vector<8x60xf32>
    %434 = vector.extract_strided_slice %428 {offsets = [0, 0], sizes = [8, 20], strides = [1, 1]} : vector<8x60xf32> to vector<8x20xf32>
    %435 = vector.extract_strided_slice %433 {offsets = [0, 0], sizes = [8, 20], strides = [1, 1]} : vector<8x60xf32> to vector<8x20xf32>
    %436 = arith.addf %434, %435 : vector<8x20xf32>
    %437 = arith.negf %436 : vector<8x20xf32>
    %438 = math.exp %437 : vector<8x20xf32>
    %cst_215 = arith.constant 1.000000e+00 : f32
    %439 = vector.broadcast %cst_215 : f32 to vector<8x20xf32>
    %440 = arith.addf %439, %438 : vector<8x20xf32>
    %441 = arith.divf %439, %440 : vector<8x20xf32>
    %442 = vector.extract_strided_slice %428 {offsets = [0, 20], sizes = [8, 20], strides = [1, 1]} : vector<8x60xf32> to vector<8x20xf32>
    %443 = vector.extract_strided_slice %433 {offsets = [0, 20], sizes = [8, 20], strides = [1, 1]} : vector<8x60xf32> to vector<8x20xf32>
    %444 = arith.addf %442, %443 : vector<8x20xf32>
    %445 = arith.negf %444 : vector<8x20xf32>
    %446 = math.exp %445 : vector<8x20xf32>
    %cst_216 = arith.constant 1.000000e+00 : f32
    %447 = vector.broadcast %cst_216 : f32 to vector<8x20xf32>
    %448 = arith.addf %447, %446 : vector<8x20xf32>
    %449 = arith.divf %447, %448 : vector<8x20xf32>
    %450 = vector.extract_strided_slice %428 {offsets = [0, 40], sizes = [8, 20], strides = [1, 1]} : vector<8x60xf32> to vector<8x20xf32>
    %451 = vector.extract_strided_slice %433 {offsets = [0, 40], sizes = [8, 20], strides = [1, 1]} : vector<8x60xf32> to vector<8x20xf32>
    %452 = arith.mulf %441, %451 : vector<8x20xf32>
    %453 = arith.addf %450, %452 : vector<8x20xf32>
    %454 = math.tanh %453 : vector<8x20xf32>
    %cst_217 = arith.constant 1.000000e+00 : f32
    %455 = vector.broadcast %cst_217 : f32 to vector<8x20xf32>
    %456 = arith.subf %455, %449 : vector<8x20xf32>
    %457 = arith.mulf %456, %454 : vector<8x20xf32>
    %458 = arith.mulf %449, %362 : vector<8x20xf32>
    %459 = arith.addf %457, %458 : vector<8x20xf32>
    %c0_218 = arith.constant 0 : index
    %c0_219 = arith.constant 0 : index
    %460 = vector.load %arg12[%c0_218, %c0_219] : memref<20x32xf32, #tpu.memory_space<vmem>>, vector<20x32xf32>
    %cst_220 = arith.constant dense<0.000000e+00> : vector<8x32xf32>
    %461 = tpu.matmul %459, %460, %cst_220 {dimension_numbers = #tpu.dot_dimension_numbers<[1], [0], [0], [1], [0, 0, 1, 1], [], []>} : vector<8x20xf32>, vector<20x32xf32>, vector<8x32xf32> -> vector<8x32xf32>
    %c0_221 = arith.constant 0 : index
    %c0_222 = arith.constant 0 : index
    %462 = vector.load %arg13[%c0_221, %c0_222] : memref<1x32xf32, #tpu.memory_space<vmem>>, vector<1x32xf32>
    %463 = vector.broadcast %462 : vector<1x32xf32> to vector<8x32xf32>
    %464 = arith.addf %461, %463 : vector<8x32xf32>
    %cst_223 = arith.constant 0.000000e+00 : f32
    %465 = vector.broadcast %cst_223 : f32 to vector<8x32xf32>
    %466 = arith.maximumf %464, %465 : vector<8x32xf32>
    %c0_224 = arith.constant 0 : index
    %c0_225 = arith.constant 0 : index
    %467 = vector.load %arg14[%c0_224, %c0_225] : memref<32x8xf32, #tpu.memory_space<vmem>>, vector<32x8xf32>
    %cst_226 = arith.constant dense<0.000000e+00> : vector<8x8xf32>
    %468 = tpu.matmul %466, %467, %cst_226 {dimension_numbers = #tpu.dot_dimension_numbers<[1], [0], [0], [1], [0, 0, 1, 1], [], []>} : vector<8x32xf32>, vector<32x8xf32>, vector<8x8xf32> -> vector<8x8xf32>
    %c0_227 = arith.constant 0 : index
    %c0_228 = arith.constant 0 : index
    %469 = vector.load %arg15[%c0_227, %c0_228] : memref<1x8xf32, #tpu.memory_space<vmem>>, vector<1x8xf32>
    %470 = vector.broadcast %469 : vector<1x8xf32> to vector<8x8xf32>
    %471 = arith.addf %468, %470 : vector<8x8xf32>
    %cst_229 = arith.constant 9.99999974E-5 : f32
    %472 = vector.broadcast %cst_229 : f32 to vector<8x8xf32>
    %473 = arith.mulf %471, %472 : vector<8x8xf32>
    %474 = vector.extract_strided_slice %473 {offsets = [0, 0], sizes = [8, 4], strides = [1, 1]} : vector<8x8xf32> to vector<8x4xf32>
    %475 = vector.extract_strided_slice %405 {offsets = [0, 0], sizes = [8, 1], strides = [1, 1]} : vector<8x2xf32> to vector<8x1xf32>
    %476 = vector.broadcast %475 : vector<8x1xf32> to vector<8x4xf32>
    %477 = arith.mulf %474, %476 : vector<8x4xf32>
    %478 = vector.extract_strided_slice %473 {offsets = [0, 4], sizes = [8, 4], strides = [1, 1]} : vector<8x8xf32> to vector<8x4xf32>
    %479 = vector.extract_strided_slice %405 {offsets = [0, 1], sizes = [8, 1], strides = [1, 1]} : vector<8x2xf32> to vector<8x1xf32>
    %480 = vector.broadcast %479 : vector<8x1xf32> to vector<8x4xf32>
    %481 = arith.mulf %478, %480 : vector<8x4xf32>
    %482 = arith.addf %477, %481 : vector<8x4xf32>
    %483 = arith.addf %394, %482 : vector<8x4xf32>
    %c4_230 = arith.constant 4 : index
    %c0_231 = arith.constant 0 : index
    %c0_232 = arith.constant 0 : index
    %484 = vector.load %arg16[%c4_230, %c0_231, %c0_232] : memref<8x8x4xf32, #tpu.memory_space<vmem>>, vector<1x8x4xf32>
    %485 = vector.shape_cast %484 : vector<1x8x4xf32> to vector<8x4xf32>
    %486 = vector.shape_cast %483 : vector<8x4xf32> to vector<1x8x4xf32>
    tpu.vector_store %arg16[%c4_230, %c0_231, %c0_232], %486 {strides = array<i32>} : memref<8x8x4xf32, #tpu.memory_space<vmem>>, vector<1x8x4xf32>,
    %c5 = arith.constant 5 : index
    %c0_233 = arith.constant 0 : index
    %c0_234 = arith.constant 0 : index
    %487 = vector.load %arg1[%c5, %c0_233, %c0_234] : memref<8x8x2xf32, #tpu.memory_space<vmem>>, vector<1x8x2xf32>
    %488 = vector.shape_cast %487 : vector<1x8x2xf32> to vector<8x2xf32>
    %c0_235 = arith.constant 0 : index
    %c0_236 = arith.constant 0 : index
    %489 = vector.load %arg4[%c0_235, %c0_236] : memref<4x6xf32, #tpu.memory_space<vmem>>, vector<4x6xf32>
    %cst_237 = arith.constant dense<0.000000e+00> : vector<8x6xf32>
    %490 = tpu.matmul %483, %489, %cst_237 {dimension_numbers = #tpu.dot_dimension_numbers<[1], [0], [0], [1], [0, 0, 1, 1], [], []>} : vector<8x4xf32>, vector<4x6xf32>, vector<8x6xf32> -> vector<8x6xf32>
    %491 = vector.extract_strided_slice %490 {offsets = [0, 0], sizes = [8, 4], strides = [1, 1]} : vector<8x6xf32> to vector<8x4xf32>
    %492 = vector.extract_strided_slice %490 {offsets = [0, 4], sizes = [8, 2], strides = [1, 1]} : vector<8x6xf32> to vector<8x2xf32>
    %493 = arith.subf %483, %491 : vector<8x4xf32>
    %494 = arith.mulf %493, %493 : vector<8x4xf32>
    %cst_238 = arith.constant dense<0.000000e+00> : vector<8xf32>
    %495 = vector.multi_reduction <add>, %494, %cst_238 [1] : vector<8x4xf32> to vector<8xf32>
    %496 = vector.shape_cast %495 : vector<8xf32> to vector<8x1xf32>
    %cst_239 = arith.constant 1.000000e-24 : f32
    %497 = vector.broadcast %cst_239 : f32 to vector<8x1xf32>
    %498 = arith.maximumf %496, %497 : vector<8x1xf32>
    %499 = math.rsqrt %498 : vector<8x1xf32>
    %500 = vector.broadcast %499 : vector<8x1xf32> to vector<8x4xf32>
    %501 = arith.mulf %493, %500 : vector<8x4xf32>
    %502 = arith.subf %488, %492 : vector<8x2xf32>
    %503 = arith.mulf %502, %502 : vector<8x2xf32>
    %cst_240 = arith.constant dense<0.000000e+00> : vector<8xf32>
    %504 = vector.multi_reduction <add>, %503, %cst_240 [1] : vector<8x2xf32> to vector<8xf32>
    %505 = vector.shape_cast %504 : vector<8xf32> to vector<8x1xf32>
    %cst_241 = arith.constant 1.000000e-24 : f32
    %506 = vector.broadcast %cst_241 : f32 to vector<8x1xf32>
    %507 = arith.maximumf %505, %506 : vector<8x1xf32>
    %508 = math.rsqrt %507 : vector<8x1xf32>
    %509 = vector.broadcast %508 : vector<8x1xf32> to vector<8x2xf32>
    %510 = arith.mulf %502, %509 : vector<8x2xf32>
    %c0_242 = arith.constant 0 : index
    %c0_243 = arith.constant 0 : index
    %511 = vector.load %arg5[%c0_242, %c0_243] : memref<2x480xf32, #tpu.memory_space<vmem>>, vector<2x480xf32>
    %cst_244 = arith.constant dense<0.000000e+00> : vector<8x480xf32>
    %512 = tpu.matmul %510, %511, %cst_244 {dimension_numbers = #tpu.dot_dimension_numbers<[1], [0], [0], [1], [0, 0, 1, 1], [], []>} : vector<8x2xf32>, vector<2x480xf32>, vector<8x480xf32> -> vector<8x480xf32>
    %c0_245 = arith.constant 0 : index
    %c0_246 = arith.constant 0 : index
    %513 = vector.load %arg6[%c0_245, %c0_246] : memref<4x480xf32, #tpu.memory_space<vmem>>, vector<4x480xf32>
    %cst_247 = arith.constant dense<0.000000e+00> : vector<8x480xf32>
    %514 = tpu.matmul %501, %513, %cst_247 {dimension_numbers = #tpu.dot_dimension_numbers<[1], [0], [0], [1], [0, 0, 1, 1], [], []>} : vector<8x4xf32>, vector<4x480xf32>, vector<8x480xf32> -> vector<8x480xf32>
    %515 = arith.addf %512, %514 : vector<8x480xf32>
    %c0_248 = arith.constant 0 : index
    %c0_249 = arith.constant 0 : index
    %516 = vector.load %arg7[%c0_248, %c0_249] : memref<1x480xf32, #tpu.memory_space<vmem>>, vector<1x480xf32>
    %517 = vector.broadcast %516 : vector<1x480xf32> to vector<8x480xf32>
    %518 = arith.addf %515, %517 : vector<8x480xf32>
    %cst_250 = arith.constant 0.000000e+00 : f32
    %519 = vector.broadcast %cst_250 : f32 to vector<8x480xf32>
    %520 = arith.maximumf %518, %519 : vector<8x480xf32>
    %c0_251 = arith.constant 0 : index
    %c0_252 = arith.constant 0 : index
    %521 = vector.load %arg8[%c0_251, %c0_252] : memref<480x60xf32, #tpu.memory_space<vmem>>, vector<480x60xf32>
    %cst_253 = arith.constant dense<0.000000e+00> : vector<8x60xf32>
    %522 = tpu.matmul %520, %521, %cst_253 {dimension_numbers = #tpu.dot_dimension_numbers<[1], [0], [0], [1], [0, 0, 1, 1], [], []>} : vector<8x480xf32>, vector<480x60xf32>, vector<8x60xf32> -> vector<8x60xf32>
    %c0_254 = arith.constant 0 : index
    %c0_255 = arith.constant 0 : index
    %523 = vector.load %arg9[%c0_254, %c0_255] : memref<1x60xf32, #tpu.memory_space<vmem>>, vector<1x60xf32>
    %524 = vector.broadcast %523 : vector<1x60xf32> to vector<8x60xf32>
    %525 = arith.addf %522, %524 : vector<8x60xf32>
    %c0_256 = arith.constant 0 : index
    %c0_257 = arith.constant 0 : index
    %526 = vector.load %arg10[%c0_256, %c0_257] : memref<20x60xf32, #tpu.memory_space<vmem>>, vector<20x60xf32>
    %cst_258 = arith.constant dense<0.000000e+00> : vector<8x60xf32>
    %527 = tpu.matmul %459, %526, %cst_258 {dimension_numbers = #tpu.dot_dimension_numbers<[1], [0], [0], [1], [0, 0, 1, 1], [], []>} : vector<8x20xf32>, vector<20x60xf32>, vector<8x60xf32> -> vector<8x60xf32>
    %c0_259 = arith.constant 0 : index
    %c0_260 = arith.constant 0 : index
    %528 = vector.load %arg11[%c0_259, %c0_260] : memref<1x60xf32, #tpu.memory_space<vmem>>, vector<1x60xf32>
    %529 = vector.broadcast %528 : vector<1x60xf32> to vector<8x60xf32>
    %530 = arith.addf %527, %529 : vector<8x60xf32>
    %531 = vector.extract_strided_slice %525 {offsets = [0, 0], sizes = [8, 20], strides = [1, 1]} : vector<8x60xf32> to vector<8x20xf32>
    %532 = vector.extract_strided_slice %530 {offsets = [0, 0], sizes = [8, 20], strides = [1, 1]} : vector<8x60xf32> to vector<8x20xf32>
    %533 = arith.addf %531, %532 : vector<8x20xf32>
    %534 = arith.negf %533 : vector<8x20xf32>
    %535 = math.exp %534 : vector<8x20xf32>
    %cst_261 = arith.constant 1.000000e+00 : f32
    %536 = vector.broadcast %cst_261 : f32 to vector<8x20xf32>
    %537 = arith.addf %536, %535 : vector<8x20xf32>
    %538 = arith.divf %536, %537 : vector<8x20xf32>
    %539 = vector.extract_strided_slice %525 {offsets = [0, 20], sizes = [8, 20], strides = [1, 1]} : vector<8x60xf32> to vector<8x20xf32>
    %540 = vector.extract_strided_slice %530 {offsets = [0, 20], sizes = [8, 20], strides = [1, 1]} : vector<8x60xf32> to vector<8x20xf32>
    %541 = arith.addf %539, %540 : vector<8x20xf32>
    %542 = arith.negf %541 : vector<8x20xf32>
    %543 = math.exp %542 : vector<8x20xf32>
    %cst_262 = arith.constant 1.000000e+00 : f32
    %544 = vector.broadcast %cst_262 : f32 to vector<8x20xf32>
    %545 = arith.addf %544, %543 : vector<8x20xf32>
    %546 = arith.divf %544, %545 : vector<8x20xf32>
    %547 = vector.extract_strided_slice %525 {offsets = [0, 40], sizes = [8, 20], strides = [1, 1]} : vector<8x60xf32> to vector<8x20xf32>
    %548 = vector.extract_strided_slice %530 {offsets = [0, 40], sizes = [8, 20], strides = [1, 1]} : vector<8x60xf32> to vector<8x20xf32>
    %549 = arith.mulf %538, %548 : vector<8x20xf32>
    %550 = arith.addf %547, %549 : vector<8x20xf32>
    %551 = math.tanh %550 : vector<8x20xf32>
    %cst_263 = arith.constant 1.000000e+00 : f32
    %552 = vector.broadcast %cst_263 : f32 to vector<8x20xf32>
    %553 = arith.subf %552, %546 : vector<8x20xf32>
    %554 = arith.mulf %553, %551 : vector<8x20xf32>
    %555 = arith.mulf %546, %459 : vector<8x20xf32>
    %556 = arith.addf %554, %555 : vector<8x20xf32>
    %c0_264 = arith.constant 0 : index
    %c0_265 = arith.constant 0 : index
    %557 = vector.load %arg12[%c0_264, %c0_265] : memref<20x32xf32, #tpu.memory_space<vmem>>, vector<20x32xf32>
    %cst_266 = arith.constant dense<0.000000e+00> : vector<8x32xf32>
    %558 = tpu.matmul %556, %557, %cst_266 {dimension_numbers = #tpu.dot_dimension_numbers<[1], [0], [0], [1], [0, 0, 1, 1], [], []>} : vector<8x20xf32>, vector<20x32xf32>, vector<8x32xf32> -> vector<8x32xf32>
    %c0_267 = arith.constant 0 : index
    %c0_268 = arith.constant 0 : index
    %559 = vector.load %arg13[%c0_267, %c0_268] : memref<1x32xf32, #tpu.memory_space<vmem>>, vector<1x32xf32>
    %560 = vector.broadcast %559 : vector<1x32xf32> to vector<8x32xf32>
    %561 = arith.addf %558, %560 : vector<8x32xf32>
    %cst_269 = arith.constant 0.000000e+00 : f32
    %562 = vector.broadcast %cst_269 : f32 to vector<8x32xf32>
    %563 = arith.maximumf %561, %562 : vector<8x32xf32>
    %c0_270 = arith.constant 0 : index
    %c0_271 = arith.constant 0 : index
    %564 = vector.load %arg14[%c0_270, %c0_271] : memref<32x8xf32, #tpu.memory_space<vmem>>, vector<32x8xf32>
    %cst_272 = arith.constant dense<0.000000e+00> : vector<8x8xf32>
    %565 = tpu.matmul %563, %564, %cst_272 {dimension_numbers = #tpu.dot_dimension_numbers<[1], [0], [0], [1], [0, 0, 1, 1], [], []>} : vector<8x32xf32>, vector<32x8xf32>, vector<8x8xf32> -> vector<8x8xf32>
    %c0_273 = arith.constant 0 : index
    %c0_274 = arith.constant 0 : index
    %566 = vector.load %arg15[%c0_273, %c0_274] : memref<1x8xf32, #tpu.memory_space<vmem>>, vector<1x8xf32>
    %567 = vector.broadcast %566 : vector<1x8xf32> to vector<8x8xf32>
    %568 = arith.addf %565, %567 : vector<8x8xf32>
    %cst_275 = arith.constant 9.99999974E-5 : f32
    %569 = vector.broadcast %cst_275 : f32 to vector<8x8xf32>
    %570 = arith.mulf %568, %569 : vector<8x8xf32>
    %571 = vector.extract_strided_slice %570 {offsets = [0, 0], sizes = [8, 4], strides = [1, 1]} : vector<8x8xf32> to vector<8x4xf32>
    %572 = vector.extract_strided_slice %502 {offsets = [0, 0], sizes = [8, 1], strides = [1, 1]} : vector<8x2xf32> to vector<8x1xf32>
    %573 = vector.broadcast %572 : vector<8x1xf32> to vector<8x4xf32>
    %574 = arith.mulf %571, %573 : vector<8x4xf32>
    %575 = vector.extract_strided_slice %570 {offsets = [0, 4], sizes = [8, 4], strides = [1, 1]} : vector<8x8xf32> to vector<8x4xf32>
    %576 = vector.extract_strided_slice %502 {offsets = [0, 1], sizes = [8, 1], strides = [1, 1]} : vector<8x2xf32> to vector<8x1xf32>
    %577 = vector.broadcast %576 : vector<8x1xf32> to vector<8x4xf32>
    %578 = arith.mulf %575, %577 : vector<8x4xf32>
    %579 = arith.addf %574, %578 : vector<8x4xf32>
    %580 = arith.addf %491, %579 : vector<8x4xf32>
    %c5_276 = arith.constant 5 : index
    %c0_277 = arith.constant 0 : index
    %c0_278 = arith.constant 0 : index
    %581 = vector.load %arg16[%c5_276, %c0_277, %c0_278] : memref<8x8x4xf32, #tpu.memory_space<vmem>>, vector<1x8x4xf32>
    %582 = vector.shape_cast %581 : vector<1x8x4xf32> to vector<8x4xf32>
    %583 = vector.shape_cast %580 : vector<8x4xf32> to vector<1x8x4xf32>
    tpu.vector_store %arg16[%c5_276, %c0_277, %c0_278], %583 {strides = array<i32>} : memref<8x8x4xf32, #tpu.memory_space<vmem>>, vector<1x8x4xf32>,
    %c6 = arith.constant 6 : index
    %c0_279 = arith.constant 0 : index
    %c0_280 = arith.constant 0 : index
    %584 = vector.load %arg1[%c6, %c0_279, %c0_280] : memref<8x8x2xf32, #tpu.memory_space<vmem>>, vector<1x8x2xf32>
    %585 = vector.shape_cast %584 : vector<1x8x2xf32> to vector<8x2xf32>
    %c0_281 = arith.constant 0 : index
    %c0_282 = arith.constant 0 : index
    %586 = vector.load %arg4[%c0_281, %c0_282] : memref<4x6xf32, #tpu.memory_space<vmem>>, vector<4x6xf32>
    %cst_283 = arith.constant dense<0.000000e+00> : vector<8x6xf32>
    %587 = tpu.matmul %580, %586, %cst_283 {dimension_numbers = #tpu.dot_dimension_numbers<[1], [0], [0], [1], [0, 0, 1, 1], [], []>} : vector<8x4xf32>, vector<4x6xf32>, vector<8x6xf32> -> vector<8x6xf32>
    %588 = vector.extract_strided_slice %587 {offsets = [0, 0], sizes = [8, 4], strides = [1, 1]} : vector<8x6xf32> to vector<8x4xf32>
    %589 = vector.extract_strided_slice %587 {offsets = [0, 4], sizes = [8, 2], strides = [1, 1]} : vector<8x6xf32> to vector<8x2xf32>
    %590 = arith.subf %580, %588 : vector<8x4xf32>
    %591 = arith.mulf %590, %590 : vector<8x4xf32>
    %cst_284 = arith.constant dense<0.000000e+00> : vector<8xf32>
    %592 = vector.multi_reduction <add>, %591, %cst_284 [1] : vector<8x4xf32> to vector<8xf32>
    %593 = vector.shape_cast %592 : vector<8xf32> to vector<8x1xf32>
    %cst_285 = arith.constant 1.000000e-24 : f32
    %594 = vector.broadcast %cst_285 : f32 to vector<8x1xf32>
    %595 = arith.maximumf %593, %594 : vector<8x1xf32>
    %596 = math.rsqrt %595 : vector<8x1xf32>
    %597 = vector.broadcast %596 : vector<8x1xf32> to vector<8x4xf32>
    %598 = arith.mulf %590, %597 : vector<8x4xf32>
    %599 = arith.subf %585, %589 : vector<8x2xf32>
    %600 = arith.mulf %599, %599 : vector<8x2xf32>
    %cst_286 = arith.constant dense<0.000000e+00> : vector<8xf32>
    %601 = vector.multi_reduction <add>, %600, %cst_286 [1] : vector<8x2xf32> to vector<8xf32>
    %602 = vector.shape_cast %601 : vector<8xf32> to vector<8x1xf32>
    %cst_287 = arith.constant 1.000000e-24 : f32
    %603 = vector.broadcast %cst_287 : f32 to vector<8x1xf32>
    %604 = arith.maximumf %602, %603 : vector<8x1xf32>
    %605 = math.rsqrt %604 : vector<8x1xf32>
    %606 = vector.broadcast %605 : vector<8x1xf32> to vector<8x2xf32>
    %607 = arith.mulf %599, %606 : vector<8x2xf32>
    %c0_288 = arith.constant 0 : index
    %c0_289 = arith.constant 0 : index
    %608 = vector.load %arg5[%c0_288, %c0_289] : memref<2x480xf32, #tpu.memory_space<vmem>>, vector<2x480xf32>
    %cst_290 = arith.constant dense<0.000000e+00> : vector<8x480xf32>
    %609 = tpu.matmul %607, %608, %cst_290 {dimension_numbers = #tpu.dot_dimension_numbers<[1], [0], [0], [1], [0, 0, 1, 1], [], []>} : vector<8x2xf32>, vector<2x480xf32>, vector<8x480xf32> -> vector<8x480xf32>
    %c0_291 = arith.constant 0 : index
    %c0_292 = arith.constant 0 : index
    %610 = vector.load %arg6[%c0_291, %c0_292] : memref<4x480xf32, #tpu.memory_space<vmem>>, vector<4x480xf32>
    %cst_293 = arith.constant dense<0.000000e+00> : vector<8x480xf32>
    %611 = tpu.matmul %598, %610, %cst_293 {dimension_numbers = #tpu.dot_dimension_numbers<[1], [0], [0], [1], [0, 0, 1, 1], [], []>} : vector<8x4xf32>, vector<4x480xf32>, vector<8x480xf32> -> vector<8x480xf32>
    %612 = arith.addf %609, %611 : vector<8x480xf32>
    %c0_294 = arith.constant 0 : index
    %c0_295 = arith.constant 0 : index
    %613 = vector.load %arg7[%c0_294, %c0_295] : memref<1x480xf32, #tpu.memory_space<vmem>>, vector<1x480xf32>
    %614 = vector.broadcast %613 : vector<1x480xf32> to vector<8x480xf32>
    %615 = arith.addf %612, %614 : vector<8x480xf32>
    %cst_296 = arith.constant 0.000000e+00 : f32
    %616 = vector.broadcast %cst_296 : f32 to vector<8x480xf32>
    %617 = arith.maximumf %615, %616 : vector<8x480xf32>
    %c0_297 = arith.constant 0 : index
    %c0_298 = arith.constant 0 : index
    %618 = vector.load %arg8[%c0_297, %c0_298] : memref<480x60xf32, #tpu.memory_space<vmem>>, vector<480x60xf32>
    %cst_299 = arith.constant dense<0.000000e+00> : vector<8x60xf32>
    %619 = tpu.matmul %617, %618, %cst_299 {dimension_numbers = #tpu.dot_dimension_numbers<[1], [0], [0], [1], [0, 0, 1, 1], [], []>} : vector<8x480xf32>, vector<480x60xf32>, vector<8x60xf32> -> vector<8x60xf32>
    %c0_300 = arith.constant 0 : index
    %c0_301 = arith.constant 0 : index
    %620 = vector.load %arg9[%c0_300, %c0_301] : memref<1x60xf32, #tpu.memory_space<vmem>>, vector<1x60xf32>
    %621 = vector.broadcast %620 : vector<1x60xf32> to vector<8x60xf32>
    %622 = arith.addf %619, %621 : vector<8x60xf32>
    %c0_302 = arith.constant 0 : index
    %c0_303 = arith.constant 0 : index
    %623 = vector.load %arg10[%c0_302, %c0_303] : memref<20x60xf32, #tpu.memory_space<vmem>>, vector<20x60xf32>
    %cst_304 = arith.constant dense<0.000000e+00> : vector<8x60xf32>
    %624 = tpu.matmul %556, %623, %cst_304 {dimension_numbers = #tpu.dot_dimension_numbers<[1], [0], [0], [1], [0, 0, 1, 1], [], []>} : vector<8x20xf32>, vector<20x60xf32>, vector<8x60xf32> -> vector<8x60xf32>
    %c0_305 = arith.constant 0 : index
    %c0_306 = arith.constant 0 : index
    %625 = vector.load %arg11[%c0_305, %c0_306] : memref<1x60xf32, #tpu.memory_space<vmem>>, vector<1x60xf32>
    %626 = vector.broadcast %625 : vector<1x60xf32> to vector<8x60xf32>
    %627 = arith.addf %624, %626 : vector<8x60xf32>
    %628 = vector.extract_strided_slice %622 {offsets = [0, 0], sizes = [8, 20], strides = [1, 1]} : vector<8x60xf32> to vector<8x20xf32>
    %629 = vector.extract_strided_slice %627 {offsets = [0, 0], sizes = [8, 20], strides = [1, 1]} : vector<8x60xf32> to vector<8x20xf32>
    %630 = arith.addf %628, %629 : vector<8x20xf32>
    %631 = arith.negf %630 : vector<8x20xf32>
    %632 = math.exp %631 : vector<8x20xf32>
    %cst_307 = arith.constant 1.000000e+00 : f32
    %633 = vector.broadcast %cst_307 : f32 to vector<8x20xf32>
    %634 = arith.addf %633, %632 : vector<8x20xf32>
    %635 = arith.divf %633, %634 : vector<8x20xf32>
    %636 = vector.extract_strided_slice %622 {offsets = [0, 20], sizes = [8, 20], strides = [1, 1]} : vector<8x60xf32> to vector<8x20xf32>
    %637 = vector.extract_strided_slice %627 {offsets = [0, 20], sizes = [8, 20], strides = [1, 1]} : vector<8x60xf32> to vector<8x20xf32>
    %638 = arith.addf %636, %637 : vector<8x20xf32>
    %639 = arith.negf %638 : vector<8x20xf32>
    %640 = math.exp %639 : vector<8x20xf32>
    %cst_308 = arith.constant 1.000000e+00 : f32
    %641 = vector.broadcast %cst_308 : f32 to vector<8x20xf32>
    %642 = arith.addf %641, %640 : vector<8x20xf32>
    %643 = arith.divf %641, %642 : vector<8x20xf32>
    %644 = vector.extract_strided_slice %622 {offsets = [0, 40], sizes = [8, 20], strides = [1, 1]} : vector<8x60xf32> to vector<8x20xf32>
    %645 = vector.extract_strided_slice %627 {offsets = [0, 40], sizes = [8, 20], strides = [1, 1]} : vector<8x60xf32> to vector<8x20xf32>
    %646 = arith.mulf %635, %645 : vector<8x20xf32>
    %647 = arith.addf %644, %646 : vector<8x20xf32>
    %648 = math.tanh %647 : vector<8x20xf32>
    %cst_309 = arith.constant 1.000000e+00 : f32
    %649 = vector.broadcast %cst_309 : f32 to vector<8x20xf32>
    %650 = arith.subf %649, %643 : vector<8x20xf32>
    %651 = arith.mulf %650, %648 : vector<8x20xf32>
    %652 = arith.mulf %643, %556 : vector<8x20xf32>
    %653 = arith.addf %651, %652 : vector<8x20xf32>
    %c0_310 = arith.constant 0 : index
    %c0_311 = arith.constant 0 : index
    %654 = vector.load %arg12[%c0_310, %c0_311] : memref<20x32xf32, #tpu.memory_space<vmem>>, vector<20x32xf32>
    %cst_312 = arith.constant dense<0.000000e+00> : vector<8x32xf32>
    %655 = tpu.matmul %653, %654, %cst_312 {dimension_numbers = #tpu.dot_dimension_numbers<[1], [0], [0], [1], [0, 0, 1, 1], [], []>} : vector<8x20xf32>, vector<20x32xf32>, vector<8x32xf32> -> vector<8x32xf32>
    %c0_313 = arith.constant 0 : index
    %c0_314 = arith.constant 0 : index
    %656 = vector.load %arg13[%c0_313, %c0_314] : memref<1x32xf32, #tpu.memory_space<vmem>>, vector<1x32xf32>
    %657 = vector.broadcast %656 : vector<1x32xf32> to vector<8x32xf32>
    %658 = arith.addf %655, %657 : vector<8x32xf32>
    %cst_315 = arith.constant 0.000000e+00 : f32
    %659 = vector.broadcast %cst_315 : f32 to vector<8x32xf32>
    %660 = arith.maximumf %658, %659 : vector<8x32xf32>
    %c0_316 = arith.constant 0 : index
    %c0_317 = arith.constant 0 : index
    %661 = vector.load %arg14[%c0_316, %c0_317] : memref<32x8xf32, #tpu.memory_space<vmem>>, vector<32x8xf32>
    %cst_318 = arith.constant dense<0.000000e+00> : vector<8x8xf32>
    %662 = tpu.matmul %660, %661, %cst_318 {dimension_numbers = #tpu.dot_dimension_numbers<[1], [0], [0], [1], [0, 0, 1, 1], [], []>} : vector<8x32xf32>, vector<32x8xf32>, vector<8x8xf32> -> vector<8x8xf32>
    %c0_319 = arith.constant 0 : index
    %c0_320 = arith.constant 0 : index
    %663 = vector.load %arg15[%c0_319, %c0_320] : memref<1x8xf32, #tpu.memory_space<vmem>>, vector<1x8xf32>
    %664 = vector.broadcast %663 : vector<1x8xf32> to vector<8x8xf32>
    %665 = arith.addf %662, %664 : vector<8x8xf32>
    %cst_321 = arith.constant 9.99999974E-5 : f32
    %666 = vector.broadcast %cst_321 : f32 to vector<8x8xf32>
    %667 = arith.mulf %665, %666 : vector<8x8xf32>
    %668 = vector.extract_strided_slice %667 {offsets = [0, 0], sizes = [8, 4], strides = [1, 1]} : vector<8x8xf32> to vector<8x4xf32>
    %669 = vector.extract_strided_slice %599 {offsets = [0, 0], sizes = [8, 1], strides = [1, 1]} : vector<8x2xf32> to vector<8x1xf32>
    %670 = vector.broadcast %669 : vector<8x1xf32> to vector<8x4xf32>
    %671 = arith.mulf %668, %670 : vector<8x4xf32>
    %672 = vector.extract_strided_slice %667 {offsets = [0, 4], sizes = [8, 4], strides = [1, 1]} : vector<8x8xf32> to vector<8x4xf32>
    %673 = vector.extract_strided_slice %599 {offsets = [0, 1], sizes = [8, 1], strides = [1, 1]} : vector<8x2xf32> to vector<8x1xf32>
    %674 = vector.broadcast %673 : vector<8x1xf32> to vector<8x4xf32>
    %675 = arith.mulf %672, %674 : vector<8x4xf32>
    %676 = arith.addf %671, %675 : vector<8x4xf32>
    %677 = arith.addf %588, %676 : vector<8x4xf32>
    %c6_322 = arith.constant 6 : index
    %c0_323 = arith.constant 0 : index
    %c0_324 = arith.constant 0 : index
    %678 = vector.load %arg16[%c6_322, %c0_323, %c0_324] : memref<8x8x4xf32, #tpu.memory_space<vmem>>, vector<1x8x4xf32>
    %679 = vector.shape_cast %678 : vector<1x8x4xf32> to vector<8x4xf32>
    %680 = vector.shape_cast %677 : vector<8x4xf32> to vector<1x8x4xf32>
    tpu.vector_store %arg16[%c6_322, %c0_323, %c0_324], %680 {strides = array<i32>} : memref<8x8x4xf32, #tpu.memory_space<vmem>>, vector<1x8x4xf32>,
    %c7 = arith.constant 7 : index
    %c0_325 = arith.constant 0 : index
    %c0_326 = arith.constant 0 : index
    %681 = vector.load %arg1[%c7, %c0_325, %c0_326] : memref<8x8x2xf32, #tpu.memory_space<vmem>>, vector<1x8x2xf32>
    %682 = vector.shape_cast %681 : vector<1x8x2xf32> to vector<8x2xf32>
    %c0_327 = arith.constant 0 : index
    %c0_328 = arith.constant 0 : index
    %683 = vector.load %arg4[%c0_327, %c0_328] : memref<4x6xf32, #tpu.memory_space<vmem>>, vector<4x6xf32>
    %cst_329 = arith.constant dense<0.000000e+00> : vector<8x6xf32>
    %684 = tpu.matmul %677, %683, %cst_329 {dimension_numbers = #tpu.dot_dimension_numbers<[1], [0], [0], [1], [0, 0, 1, 1], [], []>} : vector<8x4xf32>, vector<4x6xf32>, vector<8x6xf32> -> vector<8x6xf32>
    %685 = vector.extract_strided_slice %684 {offsets = [0, 0], sizes = [8, 4], strides = [1, 1]} : vector<8x6xf32> to vector<8x4xf32>
    %686 = vector.extract_strided_slice %684 {offsets = [0, 4], sizes = [8, 2], strides = [1, 1]} : vector<8x6xf32> to vector<8x2xf32>
    %687 = arith.subf %677, %685 : vector<8x4xf32>
    %688 = arith.mulf %687, %687 : vector<8x4xf32>
    %cst_330 = arith.constant dense<0.000000e+00> : vector<8xf32>
    %689 = vector.multi_reduction <add>, %688, %cst_330 [1] : vector<8x4xf32> to vector<8xf32>
    %690 = vector.shape_cast %689 : vector<8xf32> to vector<8x1xf32>
    %cst_331 = arith.constant 1.000000e-24 : f32
    %691 = vector.broadcast %cst_331 : f32 to vector<8x1xf32>
    %692 = arith.maximumf %690, %691 : vector<8x1xf32>
    %693 = math.rsqrt %692 : vector<8x1xf32>
    %694 = vector.broadcast %693 : vector<8x1xf32> to vector<8x4xf32>
    %695 = arith.mulf %687, %694 : vector<8x4xf32>
    %696 = arith.subf %682, %686 : vector<8x2xf32>
    %697 = arith.mulf %696, %696 : vector<8x2xf32>
    %cst_332 = arith.constant dense<0.000000e+00> : vector<8xf32>
    %698 = vector.multi_reduction <add>, %697, %cst_332 [1] : vector<8x2xf32> to vector<8xf32>
    %699 = vector.shape_cast %698 : vector<8xf32> to vector<8x1xf32>
    %cst_333 = arith.constant 1.000000e-24 : f32
    %700 = vector.broadcast %cst_333 : f32 to vector<8x1xf32>
    %701 = arith.maximumf %699, %700 : vector<8x1xf32>
    %702 = math.rsqrt %701 : vector<8x1xf32>
    %703 = vector.broadcast %702 : vector<8x1xf32> to vector<8x2xf32>
    %704 = arith.mulf %696, %703 : vector<8x2xf32>
    %c0_334 = arith.constant 0 : index
    %c0_335 = arith.constant 0 : index
    %705 = vector.load %arg5[%c0_334, %c0_335] : memref<2x480xf32, #tpu.memory_space<vmem>>, vector<2x480xf32>
    %cst_336 = arith.constant dense<0.000000e+00> : vector<8x480xf32>
    %706 = tpu.matmul %704, %705, %cst_336 {dimension_numbers = #tpu.dot_dimension_numbers<[1], [0], [0], [1], [0, 0, 1, 1], [], []>} : vector<8x2xf32>, vector<2x480xf32>, vector<8x480xf32> -> vector<8x480xf32>
    %c0_337 = arith.constant 0 : index
    %c0_338 = arith.constant 0 : index
    %707 = vector.load %arg6[%c0_337, %c0_338] : memref<4x480xf32, #tpu.memory_space<vmem>>, vector<4x480xf32>
    %cst_339 = arith.constant dense<0.000000e+00> : vector<8x480xf32>
    %708 = tpu.matmul %695, %707, %cst_339 {dimension_numbers = #tpu.dot_dimension_numbers<[1], [0], [0], [1], [0, 0, 1, 1], [], []>} : vector<8x4xf32>, vector<4x480xf32>, vector<8x480xf32> -> vector<8x480xf32>
    %709 = arith.addf %706, %708 : vector<8x480xf32>
    %c0_340 = arith.constant 0 : index
    %c0_341 = arith.constant 0 : index
    %710 = vector.load %arg7[%c0_340, %c0_341] : memref<1x480xf32, #tpu.memory_space<vmem>>, vector<1x480xf32>
    %711 = vector.broadcast %710 : vector<1x480xf32> to vector<8x480xf32>
    %712 = arith.addf %709, %711 : vector<8x480xf32>
    %cst_342 = arith.constant 0.000000e+00 : f32
    %713 = vector.broadcast %cst_342 : f32 to vector<8x480xf32>
    %714 = arith.maximumf %712, %713 : vector<8x480xf32>
    %c0_343 = arith.constant 0 : index
    %c0_344 = arith.constant 0 : index
    %715 = vector.load %arg8[%c0_343, %c0_344] : memref<480x60xf32, #tpu.memory_space<vmem>>, vector<480x60xf32>
    %cst_345 = arith.constant dense<0.000000e+00> : vector<8x60xf32>
    %716 = tpu.matmul %714, %715, %cst_345 {dimension_numbers = #tpu.dot_dimension_numbers<[1], [0], [0], [1], [0, 0, 1, 1], [], []>} : vector<8x480xf32>, vector<480x60xf32>, vector<8x60xf32> -> vector<8x60xf32>
    %c0_346 = arith.constant 0 : index
    %c0_347 = arith.constant 0 : index
    %717 = vector.load %arg9[%c0_346, %c0_347] : memref<1x60xf32, #tpu.memory_space<vmem>>, vector<1x60xf32>
    %718 = vector.broadcast %717 : vector<1x60xf32> to vector<8x60xf32>
    %719 = arith.addf %716, %718 : vector<8x60xf32>
    %c0_348 = arith.constant 0 : index
    %c0_349 = arith.constant 0 : index
    %720 = vector.load %arg10[%c0_348, %c0_349] : memref<20x60xf32, #tpu.memory_space<vmem>>, vector<20x60xf32>
    %cst_350 = arith.constant dense<0.000000e+00> : vector<8x60xf32>
    %721 = tpu.matmul %653, %720, %cst_350 {dimension_numbers = #tpu.dot_dimension_numbers<[1], [0], [0], [1], [0, 0, 1, 1], [], []>} : vector<8x20xf32>, vector<20x60xf32>, vector<8x60xf32> -> vector<8x60xf32>
    %c0_351 = arith.constant 0 : index
    %c0_352 = arith.constant 0 : index
    %722 = vector.load %arg11[%c0_351, %c0_352] : memref<1x60xf32, #tpu.memory_space<vmem>>, vector<1x60xf32>
    %723 = vector.broadcast %722 : vector<1x60xf32> to vector<8x60xf32>
    %724 = arith.addf %721, %723 : vector<8x60xf32>
    %725 = vector.extract_strided_slice %719 {offsets = [0, 0], sizes = [8, 20], strides = [1, 1]} : vector<8x60xf32> to vector<8x20xf32>
    %726 = vector.extract_strided_slice %724 {offsets = [0, 0], sizes = [8, 20], strides = [1, 1]} : vector<8x60xf32> to vector<8x20xf32>
    %727 = arith.addf %725, %726 : vector<8x20xf32>
    %728 = arith.negf %727 : vector<8x20xf32>
    %729 = math.exp %728 : vector<8x20xf32>
    %cst_353 = arith.constant 1.000000e+00 : f32
    %730 = vector.broadcast %cst_353 : f32 to vector<8x20xf32>
    %731 = arith.addf %730, %729 : vector<8x20xf32>
    %732 = arith.divf %730, %731 : vector<8x20xf32>
    %733 = vector.extract_strided_slice %719 {offsets = [0, 20], sizes = [8, 20], strides = [1, 1]} : vector<8x60xf32> to vector<8x20xf32>
    %734 = vector.extract_strided_slice %724 {offsets = [0, 20], sizes = [8, 20], strides = [1, 1]} : vector<8x60xf32> to vector<8x20xf32>
    %735 = arith.addf %733, %734 : vector<8x20xf32>
    %736 = arith.negf %735 : vector<8x20xf32>
    %737 = math.exp %736 : vector<8x20xf32>
    %cst_354 = arith.constant 1.000000e+00 : f32
    %738 = vector.broadcast %cst_354 : f32 to vector<8x20xf32>
    %739 = arith.addf %738, %737 : vector<8x20xf32>
    %740 = arith.divf %738, %739 : vector<8x20xf32>
    %741 = vector.extract_strided_slice %719 {offsets = [0, 40], sizes = [8, 20], strides = [1, 1]} : vector<8x60xf32> to vector<8x20xf32>
    %742 = vector.extract_strided_slice %724 {offsets = [0, 40], sizes = [8, 20], strides = [1, 1]} : vector<8x60xf32> to vector<8x20xf32>
    %743 = arith.mulf %732, %742 : vector<8x20xf32>
    %744 = arith.addf %741, %743 : vector<8x20xf32>
    %745 = math.tanh %744 : vector<8x20xf32>
    %cst_355 = arith.constant 1.000000e+00 : f32
    %746 = vector.broadcast %cst_355 : f32 to vector<8x20xf32>
    %747 = arith.subf %746, %740 : vector<8x20xf32>
    %748 = arith.mulf %747, %745 : vector<8x20xf32>
    %749 = arith.mulf %740, %653 : vector<8x20xf32>
    %750 = arith.addf %748, %749 : vector<8x20xf32>
    %c0_356 = arith.constant 0 : index
    %c0_357 = arith.constant 0 : index
    %751 = vector.load %arg12[%c0_356, %c0_357] : memref<20x32xf32, #tpu.memory_space<vmem>>, vector<20x32xf32>
    %cst_358 = arith.constant dense<0.000000e+00> : vector<8x32xf32>
    %752 = tpu.matmul %750, %751, %cst_358 {dimension_numbers = #tpu.dot_dimension_numbers<[1], [0], [0], [1], [0, 0, 1, 1], [], []>} : vector<8x20xf32>, vector<20x32xf32>, vector<8x32xf32> -> vector<8x32xf32>
    %c0_359 = arith.constant 0 : index
    %c0_360 = arith.constant 0 : index
    %753 = vector.load %arg13[%c0_359, %c0_360] : memref<1x32xf32, #tpu.memory_space<vmem>>, vector<1x32xf32>
    %754 = vector.broadcast %753 : vector<1x32xf32> to vector<8x32xf32>
    %755 = arith.addf %752, %754 : vector<8x32xf32>
    %cst_361 = arith.constant 0.000000e+00 : f32
    %756 = vector.broadcast %cst_361 : f32 to vector<8x32xf32>
    %757 = arith.maximumf %755, %756 : vector<8x32xf32>
    %c0_362 = arith.constant 0 : index
    %c0_363 = arith.constant 0 : index
    %758 = vector.load %arg14[%c0_362, %c0_363] : memref<32x8xf32, #tpu.memory_space<vmem>>, vector<32x8xf32>
    %cst_364 = arith.constant dense<0.000000e+00> : vector<8x8xf32>
    %759 = tpu.matmul %757, %758, %cst_364 {dimension_numbers = #tpu.dot_dimension_numbers<[1], [0], [0], [1], [0, 0, 1, 1], [], []>} : vector<8x32xf32>, vector<32x8xf32>, vector<8x8xf32> -> vector<8x8xf32>
    %c0_365 = arith.constant 0 : index
    %c0_366 = arith.constant 0 : index
    %760 = vector.load %arg15[%c0_365, %c0_366] : memref<1x8xf32, #tpu.memory_space<vmem>>, vector<1x8xf32>
    %761 = vector.broadcast %760 : vector<1x8xf32> to vector<8x8xf32>
    %762 = arith.addf %759, %761 : vector<8x8xf32>
    %cst_367 = arith.constant 9.99999974E-5 : f32
    %763 = vector.broadcast %cst_367 : f32 to vector<8x8xf32>
    %764 = arith.mulf %762, %763 : vector<8x8xf32>
    %765 = vector.extract_strided_slice %764 {offsets = [0, 0], sizes = [8, 4], strides = [1, 1]} : vector<8x8xf32> to vector<8x4xf32>
    %766 = vector.extract_strided_slice %696 {offsets = [0, 0], sizes = [8, 1], strides = [1, 1]} : vector<8x2xf32> to vector<8x1xf32>
    %767 = vector.broadcast %766 : vector<8x1xf32> to vector<8x4xf32>
    %768 = arith.mulf %765, %767 : vector<8x4xf32>
    %769 = vector.extract_strided_slice %764 {offsets = [0, 4], sizes = [8, 4], strides = [1, 1]} : vector<8x8xf32> to vector<8x4xf32>
    %770 = vector.extract_strided_slice %696 {offsets = [0, 1], sizes = [8, 1], strides = [1, 1]} : vector<8x2xf32> to vector<8x1xf32>
    %771 = vector.broadcast %770 : vector<8x1xf32> to vector<8x4xf32>
    %772 = arith.mulf %769, %771 : vector<8x4xf32>
    %773 = arith.addf %768, %772 : vector<8x4xf32>
    %774 = arith.addf %685, %773 : vector<8x4xf32>
    %c7_368 = arith.constant 7 : index
    %c0_369 = arith.constant 0 : index
    %c0_370 = arith.constant 0 : index
    %775 = vector.load %arg16[%c7_368, %c0_369, %c0_370] : memref<8x8x4xf32, #tpu.memory_space<vmem>>, vector<1x8x4xf32>
    %776 = vector.shape_cast %775 : vector<1x8x4xf32> to vector<8x4xf32>
    %777 = vector.shape_cast %774 : vector<8x4xf32> to vector<1x8x4xf32>
    tpu.vector_store %arg16[%c7_368, %c0_369, %c0_370], %777 {strides = array<i32>} : memref<8x8x4xf32, #tpu.memory_space<vmem>>, vector<1x8x4xf32>,
    %c0_371 = arith.constant 0 : index
    %c0_372 = arith.constant 0 : index
    %778 = vector.load %arg17[%c0_371, %c0_372] : memref<8x20xf32, #tpu.memory_space<vmem>>, vector<8x20xf32>
    tpu.vector_store %arg17[%c0_371, %c0_372], %750 {strides = array<i32>} : memref<8x20xf32, #tpu.memory_space<vmem>>, vector<8x20xf32>,
    return
  }
  func.func @transform_0(%arg0: i32) -> (i32, i32, i32) {
    %c0_i32 = arith.constant 0 : i32
    %c0_i32_0 = arith.constant 0 : i32
    %c0_i32_1 = arith.constant 0 : i32
    return %c0_i32, %arg0, %c0_i32_0 : i32, i32, i32
  }
  func.func @transform_1(%arg0: i32) -> (i32, i32) {
    %c0_i32 = arith.constant 0 : i32
    %c0_i32_0 = arith.constant 0 : i32
    return %arg0, %c0_i32 : i32, i32
  }
  func.func @transform_2(%arg0: i32) -> (i32, i32) {
    %c0_i32 = arith.constant 0 : i32
    %c0_i32_0 = arith.constant 0 : i32
    return %arg0, %c0_i32 : i32, i32
  }
  func.func @transform_3(%arg0: i32) -> (i32, i32) {
    %c0_i32 = arith.constant 0 : i32
    %c0_i32_0 = arith.constant 0 : i32
    %c0_i32_1 = arith.constant 0 : i32
    return %c0_i32, %c0_i32_0 : i32, i32
  }
  func.func @transform_4(%arg0: i32) -> (i32, i32) {
    %c0_i32 = arith.constant 0 : i32
    %c0_i32_0 = arith.constant 0 : i32
    %c0_i32_1 = arith.constant 0 : i32
    return %c0_i32, %c0_i32_0 : i32, i32
  }
  func.func @transform_5(%arg0: i32) -> (i32, i32) {
    %c0_i32 = arith.constant 0 : i32
    %c0_i32_0 = arith.constant 0 : i32
    %c0_i32_1 = arith.constant 0 : i32
    return %c0_i32, %c0_i32_0 : i32, i32
  }
  func.func @transform_6(%arg0: i32) -> (i32, i32) {
    %c0_i32 = arith.constant 0 : i32
    %c0_i32_0 = arith.constant 0 : i32
    %c0_i32_1 = arith.constant 0 : i32
    return %c0_i32, %c0_i32_0 : i32, i32
  }
  func.func @transform_7(%arg0: i32) -> (i32, i32) {
    %c0_i32 = arith.constant 0 : i32
    %c0_i32_0 = arith.constant 0 : i32
    %c0_i32_1 = arith.constant 0 : i32
    return %c0_i32, %c0_i32_0 : i32, i32
  }
  func.func @transform_8(%arg0: i32) -> (i32, i32) {
    %c0_i32 = arith.constant 0 : i32
    %c0_i32_0 = arith.constant 0 : i32
    %c0_i32_1 = arith.constant 0 : i32
    return %c0_i32, %c0_i32_0 : i32, i32
  }
  func.func @transform_9(%arg0: i32) -> (i32, i32) {
    %c0_i32 = arith.constant 0 : i32
    %c0_i32_0 = arith.constant 0 : i32
    %c0_i32_1 = arith.constant 0 : i32
    return %c0_i32, %c0_i32_0 : i32, i32
  }
  func.func @transform_10(%arg0: i32) -> (i32, i32) {
    %c0_i32 = arith.constant 0 : i32
    %c0_i32_0 = arith.constant 0 : i32
    %c0_i32_1 = arith.constant 0 : i32
    return %c0_i32, %c0_i32_0 : i32, i32
  }
  func.func @transform_11(%arg0: i32) -> (i32, i32) {
    %c0_i32 = arith.constant 0 : i32
    %c0_i32_0 = arith.constant 0 : i32
    %c0_i32_1 = arith.constant 0 : i32
    return %c0_i32, %c0_i32_0 : i32, i32
  }
  func.func @transform_12(%arg0: i32) -> (i32, i32) {
    %c0_i32 = arith.constant 0 : i32
    %c0_i32_0 = arith.constant 0 : i32
    %c0_i32_1 = arith.constant 0 : i32
    return %c0_i32, %c0_i32_0 : i32, i32
  }
  func.func @transform_13(%arg0: i32) -> (i32, i32) {
    %c0_i32 = arith.constant 0 : i32
    %c0_i32_0 = arith.constant 0 : i32
    %c0_i32_1 = arith.constant 0 : i32
    return %c0_i32, %c0_i32_0 : i32, i32
  }
  func.func @transform_14(%arg0: i32) -> (i32, i32) {
    %c0_i32 = arith.constant 0 : i32
    %c0_i32_0 = arith.constant 0 : i32
    %c0_i32_1 = arith.constant 0 : i32
    return %c0_i32, %c0_i32_0 : i32, i32
  }
  func.func @transform_15(%arg0: i32) -> (i32, i32, i32) {
    %c0_i32 = arith.constant 0 : i32
    %c0_i32_0 = arith.constant 0 : i32
    %c0_i32_1 = arith.constant 0 : i32
    return %c0_i32, %arg0, %c0_i32_0 : i32, i32, i32
  }
  func.func @transform_16(%arg0: i32) -> (i32, i32) {
    %c0_i32 = arith.constant 0 : i32
    %c0_i32_0 = arith.constant 0 : i32
    return %arg0, %c0_i32 : i32, i32
  }
}

</mosaic_0001>

<bundles_post_ra>
// kernel: run.1
= control target key start
LH: loop header
LB: loop body
LE: loop exit
PB: predicated region body
PF: predicated region fallthrough
CT: control target
= control target key end

     0   :  { %s12578_s0 = inlined_call_operand.vmem [shape: f32[8,16,2], index: 0, kind: input, shape index: {}]   ;;  %s12579_s1 = inlined_call_operand.vmem [shape: f32[16,4], index: 1, kind: input, shape index: {}]   ;;  %s12580_s2 = inlined_call_operand.vmem [shape: f32[16,20], index: 2, kind: input, shape index: {}]   ;;  %s12581_s3 = inlined_call_operand.vmem [shape: f32[4,6], index: 3, kind: input, shape index: {}]   ;;  %s12582_s4 = inlined_call_operand.vmem [shape: f32[2,480], index: 4, kind: input, shape index: {}]   ;;  %s12583_s5 = inlined_call_operand.vmem [shape: f32[4,480], index: 5, kind: input, shape index: {}]   ;;  %s12584_s6 = inlined_call_operand.vmem [shape: f32[1,480], index: 6, kind: input, shape index: {}]   ;;  %s12585_s7 = inlined_call_operand.hbm [shape: f32[480,60], index: 7, kind: input, shape index: {}]   ;;  %s12586_s8 = inlined_call_operand.vmem [shape: f32[1,60], index: 8, kind: input, shape index: {}]   ;;  %s12587_s9 = inlined_call_operand.vmem [shape: f32[20,60], index: 9, kind: input, shape index: {}]   ;;  %s12588_s10 = inlined_call_operand.vmem [shape: f32[1,60], index: 10, kind: input, shape index: {}]   ;;  %s12589_s11 = inlined_call_operand.vmem [shape: f32[20,32], index: 11, kind: input, shape index: {}]   ;;  %s12590_s12 = inlined_call_operand.vmem [shape: f32[1,32], index: 12, kind: input, shape index: {}]   ;;  %s12591_s13 = inlined_call_operand.vmem [shape: f32[32,8], index: 13, kind: input, shape index: {}]   ;;  %s12592_s14 = inlined_call_operand.vmem [shape: f32[1,8], index: 14, kind: input, shape index: {}]   ;;  %s12593_s15 = inlined_call_operand.vmem [shape: f32[8,16,4], index: 15, kind: output, shape index: {0}]   ;;  %s12594_s16 = inlined_call_operand.hbm [shape: f32[16,20], index: 16, kind: output, shape index: {1}]  }
   0x1   :  { %12623 = sst [smem:[#allocation18_spill]] %s12578_s0 }
   0x2   :  { %12624 = sst [smem:[#allocation19_spill]] %s12579_s1 }
   0x3   :  { %12625 = sst [smem:[#allocation20_spill]] %s12592_s14 }
   0x4   :  { %12626 = sst [smem:[#allocation21_spill]] %s12593_s15 }
   0x5   :  { %12627 = sst [smem:[#allocation22_spill]] %s12594_s16 }
   0x6   :  { %22 = vsyncpa [#allocation4], 0 }
   0x7   :  { %23 = vsyncpa [#allocation5], 0 }
   0x8   :  { %25 = vsyncpa [#allocation5 + $0x1], 0  ;;  %s10624_s21 = smov 0   ;;  %s10626_s22 = smov 0  }
   0x9   :  { %s10628_s23 = smov 0   ;;  %s10630_s24 = smov 0  }
   0xa LB: > { %12628 = sst [smem:[#allocation10_spill]] %s10510_s21  ;;  %s10645_s25 = sadd.s32 4294967295, %s10522_s24   ;;  %s10522_s24 = sphi %s10630_s24, %s12670_s24   ;;  %s10518_s23 = sphi %s10628_s23, %s12674_s23   ;;  %s10514_s22 = sphi %s10626_s22, %s12673_s22   ;;  %s10510_s21 = sphi %s10624_s21, %s12672_s21  }
   0xb   : > { %s8641_s26 = sadd.s32 4294967294, %s10522_s24   ;;  %s10649_s27 = sadd.s32 1, %s10522_s24  }
   0xc   : > { %12629 = sst [smem:[#allocation11_spill]] %s10649_s27  ;;  %s38_s28 = sadd.s32 1, %s10518_s23 }
   0xd   : > { %s35_s29 = ssub.s32 %s10522_s24, %s10649_s27  ;;  %p45_p0 = scmp.ne.s32.totalorder %s10518_s23, %s10514_s22 }
   0xe   : > { %p36_p1 = scmp.eq.s32.totalorder %s35_s29, 0  ;;  %p46_p2 = scmp.eq.s32.totalorder %s10522_s24, 0 }
   0xf   : > { %p379_p3 = scmp.eq.s32.totalorder %s10645_s25, 1  ;;  %p410_p4 = scmp.ne.s32.totalorder %s10514_s22, %s10510_s21 }
  0x10   : > { %s10661_s30 = scalar_select %p36_p1, %s10518_s23, %s38_s28  }
  0x11   : > { %p10663_p5 = por %p46_p2, %p45_p0  ;;  %p10667_p6 = por %p379_p3, %p45_p0 }
  0x12   : > { %12630 = sst [smem:[#allocation12_spill]] %s10661_s30  ;;  %p411_p7 = scmp.eq.s32.totalorder %s8641_s26, 1 }
  0x13   : > { %s12631_s0 = scalar_select %p10663_p5, 1, 0 }
  0x14   : > { %s12632_s17 = scalar_select %p10667_p6, 1, 0 }
  0x15   : > { %p8642_p8 = scmp.ge.s32.totalorder %s10522_s24, 1  ;;  %p418_p9 = scmp.lt.s32.totalorder %s10522_s24, 3 }
  0x16   : > { %12633 = sst [smem:[#allocation13_spill]] %s12632_s17  ;;  %p10673_p10 = por %p411_p7, %p410_p4 }
  0x17   : > { %p12600_p11 = scmp.eq.s32.totalorder %s10645_s25, 0  ;;  %p10678_p12 = pnand %p8642_p8, %p418_p9 }
  0x18   : > { %s12634_s18 = scalar_select %p10673_p10, 1, 0 }
  0x19   : > { %s12636_s19 = scalar_select %p10678_p12, 1, 0 }
  0x1a   : > { %12635 = sst [smem:[#allocation14_spill]] %s12634_s18  ;;  %s10524_s20 = smov [#allocation3]  }
  0x1b   : > { %s442_s28 = sshll.u32 %s10524_s20, 4  ;;  %p10272_p13 = pneg %p10678_p12  ;;  %s443_s28 = int_to_ptr.vmem [resolvable:$true] %s442_s28 }
  0x1c   : > { %s10428_s27 = scalar_lea.hbm %s12585_s7, 7680 }
  0x1d   : > { %p10686_p0 = pnand %p12600_p11, %p10272_p13  ;;  %p10429_p1 = scmp.ne.s32.totalorder %s12585_s7, %s10428_s27 }
  0x1e   : > { %p10435_p7 = scmp.lt.u32.totalorder %s10428_s27, %s12585_s7 }
  0x1f   : > { %p10430_p2 = pneg %p10686_p0 }
  0x21   : > { %p10431_p3 = pnand %p10430_p2, %p10429_p1 }
  0x23   : > { %p10432_p4 = pneg %p10431_p3 }
  0x25   : > { %p10437_p8 = pnand %p10435_p7, %p10432_p4 }
  0x27   : > { %10440 = shalt.err (!%p10437_p8)
}
  0x28   : > { %s10441_s15 = scalar_lea.vmem %s443_s28, 7680  ;;  %p10449_p10 = scmp.lt.s32.totalorder %s443_s28, %s443_s28 }
  0x29   : > { %p10442_p9 = scmp.ne.s32.totalorder %s443_s28, %s10441_s15  ;;  %p10450_p6 = scmp.lt.s32.totalorder %s10441_s15, %s10441_s15 }
  0x2b   : > { %p10444_p13 = pnand %p10442_p9, %p10430_p2  ;;  %p10451_p12 = por %p10450_p6, %p10449_p10 }
  0x2d   : > { %p10445_p11 = pneg %p10444_p13 }
  0x2f   : > { %p10452_p5 = pnand %p10451_p12, %p10445_p11 }
  0x31   : > { %10455 = shalt.err (!%p10452_p5)
}
  0x32   : > { %s10525_s21 = smov 128   ;;  %s10526_s30 = smov 8  }
  0x33   : > { %10275 = dma.hbm_to_vmem [thread:$0]  (!%p10686_p0), %s12585_s7, 7680, %s443_s28, [#allocation4], %s10525_s21, %s10525_s21, %s10526_s30  }
  0x34   : > { %p8644_p1 = scmp.ge.s32.totalorder %s10522_s24, 2 }
  0x35   : > { %p12638_p2 = scmp.ne.s32.totalorder (!%p8644_p1), %s12631_s0, 0 }
  0x36   : > { %473 = sbr.rel (%p8644_p1) target bundleno = 75 (0x4b), region = 64 }
  0x3d   : > { %476 = sbr.rel (!%p12638_p2) target bundleno = 75 (0x4b), region = 68  ;;  %s478_s15 = sand.u32 (%p12638_p2), 1, %s10518_s23  }
  0x3e   : > { %s8646_s16 = sshll.u32 (%p12638_p2), %s10522_s24, 3  ;;  %s8645_s27 = sshll.u32 (%p12638_p2), %s478_s15, 6 }
  0x3f   : > { %s12639_s26 = sld [smem:[#allocation18_spill]] (%p12638_p2)  ;;  %s480_s28 = scalar_lea.vmem (%p12638_p2), [#allocation2], %s8645_s27 }
  0x45   : > { %s482_s14 = scalar_lea.vmem %s12639_s26, %s8646_s16 }
  0x46   : > { %v524_v0 = vld [vmem:[%s482_s14] sm:$0xff]  ;;  %v526_v1 = vld [vmem:[%s482_s14 + $0x10] sm:$0xff] }
  0x47   : > { %v528_v2 = vld [vmem:[%s482_s14 + $0x20] sm:$0xff]  ;;  %525 = vst [vmem:[%s480_s28] sm:$0xff] %v524_v0  ;;  %527 = vst [vmem:[%s480_s28 + $0x8] sm:$0xff] %v526_v1  ;;  %v530_v3 = vld [vmem:[%s482_s14 + $0x30] sm:$0xff] }
  0x48   : > { %529 = vst [vmem:[%s480_s28 + $0x10] sm:$0xff] %v528_v2  ;;  %v532_v4 = vld [vmem:[%s482_s14 + $0x40] sm:$0xff]  ;;  %v534_v5 = vld [vmem:[%s482_s14 + $0x50] sm:$0xff]  ;;  %531 = vst [vmem:[%s480_s28 + $0x18] sm:$0xff] %v530_v3 }
  0x49   : > { %533 = vst [vmem:[%s480_s28 + $0x20] sm:$0xff] %v532_v4  ;;  %535 = vst [vmem:[%s480_s28 + $0x28] sm:$0xff] %v534_v5  ;;  %v536_v6 = vld [vmem:[%s482_s14 + $0x60] sm:$0xff]  ;;  %v538_v7 = vld [vmem:[%s482_s14 + $0x70] sm:$0xff] }
  0x4a   : > { %537 = vst [vmem:[%s480_s28 + $0x30] sm:$0xff] %v536_v6  ;;  %539 = vst [vmem:[%s480_s28 + $0x38] sm:$0xff] %v538_v7 }
  0x4b PF: > { %p12640_p5 = scmp.ne.s32.totalorder %s12636_s19, 0 }
  0x4d   : > { %562 = sbr.rel (%p12640_p5) target bundleno = 15809 (0x3dc1), region = 114 }
  0x54   : > { %s10719_s0 = sand.u32 1, %s10514_s22   ;;  %p12641_p6 = scmp.eq.s32.totalorder %s10645_s25, 0 }
  0x55   : > { %s8648_s17 = sshll.u32 %s10719_s0, 6 }
  0x56   : > { %s10724_s21 = scalar_lea.vmem [#allocation2], %s8648_s17 }
  0x57   : > { %10501 = dma.done.wait (%p12641_p6), [#allocation4], 7680   ;;  %p12642_p10 = pmov %p12641_p6 }
  0x58   : > { %p630_p11 = scmp.lt.s32.totalorder %s10645_s25, 1  ;;  %v12612_v8 = vmov 0.0   ;;  %vm10528_vm0 = vmmov 0   ;;  %vm646_vm1 = vcmask 1043456   ;;  %s12643_s1 = sld [smem:[#allocation19_spill]]  ;;  %vm642_vm2 = vcmask 31744  }
  0x59   : > { %10503 = vsyncadd (%p12642_p10), [#allocation4], 4294959616  ;;  %9274 = vmatprep.subr.mxu1 %v12612_v8  ;;  %9276 = vmatprep.mubr.msk.f32.mxu1 %vm10528_vm0, %v12612_v8  ;;  %v641_v9 = vld [vmem:[%s12581_s3] sm:$0xf]  ;;  %v12606_v11 = vmov 1   ;;  %s10530_s27 = smov 124   ;;  %v906_v27 = vlaneseq }
  0x5a   : > { %s10735_s14 = scalar_select %p630_p11, %s10645_s25, 1  ;;  %894 = vmatprep.mubr.f32.mxu0 %v12612_v8  ;;  %9275 = vmatpush3.msk.msra.mxu1 %vm646_vm1, %v641_v9  ;;  %v10760_v17 = vld [vmem:[%s12583_s5] sm:$0xff]  ;;  %v10765_v18 = vld [vmem:[%s12583_s5 + $0x8] sm:$0xff]  ;;  %vm734_vm3 = vcmask 15360   ;;  %v10531_v28 = vmov 1983009808  }
  0x5b   : > { %10329 = vset.pattern.permute.xlu0 %v12606_v11  ;;  %v10769_v19 = vcombine.high %v10760_v17, %v10760_v17  ;;  %v10773_v20 = vcombine.high %v10765_v18, %v10765_v18  ;;  %v640_v21 = vld [vmem:[%s10724_s21] sm:$0xff]  ;;  %v904_v29 = vunpack.c.l.s4 %v10531_v28  ;;  %v10793_v30 = vshrl.u32 %v906_v27, 7  ;;  %v1120_v41 = vld [vmem:[#allocation3 + $0x88] sm:$0xff]  ;;  %v1121_v52 = vld [vmem:[#allocation3 + $0x90] sm:$0xff]  ;;  %s10533_s30 = smov 88   ;;  %s10534_s18 = smov 40  }
  0x5c   : > { %s8652_s19 = sshll.u32 %s10735_s14, 3  ;;  %v741_v26 = vld [vmem:[%s12582_s4] sm:$0xff]  ;;  %vm922_vm4 = vcmask 1041408   ;;  %v12610_v45 = vmov 0.0|0.0   ;;  %v1136_v49 = vld [vmem:[#allocation3 + $0x108] sm:$0xff]  ;;  %v1122_v53 = vld [vmem:[#allocation3 + $0x98] sm:$0xff] }
  0x5d   : > { %8656 = vmatprep.subr.msk.mxu1 %vm646_vm1, %v10769_v19  ;;  %8659 = vmatprep.subr.msk.mxu0 %vm646_vm1, %v10773_v20  ;;  %v905_v31 = vunpack.c.0.s8 %v904_v29  ;;  %v902_v32 = vcombine.high %v741_v26, %v741_v26  ;;  %v1119_v40 = vld [vmem:[#allocation3 + $0x80] sm:$0xff]  ;;  %v1104_v51 = vld [vmem:[#allocation3 + $0x8] sm:$0xff]  ;;  %v1137_v56 = vld [vmem:[#allocation3 + $0x110] sm:$0xff]  ;;  %v10833_v60 = vpack.c.bf16 %v1122_v53, %v1121_v52  ;;  %vm1170_vm5 = vcmask 785408   ;;  %s637_s15 = scalar_lea.vmem %s12580_s2, %s8652_s19  ;;  %s10536_s14 = smov 108  }
  0x5e   : > { %s633_s29 = scalar_lea.vmem %s12643_s1, %s8652_s19  ;;  %8660 = vmatpush1.msk.msra.mxu0 %vm646_vm1, %v10765_v18  ;;  %v10816_v44 = vpack.c.bf16 %v1120_v41, %v1119_v40  ;;  %v1135_v48 = vld [vmem:[#allocation3 + $0x100] sm:$0xff]  ;;  %v1138_v59 = vld [vmem:[#allocation3 + $0x118] sm:$0xff]  ;;  %v1105_v61 = vld [vmem:[#allocation3 + $0x10] sm:$0xff]  ;;  %vm1324_vm6 = vcmask 162816   ;;  %s10537_s28 = smov 20   ;;  %vm1530_vm7 = vcmask 261120  }
  0x5f   : > { %v638_v10 = vld [vmem:[%s633_s29] sm:$0xff]  ;;  %v10796_v33 = vsub.s32 %v905_v31, %v10793_v30  ;;  %v10828_v55 = vpack.c.bf16 %v1136_v49, %v1135_v48  ;;  %v1106_v62 = vld [vmem:[#allocation3 + $0x18] sm:$0xff]  ;;  %v1124_v0 = vld [vmem:[#allocation3 + $0xa8] sm:$0xff]  ;;  %v10838_v1 = vpack.c.bf16 %v1138_v59, %v1137_v56  ;;  %s12647_s29 = sld [smem:[#allocation20_spill]] }
  0x60   : > { %9277 = vmatmul.mubr.msk.f32.vlgmr.msra.gmra.mrb[0].mxu1 %vm642_vm2, %v638_v10  ;;  %v1103_v50 = vld [vmem:[#allocation3] sm:$0xff]  ;;  %v10841_v3 = vpack.c.bf16 %v1106_v62, %v1105_v61  ;;  %v1140_v4 = vld [vmem:[#allocation3 + $0x128] sm:$0xff]  ;;  %v1125_v9 = vld [vmem:[#allocation3 + $0xb0] sm:$0xff] }
  0x61   : > { %823 = vmatprep.mubr.f32.mxu1 %v12612_v8  ;;  %8657 = vmatpush1.msk.msra.mxu1 %vm646_vm1, %v10760_v17  ;;  %12644 = vst [vmem:[#allocation15_spill] sm:$0xff] %v10796_v33  ;;  %v10799_v34 = vrot.slane %v741_v26, %v10796_v33  ;;  %v10802_v35 = vrot.slane %v902_v32, %v10796_v33  ;;  %v1123_v63 = vld [vmem:[#allocation3 + $0xa0] sm:$0xff]  ;;  %v1108_v7 = vld [vmem:[#allocation3 + $0x28] sm:$0xff]  ;;  %v1129_v40 = vld [vmem:[#allocation3 + $0xd0] sm:$0xff] }
  0x62   : > { %v10830_v57 = vpack.c.bf16 %v1104_v51, %v1103_v50  ;;  %v1139_v2 = vld [vmem:[#allocation3 + $0x120] sm:$0xff]  ;;  %v10845_v5 = vpack.c.bf16 %v1124_v0, %v1123_v63  ;;  %v1128_v26 = vld [vmem:[#allocation3 + $0xc8] sm:$0xff]  ;;  %v1130_v41 = vld [vmem:[#allocation3 + $0xd8] sm:$0xff] }
  0x63   : > { %v10806_v36 = vcombine.high %v10799_v34, %v10799_v34  ;;  %v10810_v37 = vcombine.high %v10802_v35, %v10802_v35  ;;  %v1107_v6 = vld [vmem:[#allocation3 + $0x20] sm:$0xff]  ;;  %v1144_v31 = vld [vmem:[#allocation3 + $0x148] sm:$0xff]  ;;  %v10875_v48 = vpack.c.bf16 %v1130_v41, %v1129_v40  ;;  %v1113_v49 = vld [vmem:[#allocation3 + $0x50] sm:$0xff] }
  0x64   : > { %v1143_v28 = vld [vmem:[#allocation3 + $0x140] sm:$0xff]  ;;  %v1114_v50 = vld [vmem:[#allocation3 + $0x58] sm:$0xff]  ;;  %v1132_v52 = vld [vmem:[#allocation3 + $0xe8] sm:$0xff] }
  0x65   : > { %8662 = vmatprep.subr.msk.mxu1 %vm922_vm4, %v10806_v36  ;;  %8665 = vmatprep.subr.msk.mxu0 %vm922_vm4, %v10810_v37  ;;  %v1131_v51 = vld [vmem:[#allocation3 + $0xe0] sm:$0xff]  ;;  %v10881_v56 = vpack.c.bf16 %v1114_v50, %v1113_v49  ;;  %v1116_v62 = vld [vmem:[#allocation3 + $0x68] sm:$0xff]  ;;  %v1117_v50 = vld [vmem:[#allocation3 + $0x70] sm:$0xff] }
  0x66   : > { %v10885_v59 = vpack.c.bf16 %v1132_v52, %v1131_v51  ;;  %v1115_v61 = vld [vmem:[#allocation3 + $0x60] sm:$0xff]  ;;  %v1160_v40 = vld [vmem:[#allocation3 + $0x1c8] sm:$0xff]  ;;  %v1118_v51 = vld [vmem:[#allocation3 + $0x78] sm:$0xff] }
  0x67   : > { %v10891_v0 = vpack.c.bf16 %v1116_v62, %v1115_v61  ;;  %v10923_v52 = vpack.c.bf16 %v1118_v51, %v1117_v50  ;;  %v10935_v62 = vsub.s32 0, %v10793_v30 }
 0x133   : > { %v10751_v12 = vpop.f32.mrb[0].mxu1 }
 0x134   : > { %729 = vrot.lane.b32.xlu0 %v10751_v12, %s10530_s27  ;;  %v9278_v13 = vpop.f32.mrb[1].mxu1  ;;  %v720_v14 = vsub.f32 %v638_v10, %v10751_v12  ;;  %v1126_v10 = vld [vmem:[#allocation3 + $0xb8] sm:$0xff] }
 0x135   : > { %v10848_v13 = vpack.c.bf16 %v1140_v4, %v1139_v2  ;;  %v1149_v2 = vld [vmem:[#allocation3 + $0x170] sm:$0xff]  ;;  %v1150_v4 = vld [vmem:[#allocation3 + $0x178] sm:$0xff] }
 0x136   : > { %v721_v15 = vmul.f32 %v720_v14, %v720_v14 }
 0x138   : > { %v722_v16 = vsel %vm642_vm2, %v721_v15, 0.0  ;;  %v10851_v15 = vpack.c.bf16 %v1108_v7, %v1107_v6  ;;  %v10896_v6 = vpack.c.bf16 %v1150_v4, %v1149_v2  ;;  %v1151_v7 = vld [vmem:[#allocation3 + $0x180] sm:$0xff]  ;;  %v10938_v2 = vsub.s32 2, %v10793_v30 }
 0x139   : > { %v1073_v4 = vld [vmem:[%s12584_s6] sm:$0xf] }
 0x153   : > { %723 = vadd.xlane.f32.xlu0 %v722_v16  ;;  %v1142_v16 = vld [vmem:[#allocation3 + $0x138] sm:$0xff] }
 0x1a6   : > { %v730_v22 = vpop.permute.xlu0 %729 }
 0x1a7   : > { %v10784_v23 = vsub.f32 %v640_v21, %v730_v22  ;;  %v10855_v21 = vpack.c.bf16 %v1126_v10, %v1125_v9  ;;  %v1109_v22 = vld [vmem:[#allocation3 + $0x30] sm:$0xff]  ;;  %v1152_v9 = vld [vmem:[#allocation3 + $0x188] sm:$0xff] }
 0x1a8   : > { %v10901_v10 = vpack.c.bf16 %v1152_v9, %v1151_v7  ;;  %v10944_v7 = vsub.s32 1, %v10793_v30  ;;  %v10947_v9 = vsub.s32 3, %v10793_v30  ;;  %v1314_v30 = vld [vmem:[%s12587_s9] sm:$0xff] }
 0x1a9   : > { %1612 = vperm.xlu0 %10329, %v10784_v23   ;;  %v733_v24 = vmul.f32 %v10784_v23, %v10784_v23 }
 0x1aa   : > { %12645 = vst [vmem:[#allocation16_spill] sm:$0xff] %v10944_v7  ;;  %12646 = vst [vmem:[#allocation17_spill] sm:$0xff] %v10947_v9 }
 0x1ab   : > { %v735_v25 = vsel %vm734_vm3, %v733_v24, 0.0  ;;  %v1110_v24 = vld [vmem:[#allocation3 + $0x38] sm:$0xff] }
 0x1ac   : > { %736 = vadd.xlane.f32.xlu1 %v735_v25  ;;  %v1127_v25 = vld [vmem:[#allocation3 + $0xc0] sm:$0xff]  ;;  %v10861_v29 = vpack.c.bf16 %v1110_v24, %v1109_v22 }
 0x1ad   : > { %v10865_v32 = vpack.c.bf16 %v1128_v26, %v1127_v25  ;;  %v1155_v24 = vld [vmem:[#allocation3 + $0x1a0] sm:$0xff]  ;;  %v1156_v25 = vld [vmem:[#allocation3 + $0x1a8] sm:$0xff] }
 0x1ae   : > { %v10909_v26 = vpack.c.bf16 %v1156_v25, %v1155_v24  ;;  %v1090_v24 = vrot.slane %v1073_v4, %v10947_v9 }
 0x1e0   : > { %v724_v38 = vpop.xlane.xlu0 %723 }
 0x1e1   : > { %v725_v39 = vmax.f32 %v724_v38, 1e-24  ;;  %v1111_v38 = vld [vmem:[#allocation3 + $0x40] sm:$0xff] }
 0x1e3   : > { %10348 = vrsqrt.f32 %v725_v39  ;;  %v1112_v39 = vld [vmem:[#allocation3 + $0x48] sm:$0xff] }
 0x1ed   : > { %v10349_v42 = vpop.eup %10348 }
 0x1ee   : > { %v727_v43 = vmul.f32 %v10349_v42, %v720_v14  ;;  %v1141_v14 = vld [vmem:[#allocation3 + $0x130] sm:$0xff]  ;;  %v10868_v42 = vpack.c.bf16 %v1144_v31, %v1143_v28  ;;  %v1158_v31 = vld [vmem:[#allocation3 + $0x1b8] sm:$0xff] }
 0x1ef   : > { %v10858_v27 = vpack.c.bf16 %v1142_v16, %v1141_v14  ;;  %v1153_v14 = vld [vmem:[#allocation3 + $0x190] sm:$0xff]  ;;  %v1154_v16 = vld [vmem:[#allocation3 + $0x198] sm:$0xff] }
 0x1f0   : > { %8658 = vmatmul.mubr.msk.f32.vlgmr.msra.gmra.mrb[2].mxu1 %vm642_vm2, %v727_v43  ;;  %8661 = vmatmul.mubr.msk.f32.vlgmr.msra.gmra.mrb[0].mxu0 %vm642_vm2, %v727_v43  ;;  %v1145_v43 = vld [vmem:[#allocation3 + $0x150] sm:$0xff]  ;;  %v10905_v22 = vpack.c.bf16 %v1154_v16, %v1153_v14  ;;  %v1078_v14 = vrot.slane %v1073_v4, %v10935_v62  ;;  %v1082_v16 = vrot.slane %v1073_v4, %v10944_v7 }
 0x1f1   : > { %8663 = vmatpush1.msk.msra.mxu1 %vm922_vm4, %v10799_v34  ;;  %995 = vmatprep.mubr.f32.mxu1 %v12612_v8  ;;  %v1157_v28 = vld [vmem:[#allocation3 + $0x1b0] sm:$0xff] }
 0x1f2   : > { %8666 = vmatpush1.msk.msra.mxu0 %vm922_vm4, %v10802_v35  ;;  %1066 = vmatprep.mubr.f32.mxu0 %v12612_v8 }
 0x1f3   : > { %9578 = vmatprep.subr.bf16.mxu0 %v12610_v45  ;;  %9547 = vmatprep.subr.bf16.mxu1 %v10816_v44 }
 0x239   : > { %v737_v46 = vpop.xlane.xlu1 %736 }
 0x23a   : > { %v738_v47 = vmax.f32 %v737_v46, 1e-24  ;;  %v10871_v46 = vpack.c.bf16 %v1112_v39, %v1111_v38  ;;  %v10913_v38 = vpack.c.bf16 %v1158_v31, %v1157_v28  ;;  %v1159_v39 = vld [vmem:[#allocation3 + $0x1c0] sm:$0xff] }
 0x23b   : > { %v10918_v41 = vpack.c.bf16 %v1160_v40, %v1159_v39 }
 0x23c   : > { %10350 = vrsqrt.f32 %v738_v47  ;;  %v1146_v47 = vld [vmem:[#allocation3 + $0x158] sm:$0xff] }
 0x23d   : > { %v10878_v53 = vpack.c.bf16 %v1146_v47, %v1145_v43  ;;  %v1133_v43 = vld [vmem:[#allocation3 + $0xf0] sm:$0xff]  ;;  %v1134_v47 = vld [vmem:[#allocation3 + $0xf8] sm:$0xff] }
 0x23e   : > { %v10921_v49 = vpack.c.bf16 %v1134_v47, %v1133_v43  ;;  %v1315_v47 = vld [vmem:[%s12587_s9 + $0x8] sm:$0xff] }
 0x246   : > { %v10351_v54 = vpop.eup %10350 }
 0x247   : > { %v740_v58 = vmul.f32 %v10351_v54, %v10784_v23  ;;  %v1147_v54 = vld [vmem:[#allocation3 + $0x160] sm:$0xff] }
 0x249   : > { %8664 = vmatmul.mubr.msk.f32.vlgmr.msra.gmra.mrb[2].mxu1 %vm734_vm3, %v740_v58  ;;  %8667 = vmatmul.mubr.msk.f32.vlgmr.msra.gmra.mrb[0].mxu0 %vm734_vm3, %v740_v58  ;;  %v1148_v58 = vld [vmem:[#allocation3 + $0x168] sm:$0xff] }
 0x24a   : > { %9580 = vmatpush1.bf16.msra.mxu0 %v10828_v55  ;;  %9549 = vmatpush3.bf16.msra.mxu1 %v10830_v57  ;;  %v10888_v63 = vpack.c.bf16 %v1148_v58, %v1147_v54  ;;  %v1161_v54 = vld [vmem:[#allocation3 + $0x1d0] sm:$0xff]  ;;  %v1162_v58 = vld [vmem:[#allocation3 + $0x1d8] sm:$0xff] }
 0x24b   : > { %9581 = vmatprep.subr.bf16.mxu0 %v12610_v45  ;;  %9551 = vmatprep.subr.bf16.mxu1 %v10833_v60  ;;  %v10927_v61 = vpack.c.bf16 %v1162_v58, %v1161_v54 }
 0x24e   : > { %9583 = vmatpush1.bf16.msra.mxu0 %v10838_v1  ;;  %9553 = vmatpush3.bf16.msra.mxu1 %v10841_v3 }
 0x24f   : > { %9584 = vmatprep.subr.bf16.mxu0 %v12610_v45  ;;  %9555 = vmatprep.subr.bf16.mxu1 %v10845_v5 }
 0x252   : > { %9586 = vmatpush1.bf16.msra.mxu0 %v10848_v13  ;;  %9557 = vmatpush3.bf16.msra.mxu1 %v10851_v15 }
 0x253   : > { %9587 = vmatprep.subr.bf16.mxu0 %v12610_v45  ;;  %9559 = vmatprep.subr.bf16.mxu1 %v10855_v21 }
 0x256   : > { %9589 = vmatpush1.bf16.msra.mxu0 %v10858_v27  ;;  %9561 = vmatpush3.bf16.msra.mxu1 %v10861_v29 }
 0x257   : > { %9590 = vmatprep.subr.bf16.mxu0 %v12610_v45  ;;  %9563 = vmatprep.subr.bf16.mxu1 %v10865_v32 }
 0x25a   : > { %9592 = vmatpush1.bf16.msra.mxu0 %v10868_v42  ;;  %9565 = vmatpush3.bf16.msra.mxu1 %v10871_v46 }
 0x25b   : > { %9593 = vmatprep.subr.bf16.mxu0 %v12610_v45  ;;  %9567 = vmatprep.subr.bf16.mxu1 %v10875_v48 }
 0x25e   : > { %9595 = vmatpush1.bf16.msra.mxu0 %v10878_v53  ;;  %9569 = vmatpush3.bf16.msra.mxu1 %v10881_v56 }
 0x25f   : > { %9596 = vmatprep.subr.bf16.mxu0 %v12610_v45  ;;  %9571 = vmatprep.subr.bf16.mxu1 %v10885_v59 }
 0x262   : > { %9598 = vmatpush1.bf16.msra.mxu0 %v10888_v63  ;;  %9573 = vmatpush3.bf16.msra.mxu1 %v10891_v0 }
 0x263   : > { %9599 = vmatprep.subr.bf16.mxu0 %v12610_v45  ;;  %9575 = vmatprep.subr.bf16.mxu1 %v10921_v49 }
 0x266   : > { %9601 = vmatpush1.bf16.msra.mxu0 %v10896_v6  ;;  %9577 = vmatpush3.bf16.msra.mxu1 %v10923_v52 }
 0x267   : > { %9602 = vmatprep.subr.bf16.mxu0 %v12610_v45  ;;  %9620 = vmatprep.subr.bf16.mxu1 %v12610_v45 }
 0x26a   : > { %9604 = vmatpush1.bf16.msra.mxu0 %v10901_v10 }
 0x26b   : > { %9605 = vmatprep.subr.bf16.mxu0 %v12610_v45 }
 0x26e   : > { %9607 = vmatpush1.bf16.msra.mxu0 %v10905_v22 }
 0x26f   : > { %9608 = vmatprep.subr.bf16.mxu0 %v12610_v45 }
 0x272   : > { %9610 = vmatpush1.bf16.msra.mxu0 %v10909_v26 }
 0x273   : > { %9611 = vmatprep.subr.bf16.mxu0 %v12610_v45 }
 0x276   : > { %9613 = vmatpush1.bf16.msra.mxu0 %v10913_v38 }
 0x277   : > { %9614 = vmatprep.subr.bf16.mxu0 %v12610_v45 }
 0x27a   : > { %9616 = vmatpush1.bf16.msra.mxu0 %v10918_v41 }
 0x27b   : > { %9617 = vmatprep.subr.bf16.mxu0 %v12610_v45 }
 0x27e   : > { %9619 = vmatpush1.bf16.msra.mxu0 %v10927_v61 }
 0x27f   : > { %8685 = vmatprep.subr.msk.mxu0 %vm646_vm1, %v10773_v20  ;;  %v1086_v20 = vrot.slane %v1073_v4, %v10938_v2  ;;  %v10959_v4 = vpack.c.bf16 %v1315_v47, %v1314_v30 }
 0x31c   : > { %v997_v25 = vpop.f32.mrb[2].mxu1  ;;  %v1068_v28 = vpop.f32.mrb[0].mxu0 }
 0x31d   : > { %v1095_v31 = vadd.f32 %v1078_v14, %v997_v25  ;;  %v1097_v39 = vadd.f32 %v1086_v20, %v1068_v28  ;;  %v999_v40 = vpop.f32.mrb[3].mxu1  ;;  %v1070_v43 = vpop.f32.mrb[1].mxu0  ;;  %v1316_v20 = vld [vmem:[%s12587_s9 + $0x10] sm:$0xf] }
 0x31e   : > { %v1096_v50 = vadd.f32 %v1082_v16, %v999_v40  ;;  %v1098_v51 = vadd.f32 %v1090_v24, %v1070_v43  ;;  %v639_v16 = vld [vmem:[%s637_s15] sm:$0xff]  ;;  %s11072_s15 = scalar_lea.vmem [#allocation6], %s8648_s17 }
 0x31f   : > { %v1099_v14 = vmax.f32 %v1095_v31, 0.0  ;;  %v1101_v25 = vmax.f32 %v1097_v39, 0.0  ;;  %v10993_v43 = vld [vmem:[%s12588_s10] ss:$0 sm:$0xff] }
 0x320   : > { %v1100_v54 = vmax.f32 %v1096_v50, 0.0  ;;  %v1102_v58 = vmax.f32 %v1098_v51, 0.0 }
 0x322   : > { %1238 = vmatprep.mubr.f32.mxu1 %v1100_v54  ;;  %8669 = vmatprep.mubr.msk.f32.mxu0 %vm1170_vm5, %v1102_v58 }
 0x323   : > { %1239 = vmatmul.mubr.f32.vlgmr.msra.gmra.mrb[4].mxu1 %v1099_v14  ;;  %1309 = vmatmul.mubr.f32.vlgmr.msra.gmra.mrb[2].mxu0 %v1101_v25 }
 0x324   : > { %9622 = vmatpush3.bf16.msra.mxu1 %v10959_v4  ;;  %9285 = vmatprep.mubr.msk.f32.mxu1 %vm10528_vm0, %v12612_v8 }
 0x325   : > { %9283 = vmatprep.subr.mxu1 %v12612_v8  ;;  %8686 = vmatpush1.msk.msra.mxu0 %vm646_vm1, %v10765_v18  ;;  %v10987_v18 = vld [vmem:[%s12586_s8] ss:$0 sm:$0xff] }
 0x326   : > { %1875 = vmatprep.mubr.f32.mxu0 %v12612_v8  ;;  %8691 = vmatprep.subr.msk.mxu0 %vm922_vm4, %v10810_v37 }
 0x328   : > { %9284 = vmatpush3.msk.msra.mxu1 %vm646_vm1, %v1316_v20 }
 0x329   : > { %9286 = vmatmul.mubr.msk.f32.vlgmr.msra.gmra.mrb[6].mxu1 %vm1324_vm6, %v639_v16  ;;  %9623 = vmatprep.subr.bf16.mxu1 %v12610_v45 }
 0x32a   : > { %9294 = vmatprep.mubr.msk.f32.mxu1 %vm10528_vm0, %v12612_v8 }
 0x3f6   : > { %v8908_v24 = vpop.f32.mrb[4].mxu1  ;;  %v1310_v28 = vpop.f32.mrb[2].mxu0 }
 0x3f7   : > { %v8909_v31 = vpop.f32.mrb[5].mxu1  ;;  %v1312_v39 = vpop.f32.mrb[3].mxu0 }
 0x3f8   : > { %v8910_v40 = vadd.f32 %v8909_v31, %v8908_v24 }
 0x3fa   : > { %v1241_v37 = vadd.f32 %v8910_v40, %v10987_v18  ;;  %v12608_v40 = vmov 0  }
 0x3fb   : > { %10330 = vset.pattern.permute.xlu1 %v12608_v40 }
 0x3fc   : > { %v1311_v30 = vadd.f32 %v1310_v28, %v1241_v37  ;;  %v1397_v47 = vpop.f32.mrb[6].mxu1 }
 0x3fd   : > { %v1398_v50 = vadd.f32 %v10993_v43, %v1397_v47  ;;  %v9287_v51 = vpop.f32.mrb[7].mxu1  ;;  %v1430_v47 = vld [vmem:[%s12589_s11] sm:$0xff] }
 0x3ff   : > { %1409 = vrot.lane.b32.xlu1 %v1398_v50, %s10533_s30  ;;  %v1401_v54 = vadd.f32 %v1398_v50, %v1311_v30  ;;  %v1431_v50 = vld [vmem:[%s12589_s11 + $0x8] sm:$0xff] }
 0x400   : > { %v11006_v51 = vpack.c.bf16 %v1431_v50, %v1430_v47  ;;  %v11050_v50 = vld [vmem:[%s12590_s12] ss:$0 sm:$0xff] }
 0x401   : > { %v8673_v58 = vmul.f32 -1.442695, %v1401_v54 }
 0x402   : > { %9625 = vmatpush3.bf16.msra.mxu1 %v11006_v51 }
 0x403   : > { %10352 = vpow2.f32 %v8673_v58  ;;  %9292 = vmatprep.subr.mxu1 %v12612_v8 }
 0x40d   : > { %v10353_v14 = vpop.eup %10352 }
 0x40e   : > { %v1405_v25 = vadd.f32 1.0, %v10353_v14 }
 0x410   : > { %10354 = vrcp.f32 %v1405_v25 }
 0x41a   : > { %v10355_v20 = vpop.eup %10354 }
 0x41b   : > { %v1419_v58 = vsub.f32 1.0, %v10355_v20 }
 0x471   : > { %v1410_v24 = vpop.permute.xlu1 %1409 }
 0x472   : > { %v1412_v31 = vmul.f32 %v10355_v20, %v1410_v24 }
 0x474   : > { %1414 = vrot.lane.b32.xlu1 %v1412_v31, %s10534_s18 }
 0x4e6   : > { %v1415_v28 = vpop.permute.xlu1 %1414 }
 0x4e7   : > { %v1417_v39 = vadd.f32 %v1415_v28, %v1311_v30  ;;  %v1432_v30 = vld [vmem:[%s12589_s11 + $0x10] sm:$0xf]  ;;  %v1520_v28 = vld [vmem:[%s12591_s13 + $0x8] sm:$0xff] }
 0x4e8   : > { %9293 = vmatpush3.msk.msra.mxu1 %vm646_vm1, %v1432_v30 }
 0x4e9   : > { %10356 = vtanh.f32 %v1417_v39  ;;  %9626 = vmatprep.subr.bf16.mxu1 %v12610_v45 }
 0x4f3   : > { %v10357_v37 = vpop.eup %10356 }
 0x4f4   : > { %1421 = vrot.lane.b32.xlu1 %v10357_v37, %s10536_s14  ;;  %v1522_v37 = vld [vmem:[%s12591_s13 + $0x18] sm:$0xff] }
 0x4f8   : > { %1425 = vrot.lane.b32.xlu1 %v639_v16, %s10537_s28  ;;  %v1519_v16 = vld [vmem:[%s12591_s13] sm:$0xff]  ;;  %s12659_s28 = sld [smem:[#allocation13_spill]] }
 0x4f9   : > { %v11027_v39 = vpack.c.bf16 %v1520_v28, %v1519_v16 }
 0x4fe   : > { %p12660_p12 = scmp.ne.s32.totalorder %s12659_s28, 0 }
 0x4ff   : > { %s12661_s16 = sld [smem:[#allocation21_spill]] (%p12660_p12) }
 0x566   : > { %v1422_v54 = vpop.permute.xlu1 %1421 }
 0x567   : > { %v1424_v25 = vmul.f32 %v1422_v54, %v1419_v58 }
 0x56a   : > { %v1426_v14 = vpop.permute.xlu1 %1425 }
 0x56b   : > { %v1428_v24 = vmul.f32 %v10355_v20, %v1426_v14 }
 0x56d   : > { %v11015_v31 = vadd.f32 %v1428_v24, %v1424_v25  ;;  %v1625_v25 = vld [vmem:[%s12581_s3] sm:$0xf] }
 0x56e   : > { %v11063_v24 = vld [vmem:[%s12647_s29] ss:$0 sm:$0xff] }
 0x56f   : > { %1441 = vrot.lane.b32.xlu1 %v11015_v31, %s10536_s14 }
 0x573   : > { %1607 = vperm.xlu1 %10330, %v10784_v23   ;;  %v1521_v23 = vld [vmem:[%s12591_s13 + $0x10] sm:$0xff] }
 0x574   : > { %v11043_v47 = vpack.c.bf16 %v1522_v37, %v1521_v23 }
 0x577   : > { %10331 = vset.pattern.permute.xlu1 %v12606_v11 }
 0x5e1   : > { %v11029_v20 = vpop.permute.xlu1 %1441 }
 0x5e2   : > { %9295 = vmatmul.mubr.msk.f32.vlgmr.msra.gmra.mrb[8].mxu1 %vm1324_vm6, %v11029_v20 }
 0x5e3   : > { %9628 = vmatpush3.bf16.msra.mxu1 %v11027_v39  ;;  %9305 = vmatprep.mubr.msk.f32.mxu1 %vm10528_vm0, %v12612_v8 }
 0x5e4   : > { %9629 = vmatprep.subr.bf16.mxu1 %v12610_v45 }
 0x5e7   : > { %9631 = vmatpush3.bf16.msra.mxu1 %v11043_v47 }
 0x5e8   : > { %9308 = vmatprep.subr.mxu1 %v12612_v8 }
 0x6b5   : > { %v1514_v30 = vpop.f32.mrb[8].mxu1 }
 0x6b6   : > { %v1515_v54 = vadd.f32 %v11050_v50, %v1514_v30  ;;  %v9296_v58 = vpop.f32.mrb[9].mxu1  ;;  %v1613_v30 = vpop.permute.xlu0 %1612 }
 0x6b7   : > { %v1608_v58 = vpop.permute.xlu1 %1607 }
 0x6b8   : > { %v1518_v14 = vmax.f32 %v1515_v54, 0.0 }
 0x6ba   : > { %9306 = vmatmul.mubr.msk.f32.vlgmr.msra.gmra.mrb[10].mxu1 %vm1530_vm7, %v1518_v14 }
 0x6bb   : > { %9310 = vmatprep.mubr.msk.f32.mxu1 %vm10528_vm0, %v12612_v8  ;;  %9309 = vmatpush3.msk.msra.mxu1 %vm646_vm1, %v1625_v25 }
 0x6bc   : > { %8682 = vmatprep.subr.msk.mxu1 %vm646_vm1, %v10769_v19 }
 0x78d   : > { %v1600_v16 = vpop.f32.mrb[10].mxu1 }
 0x78e   : > { %v1601_v28 = vadd.f32 %v11063_v24, %v1600_v16  ;;  %v9307_v23 = vpop.f32.mrb[11].mxu1 }
 0x78f   : > { %v8679_v23 = vld [vmem:[%s10724_s21 + $0x8] sm:$0xff] }
 0x790   : > { %v1604_v37 = vmul.f32 0.0001, %v1601_v28 }
 0x792   : > { %v1615_v54 = vmul.f32 %v1613_v30, %v1604_v37  ;;  %v1610_v14 = vmul.f32 %v1608_v58, %v1604_v37 }
 0x794   : > { %1617 = vrot.lane.b32.xlu1 %v1615_v54, %s10530_s27 }
 0x806   : > { %v1618_v25 = vpop.permute.xlu1 %1617 }
 0x807   : > { %v1620_v11 = vadd.f32 %v1618_v25, %v1610_v14 }
 0x809   : > { %v1621_v40 = vadd.f32 %v1620_v11, %v10751_v12 }
 0x80b   : > { %1622 = vst.msk [vmem:[%s11072_s15] sm:$0xff] %vm642_vm2, %v1621_v40  ;;  %9311 = vmatmul.mubr.msk.f32.vlgmr.msra.gmra.mrb[12].mxu1 %vm642_vm2, %v1621_v40 }
 0x80c   : > { %8683 = vmatpush1.msk.msra.mxu1 %vm646_vm1, %v10760_v17  ;;  %1804 = vmatprep.mubr.f32.mxu1 %v12612_v8 }
 0x80d   : > { %8688 = vmatprep.subr.msk.mxu1 %vm922_vm4, %v10806_v36 }
 0x8de   : > { %v11082_v19 = vpop.f32.mrb[12].mxu1 }
 0x8df   : > { %1711 = vrot.lane.b32.xlu1 %v11082_v19, %s10530_s27  ;;  %v9312_v11 = vpop.f32.mrb[13].mxu1  ;;  %v1702_v12 = vsub.f32 %v1621_v40, %v11082_v19 }
 0x8e1   : > { %v1703_v16 = vmul.f32 %v1702_v12, %v1702_v12 }
 0x8e3   : > { %v1704_v28 = vsel %vm642_vm2, %v1703_v16, 0.0 }
 0x903   : > { %1705 = vadd.xlane.f32.xlu1 %v1704_v28 }
 0x951   : > { %v1712_v37 = vpop.permute.xlu1 %1711 }
 0x952   : > { %v11089_v17 = vsub.f32 %v8679_v23, %v1712_v37  ;;  %v2404_v37 = vld [vmem:[%s12589_s11 + $0x10] sm:$0xf] }
 0x954   : > { %v1715_v30 = vmul.f32 %v11089_v17, %v11089_v17 }
 0x956   : > { %v1716_v36 = vsel %vm734_vm3, %v1715_v30, 0.0 }
 0x957   : > { %1717 = vadd.xlane.f32.xlu0 %v1716_v36 }
 0x990   : > { %v1706_v54 = vpop.xlane.xlu1 %1705 }
 0x991   : > { %v1707_v58 = vmax.f32 %v1706_v54, 1e-24 }
 0x993   : > { %10358 = vrsqrt.f32 %v1707_v58 }
 0x99d   : > { %v10359_v14 = vpop.eup %10358 }
 0x99e   : > { %v1709_v25 = vmul.f32 %v10359_v14, %v1702_v12 }
 0x9a0   : > { %8684 = vmatmul.mubr.msk.f32.vlgmr.msra.gmra.mrb[14].mxu1 %vm642_vm2, %v1709_v25  ;;  %8687 = vmatmul.mubr.msk.f32.vlgmr.msra.gmra.mrb[4].mxu0 %vm642_vm2, %v1709_v25 }
 0x9a1   : > { %8689 = vmatpush1.msk.msra.mxu1 %vm922_vm4, %v10799_v34  ;;  %1975 = vmatprep.mubr.f32.mxu1 %v12612_v8  ;;  %v2053_v34 = vld [vmem:[%s12584_s6] sm:$0xf] }
 0x9a2   : > { %8692 = vmatpush1.msk.msra.mxu0 %vm922_vm4, %v10802_v35  ;;  %2046 = vmatprep.mubr.f32.mxu0 %v12612_v8  ;;  %v2058_v35 = vrot.slane %v2053_v34, %v10935_v62 }
 0x9a3   : > { %9664 = vmatprep.subr.bf16.mxu0 %v12610_v45  ;;  %9633 = vmatprep.subr.bf16.mxu1 %v10816_v44  ;;  %v2066_v44 = vrot.slane %v2053_v34, %v10938_v2 }
 0x9e4   : > { %v1718_v40 = vpop.xlane.xlu0 %1717 }
 0x9e5   : > { %v1719_v11 = vmax.f32 %v1718_v40, 1e-24 }
 0x9e7   : > { %10360 = vrsqrt.f32 %v1719_v11 }
 0x9f1   : > { %v10361_v12 = vpop.eup %10360 }
 0x9f2   : > { %v1721_v16 = vmul.f32 %v10361_v12, %v11089_v17 }
 0x9f4   : > { %8690 = vmatmul.mubr.msk.f32.vlgmr.msra.gmra.mrb[14].mxu1 %vm734_vm3, %v1721_v16  ;;  %8693 = vmatmul.mubr.msk.f32.vlgmr.msra.gmra.mrb[4].mxu0 %vm734_vm3, %v1721_v16 }
 0x9f5   : > { %9666 = vmatpush1.bf16.msra.mxu0 %v10828_v55  ;;  %9635 = vmatpush3.bf16.msra.mxu1 %v10830_v57  ;;  %v2062_v55 = vrot.slane %v2053_v34, %v10944_v7  ;;  %v2070_v57 = vrot.slane %v2053_v34, %v10947_v9 }
 0x9f6   : > { %9667 = vmatprep.subr.bf16.mxu0 %v12610_v45  ;;  %9637 = vmatprep.subr.bf16.mxu1 %v10833_v60 }
 0x9f9   : > { %9669 = vmatpush1.bf16.msra.mxu0 %v10838_v1  ;;  %9639 = vmatpush3.bf16.msra.mxu1 %v10841_v3 }
 0x9fa   : > { %9670 = vmatprep.subr.bf16.mxu0 %v12610_v45  ;;  %9641 = vmatprep.subr.bf16.mxu1 %v10845_v5 }
 0x9fd   : > { %9672 = vmatpush1.bf16.msra.mxu0 %v10848_v13  ;;  %9643 = vmatpush3.bf16.msra.mxu1 %v10851_v15 }
 0x9fe   : > { %9673 = vmatprep.subr.bf16.mxu0 %v12610_v45  ;;  %9645 = vmatprep.subr.bf16.mxu1 %v10855_v21 }
 0xa01   : > { %9675 = vmatpush1.bf16.msra.mxu0 %v10858_v27  ;;  %9647 = vmatpush3.bf16.msra.mxu1 %v10861_v29 }
 0xa02   : > { %9676 = vmatprep.subr.bf16.mxu0 %v12610_v45  ;;  %9649 = vmatprep.subr.bf16.mxu1 %v10865_v32 }
 0xa05   : > { %9678 = vmatpush1.bf16.msra.mxu0 %v10868_v42  ;;  %9651 = vmatpush3.bf16.msra.mxu1 %v10871_v46 }
 0xa06   : > { %9679 = vmatprep.subr.bf16.mxu0 %v12610_v45  ;;  %9653 = vmatprep.subr.bf16.mxu1 %v10875_v48  ;;  %v2295_v48 = vld [vmem:[%s12587_s9 + $0x10] sm:$0xf] }
 0xa09   : > { %9681 = vmatpush1.bf16.msra.mxu0 %v10878_v53  ;;  %9655 = vmatpush3.bf16.msra.mxu1 %v10881_v56 }
 0xa0a   : > { %9682 = vmatprep.subr.bf16.mxu0 %v12610_v45  ;;  %9657 = vmatprep.subr.bf16.mxu1 %v10885_v59 }
 0xa0d   : > { %9684 = vmatpush1.bf16.msra.mxu0 %v10888_v63  ;;  %9659 = vmatpush3.bf16.msra.mxu1 %v10891_v0 }
 0xa0e   : > { %9685 = vmatprep.subr.bf16.mxu0 %v12610_v45  ;;  %9661 = vmatprep.subr.bf16.mxu1 %v10921_v49 }
 0xa11   : > { %9687 = vmatpush1.bf16.msra.mxu0 %v10896_v6  ;;  %9663 = vmatpush3.bf16.msra.mxu1 %v10923_v52 }
 0xa12   : > { %9688 = vmatprep.subr.bf16.mxu0 %v12610_v45  ;;  %9706 = vmatprep.subr.bf16.mxu1 %v12610_v45 }
 0xa15   : > { %9690 = vmatpush1.bf16.msra.mxu0 %v10901_v10 }
 0xa16   : > { %9691 = vmatprep.subr.bf16.mxu0 %v12610_v45 }
 0xa19   : > { %9693 = vmatpush1.bf16.msra.mxu0 %v10905_v22 }
 0xa1a   : > { %9694 = vmatprep.subr.bf16.mxu0 %v12610_v45 }
 0xa1d   : > { %9696 = vmatpush1.bf16.msra.mxu0 %v10909_v26 }
 0xa1e   : > { %9697 = vmatprep.subr.bf16.mxu0 %v12610_v45 }
 0xa21   : > { %9699 = vmatpush1.bf16.msra.mxu0 %v10913_v38 }
 0xa22   : > { %9700 = vmatprep.subr.bf16.mxu0 %v12610_v45 }
 0xa25   : > { %9702 = vmatpush1.bf16.msra.mxu0 %v10918_v41 }
 0xa26   : > { %9703 = vmatprep.subr.bf16.mxu0 %v12610_v45 }
 0xa29   : > { %9705 = vmatpush1.bf16.msra.mxu0 %v10927_v61 }
 0xac7   : > { %v1977_v60 = vpop.f32.mrb[14].mxu1  ;;  %v2048_v1 = vpop.f32.mrb[4].mxu0 }
 0xac8   : > { %v2075_v3 = vadd.f32 %v2058_v35, %v1977_v60  ;;  %v2077_v5 = vadd.f32 %v2066_v44, %v2048_v1  ;;  %v1979_v13 = vpop.f32.mrb[15].mxu1  ;;  %v2050_v15 = vpop.f32.mrb[5].mxu0 }
 0xac9   : > { %v2076_v21 = vadd.f32 %v2062_v55, %v1979_v13  ;;  %v2078_v27 = vadd.f32 %v2070_v57, %v2050_v15 }
 0xaca   : > { %v2079_v42 = vmax.f32 %v2075_v3, 0.0  ;;  %v2081_v46 = vmax.f32 %v2077_v5, 0.0 }
 0xacb   : > { %v2080_v29 = vmax.f32 %v2076_v21, 0.0  ;;  %v2082_v32 = vmax.f32 %v2078_v27, 0.0  ;;  %v11231_v21 = vld [vmem:[%s12583_s5 + $0x8] sm:$0xff] }
 0xacd   : > { %2217 = vmatprep.mubr.f32.mxu1 %v2080_v29  ;;  %8695 = vmatprep.mubr.msk.f32.mxu0 %vm1170_vm5, %v2082_v32  ;;  %v11239_v29 = vcombine.high %v11231_v21, %v11231_v21  ;;  %v8706_v32 = vld [vmem:[%s10724_s21 + $0x10] sm:$0xff] }
 0xace   : > { %2218 = vmatmul.mubr.f32.vlgmr.msra.gmra.mrb[16].mxu1 %v2079_v42  ;;  %2288 = vmatmul.mubr.f32.vlgmr.msra.gmra.mrb[6].mxu0 %v2081_v46 }
 0xacf   : > { %9708 = vmatpush3.bf16.msra.mxu1 %v10959_v4  ;;  %9319 = vmatprep.mubr.msk.f32.mxu1 %vm10528_vm0, %v12612_v8 }
 0xad0   : > { %9317 = vmatprep.subr.mxu1 %v12612_v8  ;;  %2847 = vmatprep.mubr.f32.mxu0 %v12612_v8 }
 0xad1   : > { %8712 = vmatprep.subr.msk.mxu0 %vm646_vm1, %v11239_v29 }
 0xad2   : > { %8713 = vmatpush1.msk.msra.mxu0 %vm646_vm1, %v11231_v21 }
 0xad3   : > { %9318 = vmatpush3.msk.msra.mxu1 %vm646_vm1, %v2295_v48 }
 0xad4   : > { %9320 = vmatmul.mubr.msk.f32.vlgmr.msra.gmra.mrb[18].mxu1 %vm1324_vm6, %v11029_v20  ;;  %9709 = vmatprep.subr.bf16.mxu1 %v12610_v45 }
 0xad5   : > { %9711 = vmatpush3.bf16.msra.mxu1 %v11006_v51  ;;  %9328 = vmatprep.mubr.msk.f32.mxu1 %vm10528_vm0, %v12612_v8 }
 0xad6   : > { %9326 = vmatprep.subr.mxu1 %v12612_v8 }
 0xad9   : > { %9327 = vmatpush3.msk.msra.mxu1 %vm646_vm1, %v2404_v37  ;;  %v3073_v37 = vld [vmem:[#allocation3 + $0x90] sm:$0xff] }
 0xada   : > { %9712 = vmatprep.subr.bf16.mxu1 %v12610_v45 }
 0xba1   : > { %v8958_v53 = vpop.f32.mrb[16].mxu1  ;;  %v2289_v56 = vpop.f32.mrb[6].mxu0 }
 0xba2   : > { %v8959_v59 = vpop.f32.mrb[17].mxu1  ;;  %v2291_v63 = vpop.f32.mrb[7].mxu0 }
 0xba3   : > { %v8960_v0 = vadd.f32 %v8959_v59, %v8958_v53 }
 0xba5   : > { %v2220_v6 = vadd.f32 %v8960_v0, %v10987_v18 }
 0xba7   : > { %v2290_v10 = vadd.f32 %v2289_v56, %v2220_v6  ;;  %v2372_v22 = vpop.f32.mrb[18].mxu1  ;;  %v2694_v56 = vld [vmem:[%s12582_s4] sm:$0xff] }
 0xba8   : > { %v2373_v26 = vadd.f32 %v10993_v43, %v2372_v22  ;;  %v9321_v38 = vpop.f32.mrb[19].mxu1  ;;  %v12648_v43 = vmov 0   ;;  %v11259_v59 = vrot.slane %v2694_v56, %v10796_v33  ;;  %v2855_v63 = vcombine.high %v2694_v56, %v2694_v56  ;;  %v3079_v56 = vld [vmem:[#allocation3 + $0xc0] sm:$0xff] }
 0xba9   : > { %v3071_v38 = vld [vmem:[#allocation3 + $0x80] sm:$0xff] }
 0xbaa   : > { %2384 = vrot.lane.b32.xlu1 %v2373_v26, %s10533_s30  ;;  %v2376_v41 = vadd.f32 %v2373_v26, %v2290_v10  ;;  %v11263_v0 = vcombine.high %v11259_v59, %v11259_v59  ;;  %v11266_v6 = vrot.slane %v2855_v63, %v10796_v33  ;;  %v3080_v63 = vld [vmem:[#allocation3 + $0xc8] sm:$0xff] }
 0xbac   : > { %v8699_v49 = vmul.f32 -1.442695, %v2376_v41  ;;  %v3072_v41 = vld [vmem:[#allocation3 + $0x88] sm:$0xff] }
 0xbae   : > { %10362 = vpow2.f32 %v8699_v49 }
 0xbb8   : > { %v10363_v52 = vpop.eup %10362 }
 0xbb9   : > { %v2380_v61 = vadd.f32 1.0, %v10363_v52 }
 0xbbb   : > { %10364 = vrcp.f32 %v2380_v61  ;;  %v11276_v61 = vpack.c.bf16 %v3072_v41, %v3071_v38  ;;  %v3096_v41 = vld [vmem:[#allocation3 + $0x148] sm:$0xff] }
 0xbc5   : > { %v10365_v4 = vpop.eup %10364 }
 0xbc6   : > { %v2394_v30 = vsub.f32 1.0, %v10365_v4  ;;  %v2400_v54 = vmul.f32 %v10365_v4, %v11015_v31 }
 0xc1c   : > { %v2385_v51 = vpop.permute.xlu1 %2384 }
 0xc1d   : > { %v2387_v20 = vmul.f32 %v10365_v4, %v2385_v51 }
 0xc1f   : > { %2389 = vrot.lane.b32.xlu1 %v2387_v20, %s10534_s18  ;;  %v3087_v20 = vld [vmem:[#allocation3 + $0x100] sm:$0xff] }
 0xc91   : > { %v2390_v28 = vpop.permute.xlu1 %2389 }
 0xc92   : > { %v2392_v18 = vadd.f32 %v2390_v28, %v2290_v10  ;;  %v11272_v10 = vcombine.high %v11266_v6, %v11266_v6  ;;  %v3088_v28 = vld [vmem:[#allocation3 + $0x108] sm:$0xff] }
 0xc94   : > { %10366 = vtanh.f32 %v2392_v18  ;;  %8718 = vmatprep.subr.msk.mxu0 %vm922_vm4, %v11272_v10  ;;  %v3055_v18 = vld [vmem:[#allocation3] sm:$0xff] }
 0xc9e   : > { %v10367_v23 = vpop.eup %10366 }
 0xc9f   : > { %2396 = vrot.lane.b32.xlu1 %v10367_v23, %s10536_s14  ;;  %v3056_v23 = vld [vmem:[#allocation3 + $0x8] sm:$0xff] }
 0xca3   : > { %2583 = vperm.xlu1 %10331, %v11089_v17  }
 0xca7   : > { %10332 = vset.pattern.permute.xlu1 %v12648_v43 }
 0xca8   : > { %2578 = vperm.xlu1 %10332, %v11089_v17  }
 0xd11   : > { %v2397_v36 = vpop.permute.xlu1 %2396 }
 0xd12   : > { %v2399_v58 = vmul.f32 %v2397_v36, %v2394_v30  ;;  %v3074_v30 = vld [vmem:[#allocation3 + $0x98] sm:$0xff] }
 0xd14   : > { %v11188_v14 = vadd.f32 %v2400_v54, %v2399_v58  ;;  %v11288_v54 = vpack.c.bf16 %v3088_v28, %v3087_v20  ;;  %v3089_v58 = vld [vmem:[#allocation3 + $0x110] sm:$0xff]  ;;  %v3082_v20 = vld [vmem:[#allocation3 + $0xd8] sm:$0xff] }
 0xd16   : > { %2413 = vrot.lane.b32.xlu0 %v11188_v14, %s10536_s14 }
 0xd88   : > { %v11192_v25 = vpop.permute.xlu0 %2413 }
 0xd89   : > { %9329 = vmatmul.mubr.msk.f32.vlgmr.msra.gmra.mrb[20].mxu1 %vm1324_vm6, %v11192_v25 }
 0xd8a   : > { %9714 = vmatpush3.bf16.msra.mxu1 %v11027_v39  ;;  %9339 = vmatprep.mubr.msk.f32.mxu1 %vm10528_vm0, %v12612_v8  ;;  %v2597_v39 = vld [vmem:[%s12581_s3] sm:$0xf] }
 0xd8b   : > { %9715 = vmatprep.subr.bf16.mxu1 %v12610_v45 }
 0xd8e   : > { %9717 = vmatpush3.bf16.msra.mxu1 %v11043_v47 }
 0xd8f   : > { %9342 = vmatprep.subr.mxu1 %v12612_v8 }
 0xe5c   : > { %v2486_v31 = vpop.f32.mrb[20].mxu1 }
 0xe5d   : > { %v2487_v17 = vadd.f32 %v11050_v50, %v2486_v31  ;;  %v9330_v40 = vpop.f32.mrb[21].mxu1  ;;  %v2584_v50 = vpop.permute.xlu1 %2583  ;;  %v11290_v31 = vpack.c.bf16 %v3056_v23, %v3055_v18  ;;  %v3097_v18 = vld [vmem:[#allocation3 + $0x150] sm:$0xff] }
 0xe5e   : > { %v3090_v40 = vld [vmem:[#allocation3 + $0x118] sm:$0xff] }
 0xe5f   : > { %v2490_v11 = vmax.f32 %v2487_v17, 0.0 }
 0xe61   : > { %9340 = vmatmul.mubr.msk.f32.vlgmr.msra.gmra.mrb[22].mxu1 %vm1530_vm7, %v2490_v11  ;;  %v2579_v44 = vpop.permute.xlu1 %2578  ;;  %v11293_v11 = vpack.c.bf16 %v3074_v30, %v3073_v37  ;;  %v3098_v37 = vld [vmem:[#allocation3 + $0x158] sm:$0xff] }
 0xe62   : > { %9344 = vmatprep.mubr.msk.f32.mxu1 %vm10528_vm0, %v12612_v8  ;;  %9343 = vmatpush3.msk.msra.mxu1 %vm646_vm1, %v2597_v39  ;;  %v3057_v39 = vld [vmem:[#allocation3 + $0x10] sm:$0xff] }
 0xf34   : > { %v2571_v47 = vpop.f32.mrb[22].mxu1 }
 0xf35   : > { %v2572_v12 = vadd.f32 %v11063_v24, %v2571_v47  ;;  %v9341_v16 = vpop.f32.mrb[23].mxu1  ;;  %v3058_v47 = vld [vmem:[#allocation3 + $0x18] sm:$0xff] }
 0xf36   : > { %v3076_v16 = vld [vmem:[#allocation3 + $0xa8] sm:$0xff] }
 0xf37   : > { %v2575_v34 = vmul.f32 0.0001, %v2572_v12  ;;  %v3075_v12 = vld [vmem:[#allocation3 + $0xa0] sm:$0xff] }
 0xf39   : > { %v2586_v35 = vmul.f32 %v2584_v50, %v2575_v34  ;;  %v2581_v55 = vmul.f32 %v2579_v44, %v2575_v34  ;;  %v11298_v34 = vpack.c.bf16 %v3090_v40, %v3089_v58  ;;  %v3091_v50 = vld [vmem:[#allocation3 + $0x120] sm:$0xff]  ;;  %v3092_v44 = vld [vmem:[#allocation3 + $0x128] sm:$0xff]  ;;  %v3066_v58 = vld [vmem:[#allocation3 + $0x58] sm:$0xff] }
 0xf3a   : > { %v3084_v40 = vld [vmem:[#allocation3 + $0xe8] sm:$0xff] }
 0xf3b   : > { %2588 = vrot.lane.b32.xlu1 %v2586_v35, %s10530_s27  ;;  %v11301_v35 = vpack.c.bf16 %v3058_v47, %v3057_v39  ;;  %v11338_v39 = vpack.c.bf16 %v3098_v37, %v3097_v18  ;;  %v3099_v47 = vld [vmem:[#allocation3 + $0x160] sm:$0xff]  ;;  %v3110_v18 = vld [vmem:[#allocation3 + $0x1b8] sm:$0xff] }
 0xfad   : > { %v2589_v57 = vpop.permute.xlu1 %2588 }
 0xfae   : > { %v2591_v60 = vadd.f32 %v2589_v57, %v2581_v55  ;;  %v11305_v55 = vpack.c.bf16 %v3076_v16, %v3075_v12  ;;  %v3059_v57 = vld [vmem:[#allocation3 + $0x20] sm:$0xff]  ;;  %v3100_v16 = vld [vmem:[#allocation3 + $0x168] sm:$0xff] }
 0xfb0   : > { %v2592_v1 = vadd.f32 %v2591_v60, %v11082_v19  ;;  %v11226_v19 = vld [vmem:[%s12583_s5] sm:$0xff]  ;;  %v3060_v60 = vld [vmem:[#allocation3 + $0x28] sm:$0xff] }
 0xfb1   : > { %v11235_v27 = vcombine.high %v11226_v19, %v11226_v19 }
 0xfb2   : > { %8705 = vst.msk [vmem:[%s11072_s15 + $0x8] sm:$0xff] %vm642_vm2, %v2592_v1  ;;  %9345 = vmatmul.mubr.msk.f32.vlgmr.msra.gmra.mrb[24].mxu1 %vm642_vm2, %v2592_v1 }
 0xfb3   : > { %2776 = vmatprep.mubr.f32.mxu1 %v12612_v8  ;;  %8709 = vmatprep.subr.msk.mxu1 %vm646_vm1, %v11235_v27 }
 0xfb4   : > { %8710 = vmatpush1.msk.msra.mxu1 %vm646_vm1, %v11226_v19 }
 0xfb5   : > { %8715 = vmatprep.subr.msk.mxu1 %vm922_vm4, %v11263_v0 }
0x1085   : > { %v11217_v24 = vpop.f32.mrb[24].mxu1 }
0x1086   : > { %2683 = vrot.lane.b32.xlu1 %v11217_v24, %s10530_s27  ;;  %v9346_v3 = vpop.f32.mrb[25].mxu1  ;;  %v2674_v5 = vsub.f32 %v2592_v1, %v11217_v24  ;;  %v3077_v1 = vld [vmem:[#allocation3 + $0xb0] sm:$0xff] }
0x1087   : > { %v3078_v3 = vld [vmem:[#allocation3 + $0xb8] sm:$0xff] }
0x1088   : > { %v2675_v13 = vmul.f32 %v2674_v5, %v2674_v5 }
0x108a   : > { %v2676_v15 = vsel %vm642_vm2, %v2675_v13, 0.0  ;;  %v3093_v13 = vld [vmem:[#allocation3 + $0x130] sm:$0xff] }
0x10aa   : > { %2677 = vadd.xlane.f32.xlu1 %v2676_v15  ;;  %v11311_v15 = vpack.c.bf16 %v3060_v60, %v3059_v57  ;;  %v3068_v57 = vld [vmem:[#allocation3 + $0x68] sm:$0xff]  ;;  %v11348_v60 = vpack.c.bf16 %v3100_v16, %v3099_v47  ;;  %v3086_v47 = vld [vmem:[#allocation3 + $0xf8] sm:$0xff] }
0x10f8   : > { %v2684_v42 = vpop.permute.xlu1 %2683 }
0x10f9   : > { %v11250_v46 = vsub.f32 %v8706_v32, %v2684_v42  ;;  %v3094_v32 = vld [vmem:[#allocation3 + $0x138] sm:$0xff]  ;;  %v11315_v42 = vpack.c.bf16 %v3078_v3, %v3077_v1  ;;  %v3101_v3 = vld [vmem:[#allocation3 + $0x170] sm:$0xff] }
0x10fb   : > { %v2687_v48 = vmul.f32 %v11250_v46, %v11250_v46 }
0x10fd   : > { %v2688_v53 = vsel %vm734_vm3, %v2687_v48, 0.0  ;;  %v3061_v48 = vld [vmem:[#allocation3 + $0x30] sm:$0xff] }
0x10fe   : > { %2689 = vadd.xlane.f32.xlu0 %v2688_v53  ;;  %v3062_v53 = vld [vmem:[#allocation3 + $0x38] sm:$0xff] }
0x10ff   : > { %v11321_v38 = vpack.c.bf16 %v3062_v53, %v3061_v48  ;;  %v3103_v48 = vld [vmem:[#allocation3 + $0x180] sm:$0xff]  ;;  %v3104_v53 = vld [vmem:[#allocation3 + $0x188] sm:$0xff] }
0x1137   : > { %v2678_v22 = vpop.xlane.xlu1 %2677 }
0x1138   : > { %v2679_v26 = vmax.f32 %v2678_v22, 1e-24  ;;  %v11318_v22 = vpack.c.bf16 %v3094_v32, %v3093_v13  ;;  %v3102_v13 = vld [vmem:[#allocation3 + $0x178] sm:$0xff] }
0x1139   : > { %v11356_v32 = vpack.c.bf16 %v3102_v13, %v3101_v3  ;;  %v3113_v13 = vld [vmem:[#allocation3 + $0x1d0] sm:$0xff] }
0x113a   : > { %10368 = vrsqrt.f32 %v2679_v26  ;;  %v3095_v26 = vld [vmem:[#allocation3 + $0x140] sm:$0xff] }
0x113b   : > { %v11328_v28 = vpack.c.bf16 %v3096_v41, %v3095_v26  ;;  %v3106_v26 = vld [vmem:[#allocation3 + $0x198] sm:$0xff] }
0x1144   : > { %v10369_v49 = vpop.eup %10368 }
0x1145   : > { %v2681_v52 = vmul.f32 %v10369_v49, %v2674_v5  ;;  %v11308_v5 = vpack.c.bf16 %v3092_v44, %v3091_v50  ;;  %v11325_v49 = vpack.c.bf16 %v3080_v63, %v3079_v56  ;;  %v3067_v44 = vld [vmem:[#allocation3 + $0x60] sm:$0xff]  ;;  %v11361_v56 = vpack.c.bf16 %v3104_v53, %v3103_v48  ;;  %v3105_v63 = vld [vmem:[#allocation3 + $0x190] sm:$0xff]  ;;  %v3114_v48 = vld [vmem:[#allocation3 + $0x1d8] sm:$0xff] }
0x1146   : > { %v11351_v1 = vpack.c.bf16 %v3068_v57, %v3067_v44  ;;  %v11365_v41 = vpack.c.bf16 %v3106_v26, %v3105_v63  ;;  %v3069_v44 = vld [vmem:[#allocation3 + $0x70] sm:$0xff]  ;;  %v3070_v57 = vld [vmem:[#allocation3 + $0x78] sm:$0xff]  ;;  %v11387_v53 = vpack.c.bf16 %v3114_v48, %v3113_v13  ;;  %v3025_v63 = vld [vmem:[%s12584_s6] sm:$0xf] }
0x1147   : > { %8711 = vmatmul.mubr.msk.f32.vlgmr.msra.gmra.mrb[26].mxu1 %vm642_vm2, %v2681_v52  ;;  %8714 = vmatmul.mubr.msk.f32.vlgmr.msra.gmra.mrb[8].mxu0 %vm642_vm2, %v2681_v52  ;;  %v3063_v52 = vld [vmem:[#allocation3 + $0x40] sm:$0xff]  ;;  %v11383_v3 = vpack.c.bf16 %v3070_v57, %v3069_v44  ;;  %v3030_v26 = vrot.slane %v3025_v63, %v10935_v62  ;;  %v3266_v57 = vld [vmem:[%s12587_s9 + $0x8] sm:$0xff] }
0x1148   : > { %8716 = vmatpush1.msk.msra.mxu1 %vm922_vm4, %v11259_v59  ;;  %2947 = vmatprep.mubr.f32.mxu1 %v12612_v8 }
0x1149   : > { %8719 = vmatpush1.msk.msra.mxu0 %vm922_vm4, %v11266_v6  ;;  %3018 = vmatprep.mubr.f32.mxu0 %v12612_v8 }
0x114a   : > { %9750 = vmatprep.subr.bf16.mxu0 %v12610_v45  ;;  %9719 = vmatprep.subr.bf16.mxu1 %v11276_v61 }
0x118b   : > { %v2690_v4 = vpop.xlane.xlu0 %2689 }
0x118c   : > { %v2691_v51 = vmax.f32 %v2690_v4, 1e-24  ;;  %v3064_v4 = vld [vmem:[#allocation3 + $0x48] sm:$0xff] }
0x118d   : > { %v11331_v23 = vpack.c.bf16 %v3064_v4, %v3063_v52  ;;  %v3107_v52 = vld [vmem:[#allocation3 + $0x1a0] sm:$0xff]  ;;  %v3108_v4 = vld [vmem:[#allocation3 + $0x1a8] sm:$0xff] }
0x118e   : > { %10370 = vrsqrt.f32 %v2691_v51  ;;  %v3081_v51 = vld [vmem:[#allocation3 + $0xd0] sm:$0xff] }
0x118f   : > { %v11335_v30 = vpack.c.bf16 %v3082_v20, %v3081_v51  ;;  %v11369_v51 = vpack.c.bf16 %v3108_v4, %v3107_v52  ;;  %v3109_v20 = vld [vmem:[#allocation3 + $0x1b0] sm:$0xff]  ;;  %v3038_v52 = vrot.slane %v3025_v63, %v10938_v2  ;;  %v3034_v4 = vrot.slane %v3025_v63, %v10944_v7 }
0x1190   : > { %v11373_v37 = vpack.c.bf16 %v3110_v18, %v3109_v20  ;;  %v3042_v20 = vrot.slane %v3025_v63, %v10947_v9 }
0x1198   : > { %v10371_v36 = vpop.eup %10370 }
0x1199   : > { %v2693_v17 = vmul.f32 %v10371_v36, %v11250_v46  ;;  %v3065_v36 = vld [vmem:[#allocation3 + $0x50] sm:$0xff] }
0x119a   : > { %v11341_v12 = vpack.c.bf16 %v3066_v58, %v3065_v36  ;;  %v3111_v36 = vld [vmem:[#allocation3 + $0x1c0] sm:$0xff]  ;;  %v3112_v58 = vld [vmem:[#allocation3 + $0x1c8] sm:$0xff] }
0x119b   : > { %8717 = vmatmul.mubr.msk.f32.vlgmr.msra.gmra.mrb[26].mxu1 %vm734_vm3, %v2693_v17  ;;  %8720 = vmatmul.mubr.msk.f32.vlgmr.msra.gmra.mrb[8].mxu0 %vm734_vm3, %v2693_v17  ;;  %v3083_v17 = vld [vmem:[#allocation3 + $0xe0] sm:$0xff] }
0x119c   : > { %9752 = vmatpush1.bf16.msra.mxu0 %v11288_v54  ;;  %9721 = vmatpush3.bf16.msra.mxu1 %v11290_v31  ;;  %v11345_v50 = vpack.c.bf16 %v3084_v40, %v3083_v17  ;;  %v11378_v17 = vpack.c.bf16 %v3112_v58, %v3111_v36  ;;  %v3085_v40 = vld [vmem:[#allocation3 + $0xf0] sm:$0xff] }
0x119d   : > { %9753 = vmatprep.subr.bf16.mxu0 %v12610_v45  ;;  %9723 = vmatprep.subr.bf16.mxu1 %v11293_v11  ;;  %v11381_v16 = vpack.c.bf16 %v3086_v47, %v3085_v40 }
0x11a0   : > { %9755 = vmatpush1.bf16.msra.mxu0 %v11298_v34  ;;  %9725 = vmatpush3.bf16.msra.mxu1 %v11301_v35 }
0x11a1   : > { %9756 = vmatprep.subr.bf16.mxu0 %v12610_v45  ;;  %9727 = vmatprep.subr.bf16.mxu1 %v11305_v55 }
0x11a4   : > { %9758 = vmatpush1.bf16.msra.mxu0 %v11308_v5  ;;  %9729 = vmatpush3.bf16.msra.mxu1 %v11311_v15 }
0x11a5   : > { %9759 = vmatprep.subr.bf16.mxu0 %v12610_v45  ;;  %9731 = vmatprep.subr.bf16.mxu1 %v11315_v42 }
0x11a8   : > { %9761 = vmatpush1.bf16.msra.mxu0 %v11318_v22  ;;  %9733 = vmatpush3.bf16.msra.mxu1 %v11321_v38 }
0x11a9   : > { %9762 = vmatprep.subr.bf16.mxu0 %v12610_v45  ;;  %9735 = vmatprep.subr.bf16.mxu1 %v11325_v49 }
0x11ac   : > { %9764 = vmatpush1.bf16.msra.mxu0 %v11328_v28  ;;  %9737 = vmatpush3.bf16.msra.mxu1 %v11331_v23 }
0x11ad   : > { %9765 = vmatprep.subr.bf16.mxu0 %v12610_v45  ;;  %9739 = vmatprep.subr.bf16.mxu1 %v11335_v30 }
0x11b0   : > { %9767 = vmatpush1.bf16.msra.mxu0 %v11338_v39  ;;  %9741 = vmatpush3.bf16.msra.mxu1 %v11341_v12 }
0x11b1   : > { %9768 = vmatprep.subr.bf16.mxu0 %v12610_v45  ;;  %9743 = vmatprep.subr.bf16.mxu1 %v11345_v50 }
0x11b4   : > { %9770 = vmatpush1.bf16.msra.mxu0 %v11348_v60  ;;  %9745 = vmatpush3.bf16.msra.mxu1 %v11351_v1 }
0x11b5   : > { %9771 = vmatprep.subr.bf16.mxu0 %v12610_v45  ;;  %9747 = vmatprep.subr.bf16.mxu1 %v11381_v16 }
0x11b8   : > { %9773 = vmatpush1.bf16.msra.mxu0 %v11356_v32  ;;  %9749 = vmatpush3.bf16.msra.mxu1 %v11383_v3 }
0x11b9   : > { %9774 = vmatprep.subr.bf16.mxu0 %v12610_v45  ;;  %9792 = vmatprep.subr.bf16.mxu1 %v12610_v45 }
0x11bc   : > { %9776 = vmatpush1.bf16.msra.mxu0 %v11361_v56 }
0x11bd   : > { %9777 = vmatprep.subr.bf16.mxu0 %v12610_v45 }
0x11c0   : > { %9779 = vmatpush1.bf16.msra.mxu0 %v11365_v41 }
0x11c1   : > { %9780 = vmatprep.subr.bf16.mxu0 %v12610_v45 }
0x11c4   : > { %9782 = vmatpush1.bf16.msra.mxu0 %v11369_v51 }
0x11c5   : > { %9783 = vmatprep.subr.bf16.mxu0 %v12610_v45 }
0x11c8   : > { %9785 = vmatpush1.bf16.msra.mxu0 %v11373_v37 }
0x11c9   : > { %9786 = vmatprep.subr.bf16.mxu0 %v12610_v45 }
0x11cc   : > { %9788 = vmatpush1.bf16.msra.mxu0 %v11378_v17 }
0x11cd   : > { %9789 = vmatprep.subr.bf16.mxu0 %v12610_v45 }
0x11d0   : > { %9791 = vmatpush1.bf16.msra.mxu0 %v11387_v53 }
0x11d1   : > { %8739 = vmatprep.subr.msk.mxu0 %vm646_vm1, %v11239_v29  ;;  %v3265_v29 = vld [vmem:[%s12587_s9] sm:$0xff] }
0x11d2   : > { %v11407_v43 = vpack.c.bf16 %v3266_v57, %v3265_v29 }
0x126e   : > { %v2949_v18 = vpop.f32.mrb[26].mxu1  ;;  %v3020_v36 = vpop.f32.mrb[8].mxu0 }
0x126f   : > { %v3047_v58 = vadd.f32 %v3030_v26, %v2949_v18  ;;  %v3049_v40 = vadd.f32 %v3038_v52, %v3020_v36  ;;  %v2951_v47 = vpop.f32.mrb[27].mxu1  ;;  %v3022_v44 = vpop.f32.mrb[9].mxu0  ;;  %v12649_v26 = vmov 0.0   ;;  %v3267_v52 = vld [vmem:[%s12587_s9 + $0x10] sm:$0xf] }
0x1270   : > { %v3048_v13 = vadd.f32 %v3034_v4, %v2951_v47  ;;  %v3050_v48 = vadd.f32 %v3042_v20, %v3022_v44 }
0x1271   : > { %v3051_v63 = vmax.f32 %v3047_v58, 0.0  ;;  %v3053_v33 = vmax.f32 %v3049_v40, 0.0 }
0x1272   : > { %v3052_v45 = vmax.f32 %v3048_v13, 0.0  ;;  %v3054_v8 = vmax.f32 %v3050_v48, 0.0 }
0x1274   : > { %3189 = vmatprep.mubr.f32.mxu1 %v3052_v45  ;;  %8722 = vmatprep.mubr.msk.f32.mxu0 %vm1170_vm5, %v3054_v8  ;;  %v12650_v8 = vmov 0.0|0.0  }
0x1275   : > { %3190 = vmatmul.mubr.f32.vlgmr.msra.gmra.mrb[28].mxu1 %v3051_v63  ;;  %3260 = vmatmul.mubr.f32.vlgmr.msra.gmra.mrb[10].mxu0 %v3053_v33 }
0x1276   : > { %9794 = vmatpush3.bf16.msra.mxu1 %v11407_v43  ;;  %9353 = vmatprep.mubr.msk.f32.mxu1 %vm10528_vm0, %v12649_v26 }
0x1277   : > { %9351 = vmatprep.subr.mxu1 %v12649_v26  ;;  %8740 = vmatpush1.msk.msra.mxu0 %vm646_vm1, %v11231_v21  ;;  %v11431_v21 = vld [vmem:[%s12586_s8] ss:$0 sm:$0xff] }
0x1278   : > { %3819 = vmatprep.mubr.f32.mxu0 %v12649_v26  ;;  %8745 = vmatprep.subr.msk.mxu0 %vm922_vm4, %v11272_v10 }
0x127a   : > { %9352 = vmatpush3.msk.msra.mxu1 %vm646_vm1, %v3267_v52 }
0x127b   : > { %9354 = vmatmul.mubr.msk.f32.vlgmr.msra.gmra.mrb[30].mxu1 %vm1324_vm6, %v11192_v25  ;;  %9795 = vmatprep.subr.bf16.mxu1 %v12650_v8  ;;  %v11437_v25 = vld [vmem:[%s12588_s10] ss:$0 sm:$0xff] }
0x127c   : > { %9362 = vmatprep.mubr.msk.f32.mxu1 %vm10528_vm0, %v12649_v26 }
0x1348   : > { %v9008_v33 = vpop.f32.mrb[28].mxu1  ;;  %v3261_v45 = vpop.f32.mrb[10].mxu0 }
0x1349   : > { %v9009_v4 = vpop.f32.mrb[29].mxu1  ;;  %v3263_v20 = vpop.f32.mrb[11].mxu0 }
0x134a   : > { %v9010_v10 = vadd.f32 %v9009_v4, %v9008_v33  ;;  %v3374_v4 = vld [vmem:[%s12589_s11] sm:$0xff]  ;;  %v3375_v20 = vld [vmem:[%s12589_s11 + $0x8] sm:$0xff] }
0x134c   : > { %v3192_v18 = vadd.f32 %v9010_v10, %v11431_v21  ;;  %v11449_v10 = vpack.c.bf16 %v3375_v20, %v3374_v4 }
0x134e   : > { %v3262_v36 = vadd.f32 %v3261_v45, %v3192_v18  ;;  %v3344_v58 = vpop.f32.mrb[30].mxu1  ;;  %9797 = vmatpush3.bf16.msra.mxu1 %v11449_v10 }
0x134f   : > { %v3345_v40 = vadd.f32 %v11437_v25, %v3344_v58  ;;  %v9355_v47 = vpop.f32.mrb[31].mxu1  ;;  %9360 = vmatprep.subr.mxu1 %v12649_v26 }
0x1351   : > { %3356 = vrot.lane.b32.xlu1 %v3345_v40, %s10533_s30  ;;  %v3348_v44 = vadd.f32 %v3345_v40, %v3262_v36 }
0x1353   : > { %v8726_v29 = vmul.f32 -1.442695, %v3348_v44 }
0x1355   : > { %10372 = vpow2.f32 %v8726_v29 }
0x135f   : > { %v10373_v57 = vpop.eup %10372 }
0x1360   : > { %v3352_v13 = vadd.f32 1.0, %v10373_v57  ;;  %v3463_v57 = vld [vmem:[%s12591_s13] sm:$0xff] }
0x1362   : > { %10374 = vrcp.f32 %v3352_v13  ;;  %v3464_v13 = vld [vmem:[%s12591_s13 + $0x8] sm:$0xff] }
0x136c   : > { %v10375_v48 = vpop.eup %10374 }
0x136d   : > { %v3366_v58 = vsub.f32 1.0, %v10375_v48  ;;  %v3372_v47 = vmul.f32 %v10375_v48, %v11188_v14  ;;  %v3465_v14 = vld [vmem:[%s12591_s13 + $0x10] sm:$0xff] }
0x13c3   : > { %v3357_v63 = vpop.permute.xlu1 %3356 }
0x13c4   : > { %v3359_v52 = vmul.f32 %v10375_v48, %v3357_v63  ;;  %v11471_v63 = vpack.c.bf16 %v3464_v13, %v3463_v57 }
0x13c6   : > { %3361 = vrot.lane.b32.xlu0 %v3359_v52, %s10534_s18 }
0x13ca   : > { %3555 = vperm.xlu0 %10329, %v11250_v46  }
0x1438   : > { %v3362_v33 = vpop.permute.xlu0 %3361 }
0x1439   : > { %v3364_v45 = vadd.f32 %v3362_v33, %v3262_v36  ;;  %v3376_v36 = vld [vmem:[%s12589_s11 + $0x10] sm:$0xf]  ;;  %v11494_v33 = vld [vmem:[%s12590_s12] ss:$0 sm:$0xff] }
0x143a   : > { %9361 = vmatpush3.msk.msra.mxu1 %vm646_vm1, %v3376_v36  ;;  %v3569_v36 = vld [vmem:[%s12581_s3] sm:$0xf] }
0x143b   : > { %10376 = vtanh.f32 %v3364_v45  ;;  %9798 = vmatprep.subr.bf16.mxu1 %v12650_v8 }
0x1445   : > { %v10377_v18 = vpop.eup %10376 }
0x1446   : > { %3368 = vrot.lane.b32.xlu1 %v10377_v18, %s10536_s14 }
0x1449   : > { %v3556_v13 = vpop.permute.xlu0 %3555 }
0x14b8   : > { %v3369_v40 = vpop.permute.xlu1 %3368 }
0x14b9   : > { %v3371_v44 = vmul.f32 %v3369_v40, %v3366_v58  ;;  %v11507_v58 = vld [vmem:[%s12647_s29] ss:$0 sm:$0xff] }
0x14bb   : > { %v11460_v29 = vadd.f32 %v3372_v47, %v3371_v44 }
0x14bd   : > { %3385 = vrot.lane.b32.xlu1 %v11460_v29, %s10536_s14 }
0x14c1   : > { %3550 = vperm.xlu1 %10332, %v11250_v46   ;;  %v3466_v46 = vld [vmem:[%s12591_s13 + $0x18] sm:$0xff] }
0x14c2   : > { %v11487_v48 = vpack.c.bf16 %v3466_v46, %v3465_v14 }
0x152f   : > { %v11473_v52 = vpop.permute.xlu1 %3385 }
0x1530   : > { %9363 = vmatmul.mubr.msk.f32.vlgmr.msra.gmra.mrb[32].mxu1 %vm1324_vm6, %v11473_v52 }
0x1531   : > { %9800 = vmatpush3.bf16.msra.mxu1 %v11471_v63  ;;  %9373 = vmatprep.mubr.msk.f32.mxu1 %vm10528_vm0, %v12649_v26 }
0x1532   : > { %9801 = vmatprep.subr.bf16.mxu1 %v12650_v8 }
0x1535   : > { %9803 = vmatpush3.bf16.msra.mxu1 %v11487_v48 }
0x1536   : > { %9376 = vmatprep.subr.mxu1 %v12649_v26 }
0x1540   : > { %v3551_v46 = vpop.permute.xlu1 %3550 }
0x1603   : > { %v3458_v45 = vpop.f32.mrb[32].mxu1 }
0x1604   : > { %v3459_v4 = vadd.f32 %v11494_v33, %v3458_v45  ;;  %v9364_v20 = vpop.f32.mrb[33].mxu1 }
0x1606   : > { %v3462_v18 = vmax.f32 %v3459_v4, 0.0 }
0x1608   : > { %9374 = vmatmul.mubr.msk.f32.vlgmr.msra.gmra.mrb[34].mxu1 %vm1530_vm7, %v3462_v18 }
0x1609   : > { %9378 = vmatprep.mubr.msk.f32.mxu1 %vm10528_vm0, %v12649_v26  ;;  %9377 = vmatpush3.msk.msra.mxu1 %vm646_vm1, %v3569_v36 }
0x160a   : > { %8736 = vmatprep.subr.msk.mxu1 %vm646_vm1, %v11235_v27 }
0x16db   : > { %v3543_v40 = vpop.f32.mrb[34].mxu1 }
0x16dc   : > { %v3544_v47 = vadd.f32 %v11507_v58, %v3543_v40  ;;  %v9375_v44 = vpop.f32.mrb[35].mxu1 }
0x16dd   : > { %v8733_v44 = vld [vmem:[%s10724_s21 + $0x18] sm:$0xff] }
0x16de   : > { %v3547_v57 = vmul.f32 0.0001, %v3544_v47 }
0x16e0   : > { %v3558_v14 = vmul.f32 %v3556_v13, %v3547_v57  ;;  %v3553_v45 = vmul.f32 %v3551_v46, %v3547_v57 }
0x16e2   : > { %3560 = vrot.lane.b32.xlu0 %v3558_v14, %s10530_s27 }
0x1754   : > { %v3561_v4 = vpop.permute.xlu0 %3560 }
0x1755   : > { %v3563_v20 = vadd.f32 %v3561_v4, %v3553_v45 }
0x1757   : > { %v3564_v18 = vadd.f32 %v3563_v20, %v11217_v24 }
0x1759   : > { %8732 = vst.msk [vmem:[%s11072_s15 + $0x10] sm:$0xff] %vm642_vm2, %v3564_v18  ;;  %9379 = vmatmul.mubr.msk.f32.vlgmr.msra.gmra.mrb[36].mxu1 %vm642_vm2, %v3564_v18 }
0x175a   : > { %8737 = vmatpush1.msk.msra.mxu1 %vm646_vm1, %v11226_v19  ;;  %3748 = vmatprep.mubr.f32.mxu1 %v12649_v26 }
0x175b   : > { %8742 = vmatprep.subr.msk.mxu1 %vm922_vm4, %v11263_v0 }
0x182c   : > { %v11522_v27 = vpop.f32.mrb[36].mxu1 }
0x182d   : > { %v3646_v36 = vsub.f32 %v3564_v18, %v11522_v27  ;;  %3655 = vrot.lane.b32.xlu1 %v11522_v27, %s10530_s27  ;;  %v9380_v24 = vpop.f32.mrb[37].mxu1 }
0x182f   : > { %v3647_v40 = vmul.f32 %v3646_v36, %v3646_v36 }
0x1831   : > { %v3648_v47 = vsel %vm642_vm2, %v3647_v40, 0.0 }
0x1832   : > { %3649 = vadd.xlane.f32.xlu0 %v3648_v47 }
0x189f   : > { %v3656_v57 = vpop.permute.xlu1 %3655 }
0x18a0   : > { %v11529_v19 = vsub.f32 %v8733_v44, %v3656_v57 }
0x18a2   : > { %v3659_v13 = vmul.f32 %v11529_v19, %v11529_v19 }
0x18a4   : > { %v3660_v0 = vsel %vm734_vm3, %v3659_v13, 0.0 }
0x18a5   : > { %3661 = vadd.xlane.f32.xlu1 %v3660_v0 }
0x18bf   : > { %v3650_v14 = vpop.xlane.xlu0 %3649 }
0x18c0   : > { %v3651_v46 = vmax.f32 %v3650_v14, 1e-24 }
0x18c2   : > { %10378 = vrsqrt.f32 %v3651_v46 }
0x18cc   : > { %v10379_v45 = vpop.eup %10378 }
0x18cd   : > { %v3653_v4 = vmul.f32 %v10379_v45, %v3646_v36 }
0x18cf   : > { %8738 = vmatmul.mubr.msk.f32.vlgmr.msra.gmra.mrb[38].mxu1 %vm642_vm2, %v3653_v4  ;;  %8741 = vmatmul.mubr.msk.f32.vlgmr.msra.gmra.mrb[12].mxu0 %vm642_vm2, %v3653_v4 }
0x18d0   : > { %8743 = vmatpush1.msk.msra.mxu1 %vm922_vm4, %v11259_v59  ;;  %3919 = vmatprep.mubr.f32.mxu1 %v12649_v26  ;;  %v3997_v59 = vld [vmem:[%s12584_s6] sm:$0xf] }
0x18d1   : > { %8746 = vmatpush1.msk.msra.mxu0 %vm922_vm4, %v11266_v6  ;;  %3990 = vmatprep.mubr.f32.mxu0 %v12649_v26  ;;  %v4002_v6 = vrot.slane %v3997_v59, %v10935_v62 }
0x18d2   : > { %9836 = vmatprep.subr.bf16.mxu0 %v12650_v8  ;;  %9805 = vmatprep.subr.bf16.mxu1 %v11276_v61  ;;  %v4010_v61 = vrot.slane %v3997_v59, %v10938_v2 }
0x1932   : > { %v3662_v20 = vpop.xlane.xlu1 %3661 }
0x1933   : > { %v3663_v18 = vmax.f32 %v3662_v20, 1e-24 }
0x1935   : > { %10380 = vrsqrt.f32 %v3663_v18 }
0x193f   : > { %v10381_v36 = vpop.eup %10380 }
0x1940   : > { %v3665_v24 = vmul.f32 %v10381_v36, %v11529_v19 }
0x1942   : > { %8744 = vmatmul.mubr.msk.f32.vlgmr.msra.gmra.mrb[38].mxu1 %vm734_vm3, %v3665_v24  ;;  %8747 = vmatmul.mubr.msk.f32.vlgmr.msra.gmra.mrb[12].mxu0 %vm734_vm3, %v3665_v24 }
0x1943   : > { %9838 = vmatpush1.bf16.msra.mxu0 %v11288_v54  ;;  %9807 = vmatpush3.bf16.msra.mxu1 %v11290_v31  ;;  %v4006_v54 = vrot.slane %v3997_v59, %v10944_v7  ;;  %v4014_v31 = vrot.slane %v3997_v59, %v10947_v9 }
0x1944   : > { %9839 = vmatprep.subr.bf16.mxu0 %v12650_v8  ;;  %9809 = vmatprep.subr.bf16.mxu1 %v11293_v11 }
0x1947   : > { %9841 = vmatpush1.bf16.msra.mxu0 %v11298_v34  ;;  %9811 = vmatpush3.bf16.msra.mxu1 %v11301_v35 }
0x1948   : > { %9842 = vmatprep.subr.bf16.mxu0 %v12650_v8  ;;  %9813 = vmatprep.subr.bf16.mxu1 %v11305_v55 }
0x194b   : > { %9844 = vmatpush1.bf16.msra.mxu0 %v11308_v5  ;;  %9815 = vmatpush3.bf16.msra.mxu1 %v11311_v15 }
0x194c   : > { %9845 = vmatprep.subr.bf16.mxu0 %v12650_v8  ;;  %9817 = vmatprep.subr.bf16.mxu1 %v11315_v42 }
0x194f   : > { %9847 = vmatpush1.bf16.msra.mxu0 %v11318_v22  ;;  %9819 = vmatpush3.bf16.msra.mxu1 %v11321_v38 }
0x1950   : > { %9848 = vmatprep.subr.bf16.mxu0 %v12650_v8  ;;  %9821 = vmatprep.subr.bf16.mxu1 %v11325_v49 }
0x1953   : > { %9850 = vmatpush1.bf16.msra.mxu0 %v11328_v28  ;;  %9823 = vmatpush3.bf16.msra.mxu1 %v11331_v23 }
0x1954   : > { %9851 = vmatprep.subr.bf16.mxu0 %v12650_v8  ;;  %9825 = vmatprep.subr.bf16.mxu1 %v11335_v30  ;;  %v4239_v30 = vld [vmem:[%s12587_s9 + $0x10] sm:$0xf] }
0x1957   : > { %9853 = vmatpush1.bf16.msra.mxu0 %v11338_v39  ;;  %9827 = vmatpush3.bf16.msra.mxu1 %v11341_v12 }
0x1958   : > { %9854 = vmatprep.subr.bf16.mxu0 %v12650_v8  ;;  %9829 = vmatprep.subr.bf16.mxu1 %v11345_v50 }
0x195b   : > { %9856 = vmatpush1.bf16.msra.mxu0 %v11348_v60  ;;  %9831 = vmatpush3.bf16.msra.mxu1 %v11351_v1 }
0x195c   : > { %9857 = vmatprep.subr.bf16.mxu0 %v12650_v8  ;;  %9833 = vmatprep.subr.bf16.mxu1 %v11381_v16 }
0x195f   : > { %9859 = vmatpush1.bf16.msra.mxu0 %v11356_v32  ;;  %9835 = vmatpush3.bf16.msra.mxu1 %v11383_v3 }
0x1960   : > { %9860 = vmatprep.subr.bf16.mxu0 %v12650_v8  ;;  %9878 = vmatprep.subr.bf16.mxu1 %v12650_v8 }
0x1963   : > { %9862 = vmatpush1.bf16.msra.mxu0 %v11361_v56 }
0x1964   : > { %9863 = vmatprep.subr.bf16.mxu0 %v12650_v8 }
0x1967   : > { %9865 = vmatpush1.bf16.msra.mxu0 %v11365_v41 }
0x1968   : > { %9866 = vmatprep.subr.bf16.mxu0 %v12650_v8 }
0x196b   : > { %9868 = vmatpush1.bf16.msra.mxu0 %v11369_v51 }
0x196c   : > { %9869 = vmatprep.subr.bf16.mxu0 %v12650_v8 }
0x196f   : > { %9871 = vmatpush1.bf16.msra.mxu0 %v11373_v37 }
0x1970   : > { %9872 = vmatprep.subr.bf16.mxu0 %v12650_v8 }
0x1973   : > { %9874 = vmatpush1.bf16.msra.mxu0 %v11378_v17 }
0x1974   : > { %9875 = vmatprep.subr.bf16.mxu0 %v12650_v8 }
0x1977   : > { %9877 = vmatpush1.bf16.msra.mxu0 %v11387_v53 }
0x1a15   : > { %v3921_v11 = vpop.f32.mrb[38].mxu1  ;;  %v3992_v34 = vpop.f32.mrb[12].mxu0 }
0x1a16   : > { %v4019_v35 = vadd.f32 %v4002_v6, %v3921_v11  ;;  %v4021_v55 = vadd.f32 %v4010_v61, %v3992_v34  ;;  %v3923_v5 = vpop.f32.mrb[39].mxu1  ;;  %v3994_v15 = vpop.f32.mrb[13].mxu0 }
0x1a17   : > { %v4020_v42 = vadd.f32 %v4006_v54, %v3923_v5  ;;  %v4022_v22 = vadd.f32 %v4014_v31, %v3994_v15  ;;  %v11670_v5 = vld [vmem:[%s12583_s5 + $0x8] sm:$0xff] }
0x1a18   : > { %v4023_v28 = vmax.f32 %v4019_v35, 0.0  ;;  %v4025_v23 = vmax.f32 %v4021_v55, 0.0 }
0x1a19   : > { %v4024_v38 = vmax.f32 %v4020_v42, 0.0  ;;  %v4026_v49 = vmax.f32 %v4022_v22, 0.0  ;;  %v11678_v42 = vcombine.high %v11670_v5, %v11670_v5  ;;  %v8760_v22 = vld [vmem:[%s10724_s21 + $0x20] sm:$0xff] }
0x1a1b   : > { %4161 = vmatprep.mubr.f32.mxu1 %v4024_v38  ;;  %8749 = vmatprep.mubr.msk.f32.mxu0 %vm1170_vm5, %v4026_v49 }
0x1a1c   : > { %4162 = vmatmul.mubr.f32.vlgmr.msra.gmra.mrb[40].mxu1 %v4023_v28  ;;  %4232 = vmatmul.mubr.f32.vlgmr.msra.gmra.mrb[14].mxu0 %v4025_v23 }
0x1a1d   : > { %9880 = vmatpush3.bf16.msra.mxu1 %v11407_v43  ;;  %9387 = vmatprep.mubr.msk.f32.mxu1 %vm10528_vm0, %v12649_v26 }
0x1a1e   : > { %9385 = vmatprep.subr.mxu1 %v12649_v26  ;;  %4791 = vmatprep.mubr.f32.mxu0 %v12649_v26 }
0x1a1f   : > { %8766 = vmatprep.subr.msk.mxu0 %vm646_vm1, %v11678_v42 }
0x1a20   : > { %8767 = vmatpush1.msk.msra.mxu0 %vm646_vm1, %v11670_v5 }
0x1a21   : > { %9386 = vmatpush3.msk.msra.mxu1 %vm646_vm1, %v4239_v30  ;;  %v4638_v30 = vld [vmem:[%s12582_s4] sm:$0xff] }
0x1a22   : > { %9388 = vmatmul.mubr.msk.f32.vlgmr.msra.gmra.mrb[42].mxu1 %vm1324_vm6, %v11473_v52  ;;  %9881 = vmatprep.subr.bf16.mxu1 %v12650_v8 }
0x1a23   : > { %9883 = vmatpush3.bf16.msra.mxu1 %v11449_v10  ;;  %9396 = vmatprep.mubr.msk.f32.mxu1 %vm10528_vm0, %v12649_v26 }
0x1a24   : > { %9394 = vmatprep.subr.mxu1 %v12649_v26 }
0x1aef   : > { %v9058_v43 = vpop.f32.mrb[40].mxu1  ;;  %v4233_v39 = vpop.f32.mrb[14].mxu0 }
0x1af0   : > { %v9059_v12 = vpop.f32.mrb[41].mxu1  ;;  %v4235_v50 = vpop.f32.mrb[15].mxu0 }
0x1af1   : > { %v9060_v60 = vadd.f32 %v9059_v12, %v9058_v43  ;;  %v12651_v43 = vld [vmem:[#allocation15_spill] sm:$0xff]  ;;  %v4799_v12 = vcombine.high %v4638_v30, %v4638_v30 }
0x1af3   : > { %v4164_v1 = vadd.f32 %v9060_v60, %v11431_v21  ;;  %v11705_v60 = vrot.slane %v4799_v12, %v12651_v43 }
0x1af5   : > { %v4234_v32 = vadd.f32 %v4233_v39, %v4164_v1  ;;  %v4316_v56 = vpop.f32.mrb[42].mxu1  ;;  %v11698_v39 = vrot.slane %v4638_v30, %v12651_v43  ;;  %v11711_v1 = vcombine.high %v11705_v60, %v11705_v60  ;;  %v5024_v30 = vld [vmem:[#allocation3 + $0xc8] sm:$0xff] }
0x1af6   : > { %v4317_v41 = vadd.f32 %v11437_v25, %v4316_v56  ;;  %v9389_v51 = vpop.f32.mrb[43].mxu1  ;;  %v4348_v25 = vld [vmem:[%s12589_s11 + $0x10] sm:$0xf] }
0x1af7   : > { %9395 = vmatpush3.msk.msra.mxu1 %vm646_vm1, %v4348_v25  ;;  %v11702_v50 = vcombine.high %v11698_v39, %v11698_v39  ;;  %8772 = vmatprep.subr.msk.mxu0 %vm922_vm4, %v11711_v1  ;;  %v5018_v25 = vld [vmem:[#allocation3 + $0x98] sm:$0xff] }
0x1af8   : > { %4328 = vrot.lane.b32.xlu0 %v4317_v41, %s10533_s30  ;;  %v4320_v37 = vadd.f32 %v4317_v41, %v4234_v32  ;;  %9884 = vmatprep.subr.bf16.mxu1 %v12650_v8 }
0x1afa   : > { %v8753_v17 = vmul.f32 -1.442695, %v4320_v37  ;;  %v5015_v37 = vld [vmem:[#allocation3 + $0x80] sm:$0xff] }
0x1afc   : > { %10382 = vpow2.f32 %v8753_v17  ;;  %v5016_v17 = vld [vmem:[#allocation3 + $0x88] sm:$0xff] }
0x1b06   : > { %v10383_v16 = vpop.eup %10382 }
0x1b07   : > { %v4324_v3 = vadd.f32 1.0, %v10383_v16  ;;  %v11724_v16 = vpack.c.bf16 %v5016_v17, %v5015_v37  ;;  %v5007_v37 = vld [vmem:[#allocation3 + $0x40] sm:$0xff]  ;;  %v5008_v17 = vld [vmem:[#allocation3 + $0x48] sm:$0xff] }
0x1b09   : > { %10384 = vrcp.f32 %v4324_v3 }
0x1b13   : > { %v10385_v53 = vpop.eup %10384 }
0x1b14   : > { %v4338_v44 = vsub.f32 1.0, %v10385_v53  ;;  %v4344_v13 = vmul.f32 %v10385_v53, %v11460_v29 }
0x1b6a   : > { %v4329_v10 = vpop.permute.xlu0 %4328 }
0x1b6b   : > { %v4331_v52 = vmul.f32 %v10385_v53, %v4329_v10  ;;  %v5031_v10 = vld [vmem:[#allocation3 + $0x100] sm:$0xff] }
0x1b6d   : > { %4333 = vrot.lane.b32.xlu1 %v4331_v52, %s10534_s18  ;;  %v5032_v52 = vld [vmem:[#allocation3 + $0x108] sm:$0xff] }
0x1bdf   : > { %v4334_v40 = vpop.permute.xlu1 %4333 }
0x1be0   : > { %v4336_v21 = vadd.f32 %v4334_v40, %v4234_v32  ;;  %v4999_v40 = vld [vmem:[#allocation3] sm:$0xff] }
0x1be2   : > { %10386 = vtanh.f32 %v4336_v21  ;;  %v5000_v21 = vld [vmem:[#allocation3 + $0x8] sm:$0xff] }
0x1bec   : > { %v10387_v47 = vpop.eup %10386 }
0x1bed   : > { %4340 = vrot.lane.b32.xlu0 %v10387_v47, %s10536_s14  ;;  %v5017_v47 = vld [vmem:[#allocation3 + $0x90] sm:$0xff] }
0x1bf1   : > { %4527 = vperm.xlu0 %10329, %v11529_v19  }
0x1c5f   : > { %v4341_v57 = vpop.permute.xlu0 %4340 }
0x1c60   : > { %v4343_v0 = vmul.f32 %v4341_v57, %v4338_v44  ;;  %v11727_v57 = vpack.c.bf16 %v5032_v52, %v5031_v10  ;;  %v5041_v52 = vld [vmem:[#allocation3 + $0x150] sm:$0xff] }
0x1c62   : > { %v11626_v14 = vadd.f32 %v4344_v13, %v4343_v0  ;;  %v5033_v13 = vld [vmem:[#allocation3 + $0x110] sm:$0xff]  ;;  %v11729_v0 = vpack.c.bf16 %v5000_v21, %v4999_v40  ;;  %v11770_v40 = vpack.c.bf16 %v5008_v17, %v5007_v37  ;;  %v5042_v21 = vld [vmem:[#allocation3 + $0x158] sm:$0xff]  ;;  %v5052_v37 = vld [vmem:[#allocation3 + $0x1a8] sm:$0xff] }
0x1c64   : > { %4357 = vrot.lane.b32.xlu1 %v11626_v14, %s10536_s14 }
0x1c68   : > { %4522 = vperm.xlu1 %10332, %v11529_v19  }
0x1cd6   : > { %v11631_v46 = vpop.permute.xlu1 %4357 }
0x1cd7   : > { %9397 = vmatmul.mubr.msk.f32.vlgmr.msra.gmra.mrb[44].mxu1 %vm1324_vm6, %v11631_v46 }
0x1cd8   : > { %9886 = vmatpush3.bf16.msra.mxu1 %v11471_v63  ;;  %9407 = vmatprep.mubr.msk.f32.mxu1 %vm10528_vm0, %v12649_v26  ;;  %v4541_v63 = vld [vmem:[%s12581_s3] sm:$0xf] }
0x1cd9   : > { %9887 = vmatprep.subr.bf16.mxu1 %v12650_v8 }
0x1cdc   : > { %9889 = vmatpush3.bf16.msra.mxu1 %v11487_v48 }
0x1cdd   : > { %9410 = vmatprep.subr.mxu1 %v12649_v26 }
0x1ce7   : > { %v4523_v59 = vpop.permute.xlu1 %4522 }
0x1daa   : > { %v4430_v29 = vpop.f32.mrb[44].mxu1 }
0x1dab   : > { %v4431_v45 = vadd.f32 %v11494_v33, %v4430_v29  ;;  %v9398_v19 = vpop.f32.mrb[45].mxu1  ;;  %v4528_v33 = vpop.permute.xlu0 %4527 }
0x1dac   : > { %v11732_v19 = vpack.c.bf16 %v5018_v25, %v5017_v47  ;;  %v5009_v25 = vld [vmem:[#allocation3 + $0x50] sm:$0xff] }
0x1dad   : > { %v4434_v4 = vmax.f32 %v4431_v45, 0.0  ;;  %v5034_v45 = vld [vmem:[#allocation3 + $0x118] sm:$0xff] }
0x1daf   : > { %9408 = vmatmul.mubr.msk.f32.vlgmr.msra.gmra.mrb[46].mxu1 %vm1530_vm7, %v4434_v4  ;;  %v5001_v4 = vld [vmem:[#allocation3 + $0x10] sm:$0xff] }
0x1db0   : > { %9412 = vmatprep.mubr.msk.f32.mxu1 %vm10528_vm0, %v12649_v26  ;;  %9411 = vmatpush3.msk.msra.mxu1 %vm646_vm1, %v4541_v63  ;;  %v5002_v63 = vld [vmem:[#allocation3 + $0x18] sm:$0xff] }
0x1e82   : > { %v4515_v48 = vpop.f32.mrb[46].mxu1 }
0x1e83   : > { %v4516_v20 = vadd.f32 %v11507_v58, %v4515_v48  ;;  %v9409_v18 = vpop.f32.mrb[47].mxu1  ;;  %v5019_v48 = vld [vmem:[#allocation3 + $0xa0] sm:$0xff] }
0x1e84   : > { %v11737_v18 = vpack.c.bf16 %v5034_v45, %v5033_v13  ;;  %v5027_v13 = vld [vmem:[#allocation3 + $0xe0] sm:$0xff]  ;;  %v11777_v45 = vpack.c.bf16 %v5042_v21, %v5041_v52 }
0x1e85   : > { %v4519_v36 = vmul.f32 0.0001, %v4516_v20  ;;  %v5020_v20 = vld [vmem:[#allocation3 + $0xa8] sm:$0xff]  ;;  %v5055_v21 = vld [vmem:[#allocation3 + $0x1c0] sm:$0xff] }
0x1e87   : > { %v4530_v24 = vmul.f32 %v4528_v33, %v4519_v36  ;;  %v4525_v6 = vmul.f32 %v4523_v59, %v4519_v36  ;;  %v5035_v36 = vld [vmem:[#allocation3 + $0x120] sm:$0xff]  ;;  %v11740_v33 = vpack.c.bf16 %v5002_v63, %v5001_v4  ;;  %v11744_v59 = vpack.c.bf16 %v5020_v20, %v5019_v48  ;;  %v5044_v48 = vld [vmem:[#allocation3 + $0x168] sm:$0xff] }
0x1e88   : > { %v5043_v4 = vld [vmem:[#allocation3 + $0x160] sm:$0xff] }
0x1e89   : > { %4532 = vrot.lane.b32.xlu0 %v4530_v24, %s10530_s27  ;;  %v5036_v24 = vld [vmem:[#allocation3 + $0x128] sm:$0xff] }
0x1efb   : > { %v4533_v61 = vpop.permute.xlu0 %4532 }
0x1efc   : > { %v4535_v54 = vadd.f32 %v4533_v61, %v4525_v6  ;;  %v5003_v6 = vld [vmem:[#allocation3 + $0x20] sm:$0xff]  ;;  %v5004_v61 = vld [vmem:[#allocation3 + $0x28] sm:$0xff] }
0x1efe   : > { %v4536_v31 = vadd.f32 %v4535_v54, %v11522_v27  ;;  %v11665_v27 = vld [vmem:[%s12583_s5] sm:$0xff]  ;;  %v5021_v54 = vld [vmem:[#allocation3 + $0xb0] sm:$0xff] }
0x1eff   : > { %v11674_v15 = vcombine.high %v11665_v27, %v11665_v27 }
0x1f00   : > { %8759 = vst.msk [vmem:[%s11072_s15 + $0x18] sm:$0xff] %vm642_vm2, %v4536_v31  ;;  %9413 = vmatmul.mubr.msk.f32.vlgmr.msra.gmra.mrb[48].mxu1 %vm642_vm2, %v4536_v31 }
0x1f01   : > { %4720 = vmatprep.mubr.f32.mxu1 %v12649_v26  ;;  %8763 = vmatprep.subr.msk.mxu1 %vm646_vm1, %v11674_v15 }
0x1f02   : > { %8764 = vmatpush1.msk.msra.mxu1 %vm646_vm1, %v11665_v27 }
0x1f03   : > { %8769 = vmatprep.subr.msk.mxu1 %vm922_vm4, %v11702_v50 }
0x1fd3   : > { %v11656_v58 = vpop.f32.mrb[48].mxu1 }
0x1fd4   : > { %v4618_v11 = vsub.f32 %v4536_v31, %v11656_v58  ;;  %4627 = vrot.lane.b32.xlu1 %v11656_v58, %s10530_s27  ;;  %v9414_v34 = vpop.f32.mrb[49].mxu1  ;;  %v5022_v31 = vld [vmem:[#allocation3 + $0xb8] sm:$0xff] }
0x1fd5   : > { %v5037_v34 = vld [vmem:[#allocation3 + $0x130] sm:$0xff] }
0x1fd6   : > { %v4619_v35 = vmul.f32 %v4618_v11, %v4618_v11 }
0x1fd8   : > { %v4620_v55 = vsel %vm642_vm2, %v4619_v35, 0.0  ;;  %v11750_v35 = vpack.c.bf16 %v5004_v61, %v5003_v6  ;;  %v11787_v6 = vpack.c.bf16 %v5044_v48, %v5043_v4  ;;  %v5013_v48 = vld [vmem:[#allocation3 + $0x70] sm:$0xff] }
0x1fd9   : > { %4621 = vadd.xlane.f32.xlu0 %v4620_v55  ;;  %v5038_v55 = vld [vmem:[#allocation3 + $0x138] sm:$0xff] }
0x1fda   : > { %v11757_v12 = vpack.c.bf16 %v5038_v55, %v5037_v34  ;;  %v5047_v55 = vld [vmem:[#allocation3 + $0x180] sm:$0xff] }
0x2046   : > { %v4628_v38 = vpop.permute.xlu1 %4627 }
0x2047   : > { %v11689_v49 = vsub.f32 %v8760_v22, %v4628_v38  ;;  %v11754_v22 = vpack.c.bf16 %v5022_v31, %v5021_v54  ;;  %v5005_v38 = vld [vmem:[#allocation3 + $0x30] sm:$0xff]  ;;  %v5046_v31 = vld [vmem:[#allocation3 + $0x178] sm:$0xff] }
0x2048   : > { %v5045_v54 = vld [vmem:[#allocation3 + $0x170] sm:$0xff] }
0x2049   : > { %v4631_v28 = vmul.f32 %v11689_v49, %v11689_v49  ;;  %v11795_v34 = vpack.c.bf16 %v5046_v31, %v5045_v54  ;;  %v5057_v54 = vld [vmem:[#allocation3 + $0x1d0] sm:$0xff]  ;;  %v5058_v31 = vld [vmem:[#allocation3 + $0x1d8] sm:$0xff] }
0x204b   : > { %v4632_v23 = vsel %vm734_vm3, %v4631_v28, 0.0  ;;  %v5006_v28 = vld [vmem:[#allocation3 + $0x38] sm:$0xff] }
0x204c   : > { %4633 = vadd.xlane.f32.xlu1 %v4632_v23  ;;  %v5023_v23 = vld [vmem:[#allocation3 + $0xc0] sm:$0xff] }
0x2066   : > { %v4622_v32 = vpop.xlane.xlu0 %4621 }
0x2067   : > { %v4623_v56 = vmax.f32 %v4622_v32, 1e-24  ;;  %v5039_v32 = vld [vmem:[#allocation3 + $0x140] sm:$0xff] }
0x2069   : > { %10388 = vrsqrt.f32 %v4623_v56  ;;  %v11760_v56 = vpack.c.bf16 %v5006_v28, %v5005_v38  ;;  %v5048_v38 = vld [vmem:[#allocation3 + $0x188] sm:$0xff] }
0x206a   : > { %v11800_v28 = vpack.c.bf16 %v5048_v38, %v5047_v55  ;;  %v11826_v55 = vpack.c.bf16 %v5058_v31, %v5057_v54  ;;  %v4969_v38 = vld [vmem:[%s12584_s6] sm:$0xf] }
0x2073   : > { %v10389_v41 = vpop.eup %10388 }
0x2074   : > { %v4625_v51 = vmul.f32 %v10389_v41, %v4618_v11  ;;  %v11747_v11 = vpack.c.bf16 %v5036_v24, %v5035_v36  ;;  %v5040_v41 = vld [vmem:[#allocation3 + $0x148] sm:$0xff]  ;;  %v5011_v36 = vld [vmem:[#allocation3 + $0x60] sm:$0xff] }
0x2075   : > { %v11767_v10 = vpack.c.bf16 %v5040_v41, %v5039_v32  ;;  %v5012_v24 = vld [vmem:[#allocation3 + $0x68] sm:$0xff]  ;;  %v5051_v41 = vld [vmem:[#allocation3 + $0x1a0] sm:$0xff] }
0x2076   : > { %8765 = vmatmul.mubr.msk.f32.vlgmr.msra.gmra.mrb[50].mxu1 %vm642_vm2, %v4625_v51  ;;  %8768 = vmatmul.mubr.msk.f32.vlgmr.msra.gmra.mrb[16].mxu0 %vm642_vm2, %v4625_v51  ;;  %v11764_v51 = vpack.c.bf16 %v5024_v30, %v5023_v23  ;;  %v11790_v61 = vpack.c.bf16 %v5012_v24, %v5011_v36  ;;  %v5049_v23 = vld [vmem:[#allocation3 + $0x190] sm:$0xff]  ;;  %v5050_v30 = vld [vmem:[#allocation3 + $0x198] sm:$0xff]  ;;  %v11808_v17 = vpack.c.bf16 %v5052_v37, %v5051_v41 }
0x2077   : > { %8770 = vmatpush1.msk.msra.mxu1 %vm922_vm4, %v11698_v39  ;;  %4891 = vmatprep.mubr.f32.mxu1 %v12649_v26  ;;  %v11804_v32 = vpack.c.bf16 %v5050_v30, %v5049_v23  ;;  %v5014_v36 = vld [vmem:[#allocation3 + $0x78] sm:$0xff]  ;;  %v4974_v23 = vrot.slane %v4969_v38, %v10935_v62  ;;  %v4982_v30 = vrot.slane %v4969_v38, %v10938_v2 }
0x2078   : > { %8773 = vmatpush1.msk.msra.mxu0 %vm922_vm4, %v11705_v60  ;;  %4962 = vmatprep.mubr.f32.mxu0 %v12649_v26  ;;  %v11822_v24 = vpack.c.bf16 %v5014_v36, %v5013_v48  ;;  %v4978_v41 = vrot.slane %v4969_v38, %v10944_v7  ;;  %v4986_v37 = vrot.slane %v4969_v38, %v10947_v9  ;;  %v5210_v48 = vld [vmem:[%s12587_s9 + $0x8] sm:$0xff] }
0x2079   : > { %9922 = vmatprep.subr.bf16.mxu0 %v12650_v8  ;;  %9891 = vmatprep.subr.bf16.mxu1 %v11724_v16 }
0x20d9   : > { %v4634_v3 = vpop.xlane.xlu1 %4633 }
0x20da   : > { %v4635_v53 = vmax.f32 %v4634_v3, 1e-24  ;;  %v5025_v3 = vld [vmem:[#allocation3 + $0xd0] sm:$0xff] }
0x20dc   : > { %10390 = vrsqrt.f32 %v4635_v53  ;;  %v5026_v53 = vld [vmem:[#allocation3 + $0xd8] sm:$0xff] }
0x20dd   : > { %v11774_v47 = vpack.c.bf16 %v5026_v53, %v5025_v3  ;;  %v5053_v3 = vld [vmem:[#allocation3 + $0x1b0] sm:$0xff]  ;;  %v5054_v53 = vld [vmem:[#allocation3 + $0x1b8] sm:$0xff] }
0x20de   : > { %v11812_v52 = vpack.c.bf16 %v5054_v53, %v5053_v3 }
0x20e6   : > { %v10391_v44 = vpop.eup %10390 }
0x20e7   : > { %v4637_v29 = vmul.f32 %v10391_v44, %v11689_v49  ;;  %v5010_v44 = vld [vmem:[#allocation3 + $0x58] sm:$0xff] }
0x20e8   : > { %v11780_v63 = vpack.c.bf16 %v5010_v44, %v5009_v25  ;;  %v5056_v25 = vld [vmem:[#allocation3 + $0x1c8] sm:$0xff] }
0x20e9   : > { %8771 = vmatmul.mubr.msk.f32.vlgmr.msra.gmra.mrb[50].mxu1 %vm734_vm3, %v4637_v29  ;;  %8774 = vmatmul.mubr.msk.f32.vlgmr.msra.gmra.mrb[16].mxu0 %vm734_vm3, %v4637_v29  ;;  %v5028_v29 = vld [vmem:[#allocation3 + $0xe8] sm:$0xff]  ;;  %v11817_v44 = vpack.c.bf16 %v5056_v25, %v5055_v21 }
0x20ea   : > { %9924 = vmatpush1.bf16.msra.mxu0 %v11727_v57  ;;  %9893 = vmatpush3.bf16.msra.mxu1 %v11729_v0  ;;  %v11784_v20 = vpack.c.bf16 %v5028_v29, %v5027_v13  ;;  %v5029_v13 = vld [vmem:[#allocation3 + $0xf0] sm:$0xff]  ;;  %v5030_v29 = vld [vmem:[#allocation3 + $0xf8] sm:$0xff] }
0x20eb   : > { %9925 = vmatprep.subr.bf16.mxu0 %v12650_v8  ;;  %9895 = vmatprep.subr.bf16.mxu1 %v11732_v19  ;;  %v11820_v4 = vpack.c.bf16 %v5030_v29, %v5029_v13 }
0x20ee   : > { %9927 = vmatpush1.bf16.msra.mxu0 %v11737_v18  ;;  %9897 = vmatpush3.bf16.msra.mxu1 %v11740_v33 }
0x20ef   : > { %9928 = vmatprep.subr.bf16.mxu0 %v12650_v8  ;;  %9899 = vmatprep.subr.bf16.mxu1 %v11744_v59 }
0x20f2   : > { %9930 = vmatpush1.bf16.msra.mxu0 %v11747_v11  ;;  %9901 = vmatpush3.bf16.msra.mxu1 %v11750_v35 }
0x20f3   : > { %9931 = vmatprep.subr.bf16.mxu0 %v12650_v8  ;;  %9903 = vmatprep.subr.bf16.mxu1 %v11754_v22 }
0x20f6   : > { %9933 = vmatpush1.bf16.msra.mxu0 %v11757_v12  ;;  %9905 = vmatpush3.bf16.msra.mxu1 %v11760_v56 }
0x20f7   : > { %9934 = vmatprep.subr.bf16.mxu0 %v12650_v8  ;;  %9907 = vmatprep.subr.bf16.mxu1 %v11764_v51 }
0x20fa   : > { %9936 = vmatpush1.bf16.msra.mxu0 %v11767_v10  ;;  %9909 = vmatpush3.bf16.msra.mxu1 %v11770_v40 }
0x20fb   : > { %9937 = vmatprep.subr.bf16.mxu0 %v12650_v8  ;;  %9911 = vmatprep.subr.bf16.mxu1 %v11774_v47 }
0x20fe   : > { %9939 = vmatpush1.bf16.msra.mxu0 %v11777_v45  ;;  %9913 = vmatpush3.bf16.msra.mxu1 %v11780_v63 }
0x20ff   : > { %9940 = vmatprep.subr.bf16.mxu0 %v12650_v8  ;;  %9915 = vmatprep.subr.bf16.mxu1 %v11784_v20 }
0x2102   : > { %9942 = vmatpush1.bf16.msra.mxu0 %v11787_v6  ;;  %9917 = vmatpush3.bf16.msra.mxu1 %v11790_v61 }
0x2103   : > { %9943 = vmatprep.subr.bf16.mxu0 %v12650_v8  ;;  %9919 = vmatprep.subr.bf16.mxu1 %v11820_v4 }
0x2106   : > { %9945 = vmatpush1.bf16.msra.mxu0 %v11795_v34  ;;  %9921 = vmatpush3.bf16.msra.mxu1 %v11822_v24 }
0x2107   : > { %9946 = vmatprep.subr.bf16.mxu0 %v12650_v8  ;;  %9964 = vmatprep.subr.bf16.mxu1 %v12650_v8 }
0x210a   : > { %9948 = vmatpush1.bf16.msra.mxu0 %v11800_v28 }
0x210b   : > { %9949 = vmatprep.subr.bf16.mxu0 %v12650_v8 }
0x210e   : > { %9951 = vmatpush1.bf16.msra.mxu0 %v11804_v32 }
0x210f   : > { %9952 = vmatprep.subr.bf16.mxu0 %v12650_v8 }
0x2112   : > { %9954 = vmatpush1.bf16.msra.mxu0 %v11808_v17 }
0x2113   : > { %9955 = vmatprep.subr.bf16.mxu0 %v12650_v8 }
0x2116   : > { %9957 = vmatpush1.bf16.msra.mxu0 %v11812_v52 }
0x2117   : > { %9958 = vmatprep.subr.bf16.mxu0 %v12650_v8 }
0x211a   : > { %9960 = vmatpush1.bf16.msra.mxu0 %v11817_v44 }
0x211b   : > { %9961 = vmatprep.subr.bf16.mxu0 %v12650_v8 }
0x211e   : > { %9963 = vmatpush1.bf16.msra.mxu0 %v11826_v55 }
0x211f   : > { %8793 = vmatprep.subr.msk.mxu0 %vm646_vm1, %v11678_v42  ;;  %v5209_v42 = vld [vmem:[%s12587_s9] sm:$0xff] }
0x2120   : > { %v11846_v7 = vpack.c.bf16 %v5210_v48, %v5209_v42 }
0x21bc   : > { %v4893_v3 = vpop.f32.mrb[50].mxu1  ;;  %v4964_v53 = vpop.f32.mrb[16].mxu0 }
0x21bd   : > { %v4991_v21 = vadd.f32 %v4974_v23, %v4893_v3  ;;  %v4993_v25 = vadd.f32 %v4982_v30, %v4964_v53  ;;  %v4895_v13 = vpop.f32.mrb[51].mxu1  ;;  %v4966_v29 = vpop.f32.mrb[17].mxu0  ;;  %v5211_v23 = vld [vmem:[%s12587_s9 + $0x10] sm:$0xf] }
0x21be   : > { %v4992_v36 = vadd.f32 %v4978_v41, %v4895_v13  ;;  %v4994_v54 = vadd.f32 %v4986_v37, %v4966_v29 }
0x21bf   : > { %v4995_v38 = vmax.f32 %v4991_v21, 0.0  ;;  %v4997_v9 = vmax.f32 %v4993_v25, 0.0 }
0x21c0   : > { %v4996_v31 = vmax.f32 %v4992_v36, 0.0  ;;  %v4998_v43 = vmax.f32 %v4994_v54, 0.0 }
0x21c2   : > { %5133 = vmatprep.mubr.f32.mxu1 %v4996_v31  ;;  %8776 = vmatprep.mubr.msk.f32.mxu0 %vm1170_vm5, %v4998_v43 }
0x21c3   : > { %5134 = vmatmul.mubr.f32.vlgmr.msra.gmra.mrb[52].mxu1 %v4995_v38  ;;  %5204 = vmatmul.mubr.f32.vlgmr.msra.gmra.mrb[18].mxu0 %v4997_v9 }
0x21c4   : > { %9966 = vmatpush3.bf16.msra.mxu1 %v11846_v7  ;;  %9421 = vmatprep.mubr.msk.f32.mxu1 %vm10528_vm0, %v12649_v26 }
0x21c5   : > { %9419 = vmatprep.subr.mxu1 %v12649_v26  ;;  %8794 = vmatpush1.msk.msra.mxu0 %vm646_vm1, %v11670_v5  ;;  %v11870_v5 = vld [vmem:[%s12586_s8] ss:$0 sm:$0xff] }
0x21c6   : > { %5763 = vmatprep.mubr.f32.mxu0 %v12649_v26  ;;  %8799 = vmatprep.subr.msk.mxu0 %vm922_vm4, %v11711_v1 }
0x21c8   : > { %9420 = vmatpush3.msk.msra.mxu1 %vm646_vm1, %v5211_v23 }
0x21c9   : > { %9422 = vmatmul.mubr.msk.f32.vlgmr.msra.gmra.mrb[54].mxu1 %vm1324_vm6, %v11631_v46  ;;  %9967 = vmatprep.subr.bf16.mxu1 %v12650_v8  ;;  %v11876_v46 = vld [vmem:[%s12588_s10] ss:$0 sm:$0xff] }
0x21ca   : > { %9430 = vmatprep.mubr.msk.f32.mxu1 %vm10528_vm0, %v12649_v26 }
0x2296   : > { %v9108_v9 = vpop.f32.mrb[52].mxu1  ;;  %v5205_v43 = vpop.f32.mrb[18].mxu0 }
0x2297   : > { %v9109_v30 = vpop.f32.mrb[53].mxu1  ;;  %v5207_v41 = vpop.f32.mrb[19].mxu0 }
0x2298   : > { %v9110_v1 = vadd.f32 %v9109_v30, %v9108_v9  ;;  %v5319_v30 = vld [vmem:[%s12589_s11 + $0x8] sm:$0xff] }
0x229a   : > { %v5136_v37 = vadd.f32 %v9110_v1, %v11870_v5  ;;  %v5320_v1 = vld [vmem:[%s12589_s11 + $0x10] sm:$0xf] }
0x229c   : > { %v5206_v3 = vadd.f32 %v5205_v43, %v5136_v37  ;;  %v5288_v53 = vpop.f32.mrb[54].mxu1  ;;  %v5318_v43 = vld [vmem:[%s12589_s11] sm:$0xff] }
0x229d   : > { %v5289_v21 = vadd.f32 %v11876_v46, %v5288_v53  ;;  %v9423_v25 = vpop.f32.mrb[55].mxu1  ;;  %v11889_v41 = vpack.c.bf16 %v5319_v30, %v5318_v43  ;;  %v5513_v43 = vld [vmem:[%s12581_s3] sm:$0xf] }
0x229e   : > { %v11946_v30 = vld [vmem:[%s12647_s29] ss:$0 sm:$0xff] }
0x229f   : > { %5300 = vrot.lane.b32.xlu0 %v5289_v21, %s10533_s30  ;;  %v5292_v13 = vadd.f32 %v5289_v21, %v5206_v3  ;;  %9969 = vmatpush3.bf16.msra.mxu1 %v11889_v41 }
0x22a0   : > { %9428 = vmatprep.subr.mxu1 %v12649_v26 }
0x22a1   : > { %v8780_v29 = vmul.f32 -1.442695, %v5292_v13  ;;  %v5407_v13 = vld [vmem:[%s12591_s13] sm:$0xff] }
0x22a3   : > { %10392 = vpow2.f32 %v8780_v29  ;;  %9429 = vmatpush3.msk.msra.mxu1 %vm646_vm1, %v5320_v1  ;;  %v5408_v29 = vld [vmem:[%s12591_s13 + $0x8] sm:$0xff] }
0x22a4   : > { %9970 = vmatprep.subr.bf16.mxu1 %v12650_v8 }
0x22ad   : > { %v10393_v42 = vpop.eup %10392 }
0x22ae   : > { %v5296_v48 = vadd.f32 1.0, %v10393_v42  ;;  %v11910_v42 = vpack.c.bf16 %v5408_v29, %v5407_v13 }
0x22b0   : > { %10394 = vrcp.f32 %v5296_v48 }
0x22ba   : > { %v10395_v36 = vpop.eup %10394 }
0x22bb   : > { %v5310_v37 = vsub.f32 1.0, %v10395_v36  ;;  %v5316_v53 = vmul.f32 %v10395_v36, %v11626_v14  ;;  %v5409_v14 = vld [vmem:[%s12591_s13 + $0x10] sm:$0xff] }
0x2311   : > { %v5301_v54 = vpop.permute.xlu0 %5300 }
0x2312   : > { %v5303_v31 = vmul.f32 %v10395_v36, %v5301_v54  ;;  %v11933_v54 = vld [vmem:[%s12590_s12] ss:$0 sm:$0xff] }
0x2314   : > { %5305 = vrot.lane.b32.xlu1 %v5303_v31, %s10534_s18 }
0x2386   : > { %v5306_v38 = vpop.permute.xlu1 %5305 }
0x2387   : > { %v5308_v23 = vadd.f32 %v5306_v38, %v5206_v3 }
0x2389   : > { %10396 = vtanh.f32 %v5308_v23 }
0x2393   : > { %v10397_v9 = vpop.eup %10396 }
0x2394   : > { %5312 = vrot.lane.b32.xlu0 %v10397_v9, %s10536_s14 }
0x2398   : > { %5499 = vperm.xlu0 %10329, %v11689_v49  }
0x2406   : > { %v5313_v3 = vpop.permute.xlu0 %5312 }
0x2407   : > { %v5315_v21 = vmul.f32 %v5313_v3, %v5310_v37 }
0x2409   : > { %v11899_v25 = vadd.f32 %v5316_v53, %v5315_v21 }
0x240b   : > { %5329 = vrot.lane.b32.xlu1 %v11899_v25, %s10536_s14 }
0x240f   : > { %5494 = vperm.xlu1 %10332, %v11689_v49   ;;  %v5410_v49 = vld [vmem:[%s12591_s13 + $0x18] sm:$0xff] }
0x2410   : > { %v11926_v36 = vpack.c.bf16 %v5410_v49, %v5409_v14 }
0x2417   : > { %v5500_v21 = vpop.permute.xlu0 %5499 }
0x247d   : > { %v11912_v48 = vpop.permute.xlu1 %5329 }
0x247e   : > { %9431 = vmatmul.mubr.msk.f32.vlgmr.msra.gmra.mrb[56].mxu1 %vm1324_vm6, %v11912_v48 }
0x247f   : > { %9972 = vmatpush3.bf16.msra.mxu1 %v11910_v42  ;;  %9441 = vmatprep.mubr.msk.f32.mxu1 %vm10528_vm0, %v12649_v26 }
0x2480   : > { %9973 = vmatprep.subr.bf16.mxu1 %v12650_v8 }
0x2483   : > { %9975 = vmatpush3.bf16.msra.mxu1 %v11926_v36 }
0x2484   : > { %9444 = vmatprep.subr.mxu1 %v12649_v26 }
0x248e   : > { %v5495_v29 = vpop.permute.xlu1 %5494 }
0x2551   : > { %v5402_v31 = vpop.f32.mrb[56].mxu1 }
0x2552   : > { %v5403_v38 = vadd.f32 %v11933_v54, %v5402_v31  ;;  %v9432_v23 = vpop.f32.mrb[57].mxu1 }
0x2554   : > { %v5406_v9 = vmax.f32 %v5403_v38, 0.0 }
0x2556   : > { %9442 = vmatmul.mubr.msk.f32.vlgmr.msra.gmra.mrb[58].mxu1 %vm1530_vm7, %v5406_v9 }
0x2557   : > { %9446 = vmatprep.mubr.msk.f32.mxu1 %vm10528_vm0, %v12649_v26  ;;  %9445 = vmatpush3.msk.msra.mxu1 %vm646_vm1, %v5513_v43 }
0x2558   : > { %8790 = vmatprep.subr.msk.mxu1 %vm646_vm1, %v11674_v15 }
0x2629   : > { %v5487_v1 = vpop.f32.mrb[58].mxu1 }
0x262a   : > { %v5488_v37 = vadd.f32 %v11946_v30, %v5487_v1  ;;  %v9443_v3 = vpop.f32.mrb[59].mxu1  ;;  %v8787_v1 = vld [vmem:[%s10724_s21 + $0x28] sm:$0xff] }
0x262c   : > { %v5491_v53 = vmul.f32 0.0001, %v5488_v37 }
0x262e   : > { %v5502_v13 = vmul.f32 %v5500_v21, %v5491_v53  ;;  %v5497_v14 = vmul.f32 %v5495_v29, %v5491_v53 }
0x2630   : > { %5504 = vrot.lane.b32.xlu0 %v5502_v13, %s10530_s27 }
0x26a2   : > { %v5505_v49 = vpop.permute.xlu0 %5504 }
0x26a3   : > { %v5507_v31 = vadd.f32 %v5505_v49, %v5497_v14 }
0x26a5   : > { %v5508_v38 = vadd.f32 %v5507_v31, %v11656_v58 }
0x26a7   : > { %8786 = vst.msk [vmem:[%s11072_s15 + $0x20] sm:$0xff] %vm642_vm2, %v5508_v38  ;;  %9447 = vmatmul.mubr.msk.f32.vlgmr.msra.gmra.mrb[60].mxu1 %vm642_vm2, %v5508_v38 }
0x26a8   : > { %8791 = vmatpush1.msk.msra.mxu1 %vm646_vm1, %v11665_v27  ;;  %5692 = vmatprep.mubr.f32.mxu1 %v12649_v26 }
0x26a9   : > { %8796 = vmatprep.subr.msk.mxu1 %vm922_vm4, %v11702_v50 }
0x277a   : > { %v11961_v15 = vpop.f32.mrb[60].mxu1 }
0x277b   : > { %v5590_v23 = vsub.f32 %v5508_v38, %v11961_v15  ;;  %5599 = vrot.lane.b32.xlu1 %v11961_v15, %s10530_s27  ;;  %v9448_v58 = vpop.f32.mrb[61].mxu1 }
0x277d   : > { %v5591_v9 = vmul.f32 %v5590_v23, %v5590_v23 }
0x277f   : > { %v5592_v43 = vsel %vm642_vm2, %v5591_v9, 0.0 }
0x2780   : > { %5593 = vadd.xlane.f32.xlu0 %v5592_v43 }
0x27ed   : > { %v5600_v37 = vpop.permute.xlu1 %5599 }
0x27ee   : > { %v11968_v27 = vsub.f32 %v8787_v1, %v5600_v37 }
0x27f0   : > { %v5603_v3 = vmul.f32 %v11968_v27, %v11968_v27 }
0x27f2   : > { %v5604_v50 = vsel %vm734_vm3, %v5603_v3, 0.0 }
0x27f3   : > { %5605 = vadd.xlane.f32.xlu1 %v5604_v50 }
0x280d   : > { %v5594_v53 = vpop.xlane.xlu0 %5593 }
0x280e   : > { %v5595_v21 = vmax.f32 %v5594_v53, 1e-24 }
0x2810   : > { %10398 = vrsqrt.f32 %v5595_v21 }
0x281a   : > { %v10399_v13 = vpop.eup %10398 }
0x281b   : > { %v5597_v29 = vmul.f32 %v10399_v13, %v5590_v23 }
0x281d   : > { %8792 = vmatmul.mubr.msk.f32.vlgmr.msra.gmra.mrb[62].mxu1 %vm642_vm2, %v5597_v29  ;;  %8795 = vmatmul.mubr.msk.f32.vlgmr.msra.gmra.mrb[20].mxu0 %vm642_vm2, %v5597_v29 }
0x281e   : > { %8797 = vmatpush1.msk.msra.mxu1 %vm922_vm4, %v11698_v39  ;;  %5863 = vmatprep.mubr.f32.mxu1 %v12649_v26  ;;  %v5941_v39 = vld [vmem:[%s12584_s6] sm:$0xf] }
0x281f   : > { %8800 = vmatpush1.msk.msra.mxu0 %vm922_vm4, %v11705_v60  ;;  %5934 = vmatprep.mubr.f32.mxu0 %v12649_v26  ;;  %v5946_v60 = vrot.slane %v5941_v39, %v10935_v62 }
0x2820   : > { %10008 = vmatprep.subr.bf16.mxu0 %v12650_v8  ;;  %9977 = vmatprep.subr.bf16.mxu1 %v11724_v16  ;;  %v5954_v16 = vrot.slane %v5941_v39, %v10938_v2 }
0x2880   : > { %v5606_v14 = vpop.xlane.xlu1 %5605 }
0x2881   : > { %v5607_v49 = vmax.f32 %v5606_v14, 1e-24 }
0x2883   : > { %10400 = vrsqrt.f32 %v5607_v49 }
0x288d   : > { %v10401_v31 = vpop.eup %10400 }
0x288e   : > { %v5609_v38 = vmul.f32 %v10401_v31, %v11968_v27 }
0x2890   : > { %8798 = vmatmul.mubr.msk.f32.vlgmr.msra.gmra.mrb[62].mxu1 %vm734_vm3, %v5609_v38  ;;  %8801 = vmatmul.mubr.msk.f32.vlgmr.msra.gmra.mrb[20].mxu0 %vm734_vm3, %v5609_v38 }
0x2891   : > { %10010 = vmatpush1.bf16.msra.mxu0 %v11727_v57  ;;  %9979 = vmatpush3.bf16.msra.mxu1 %v11729_v0  ;;  %v12652_v57 = vld [vmem:[#allocation16_spill] sm:$0xff] }
0x2892   : > { %10011 = vmatprep.subr.bf16.mxu0 %v12650_v8  ;;  %9981 = vmatprep.subr.bf16.mxu1 %v11732_v19  ;;  %v5950_v0 = vrot.slane %v5941_v39, %v12652_v57  ;;  %v12653_v19 = vld [vmem:[#allocation17_spill] sm:$0xff] }
0x2895   : > { %10013 = vmatpush1.bf16.msra.mxu0 %v11737_v18  ;;  %9983 = vmatpush3.bf16.msra.mxu1 %v11740_v33  ;;  %v5958_v18 = vrot.slane %v5941_v39, %v12653_v19 }
0x2896   : > { %10014 = vmatprep.subr.bf16.mxu0 %v12650_v8  ;;  %9985 = vmatprep.subr.bf16.mxu1 %v11744_v59 }
0x2899   : > { %10016 = vmatpush1.bf16.msra.mxu0 %v11747_v11  ;;  %9987 = vmatpush3.bf16.msra.mxu1 %v11750_v35 }
0x289a   : > { %10017 = vmatprep.subr.bf16.mxu0 %v12650_v8  ;;  %9989 = vmatprep.subr.bf16.mxu1 %v11754_v22 }
0x289d   : > { %10019 = vmatpush1.bf16.msra.mxu0 %v11757_v12  ;;  %9991 = vmatpush3.bf16.msra.mxu1 %v11760_v56 }
0x289e   : > { %10020 = vmatprep.subr.bf16.mxu0 %v12650_v8  ;;  %9993 = vmatprep.subr.bf16.mxu1 %v11764_v51 }
0x28a1   : > { %10022 = vmatpush1.bf16.msra.mxu0 %v11767_v10  ;;  %9995 = vmatpush3.bf16.msra.mxu1 %v11770_v40 }
0x28a2   : > { %10023 = vmatprep.subr.bf16.mxu0 %v12650_v8  ;;  %9997 = vmatprep.subr.bf16.mxu1 %v11774_v47 }
0x28a5   : > { %10025 = vmatpush1.bf16.msra.mxu0 %v11777_v45  ;;  %9999 = vmatpush3.bf16.msra.mxu1 %v11780_v63  ;;  %v6183_v63 = vld [vmem:[%s12587_s9 + $0x10] sm:$0xf] }
0x28a6   : > { %10026 = vmatprep.subr.bf16.mxu0 %v12650_v8  ;;  %10001 = vmatprep.subr.bf16.mxu1 %v11784_v20 }
0x28a9   : > { %10028 = vmatpush1.bf16.msra.mxu0 %v11787_v6  ;;  %10003 = vmatpush3.bf16.msra.mxu1 %v11790_v61 }
0x28aa   : > { %10029 = vmatprep.subr.bf16.mxu0 %v12650_v8  ;;  %10005 = vmatprep.subr.bf16.mxu1 %v11820_v4 }
0x28ad   : > { %10031 = vmatpush1.bf16.msra.mxu0 %v11795_v34  ;;  %10007 = vmatpush3.bf16.msra.mxu1 %v11822_v24 }
0x28ae   : > { %10032 = vmatprep.subr.bf16.mxu0 %v12650_v8  ;;  %10050 = vmatprep.subr.bf16.mxu1 %v12650_v8 }
0x28b1   : > { %10034 = vmatpush1.bf16.msra.mxu0 %v11800_v28 }
0x28b2   : > { %10035 = vmatprep.subr.bf16.mxu0 %v12650_v8 }
0x28b5   : > { %10037 = vmatpush1.bf16.msra.mxu0 %v11804_v32 }
0x28b6   : > { %10038 = vmatprep.subr.bf16.mxu0 %v12650_v8 }
0x28b9   : > { %10040 = vmatpush1.bf16.msra.mxu0 %v11808_v17 }
0x28ba   : > { %10041 = vmatprep.subr.bf16.mxu0 %v12650_v8 }
0x28bd   : > { %10043 = vmatpush1.bf16.msra.mxu0 %v11812_v52 }
0x28be   : > { %10044 = vmatprep.subr.bf16.mxu0 %v12650_v8 }
0x28c1   : > { %10046 = vmatpush1.bf16.msra.mxu0 %v11817_v44 }
0x28c2   : > { %10047 = vmatprep.subr.bf16.mxu0 %v12650_v8 }
0x28c5   : > { %10049 = vmatpush1.bf16.msra.mxu0 %v11826_v55 }
0x2963   : > { %v5865_v33 = vpop.f32.mrb[62].mxu1  ;;  %v5936_v59 = vpop.f32.mrb[20].mxu0 }
0x2964   : > { %v5963_v11 = vadd.f32 %v5946_v60, %v5865_v33  ;;  %v5965_v35 = vadd.f32 %v5954_v16, %v5936_v59  ;;  %v5867_v22 = vpop.f32.mrb[63].mxu1  ;;  %v5938_v12 = vpop.f32.mrb[21].mxu0 }
0x2965   : > { %v5964_v56 = vadd.f32 %v5950_v0, %v5867_v22  ;;  %v5966_v51 = vadd.f32 %v5958_v18, %v5938_v12  ;;  %v12109_v22 = vld [vmem:[%s12583_s5 + $0x8] sm:$0xff] }
0x2966   : > { %v5967_v47 = vmax.f32 %v5963_v11, 0.0  ;;  %v5969_v45 = vmax.f32 %v5965_v35, 0.0 }
0x2967   : > { %v5968_v10 = vmax.f32 %v5964_v56, 0.0  ;;  %v5970_v40 = vmax.f32 %v5966_v51, 0.0  ;;  %v12117_v56 = vcombine.high %v12109_v22, %v12109_v22  ;;  %v8814_v51 = vld [vmem:[%s10724_s21 + $0x30] sm:$0xff] }
0x2969   : > { %6105 = vmatprep.mubr.f32.mxu1 %v5968_v10  ;;  %8803 = vmatprep.mubr.msk.f32.mxu0 %vm1170_vm5, %v5970_v40 }
0x296a   : > { %6106 = vmatmul.mubr.f32.vlgmr.msra.gmra.mrb[64].mxu1 %v5967_v47  ;;  %6176 = vmatmul.mubr.f32.vlgmr.msra.gmra.mrb[22].mxu0 %v5969_v45 }
0x296b   : > { %10052 = vmatpush3.bf16.msra.mxu1 %v11846_v7  ;;  %9455 = vmatprep.mubr.msk.f32.mxu1 %vm10528_vm0, %v12649_v26 }
0x296c   : > { %9453 = vmatprep.subr.mxu1 %v12649_v26  ;;  %6735 = vmatprep.mubr.f32.mxu0 %v12649_v26 }
0x296d   : > { %8820 = vmatprep.subr.msk.mxu0 %vm646_vm1, %v12117_v56 }
0x296e   : > { %8821 = vmatpush1.msk.msra.mxu0 %vm646_vm1, %v12109_v22 }
0x296f   : > { %9454 = vmatpush3.msk.msra.mxu1 %vm646_vm1, %v6183_v63  ;;  %v6582_v63 = vld [vmem:[%s12582_s4] sm:$0xff] }
0x2970   : > { %9456 = vmatmul.mubr.msk.f32.vlgmr.msra.gmra.mrb[66].mxu1 %vm1324_vm6, %v11912_v48  ;;  %10053 = vmatprep.subr.bf16.mxu1 %v12650_v8 }
0x2971   : > { %10055 = vmatpush3.bf16.msra.mxu1 %v11889_v41  ;;  %9464 = vmatprep.mubr.msk.f32.mxu1 %vm10528_vm0, %v12649_v26 }
0x2972   : > { %9462 = vmatprep.subr.mxu1 %v12649_v26 }
0x2a3d   : > { %v9158_v7 = vpop.f32.mrb[64].mxu1  ;;  %v6177_v20 = vpop.f32.mrb[22].mxu0 }
0x2a3e   : > { %v9159_v6 = vpop.f32.mrb[65].mxu1  ;;  %v6179_v61 = vpop.f32.mrb[23].mxu0 }
0x2a3f   : > { %v9160_v34 = vadd.f32 %v9159_v6, %v9158_v7  ;;  %v12654_v7 = vld [vmem:[#allocation15_spill] sm:$0xff]  ;;  %v6743_v6 = vcombine.high %v6582_v63, %v6582_v63 }
0x2a41   : > { %v6108_v28 = vadd.f32 %v9160_v34, %v11870_v5  ;;  %v12144_v34 = vrot.slane %v6743_v6, %v12654_v7  ;;  %v6983_v6 = vld [vmem:[#allocation3 + $0x140] sm:$0xff] }
0x2a43   : > { %v6178_v32 = vadd.f32 %v6177_v20, %v6108_v28  ;;  %v6260_v17 = vpop.f32.mrb[66].mxu1  ;;  %v12137_v20 = vrot.slane %v6582_v63, %v12654_v7  ;;  %v12150_v28 = vcombine.high %v12144_v34, %v12144_v34  ;;  %v6968_v63 = vld [vmem:[#allocation3 + $0xc8] sm:$0xff] }
0x2a44   : > { %v6261_v52 = vadd.f32 %v11876_v46, %v6260_v17  ;;  %v9457_v44 = vpop.f32.mrb[67].mxu1  ;;  %v6292_v46 = vld [vmem:[%s12589_s11 + $0x10] sm:$0xf] }
0x2a45   : > { %9463 = vmatpush3.msk.msra.mxu1 %vm646_vm1, %v6292_v46  ;;  %v12141_v61 = vcombine.high %v12137_v20, %v12137_v20  ;;  %8826 = vmatprep.subr.msk.mxu0 %vm922_vm4, %v12150_v28  ;;  %v6962_v46 = vld [vmem:[#allocation3 + $0x98] sm:$0xff] }
0x2a46   : > { %6272 = vrot.lane.b32.xlu0 %v6261_v52, %s10533_s30  ;;  %v6264_v4 = vadd.f32 %v6261_v52, %v6178_v32  ;;  %10056 = vmatprep.subr.bf16.mxu1 %v12650_v8 }
0x2a48   : > { %v8807_v24 = vmul.f32 -1.442695, %v6264_v4  ;;  %v6959_v4 = vld [vmem:[#allocation3 + $0x80] sm:$0xff] }
0x2a4a   : > { %10402 = vpow2.f32 %v8807_v24  ;;  %v6960_v24 = vld [vmem:[#allocation3 + $0x88] sm:$0xff] }
0x2a54   : > { %v10403_v55 = vpop.eup %10402 }
0x2a55   : > { %v6268_v41 = vadd.f32 1.0, %v10403_v55  ;;  %v12163_v55 = vpack.c.bf16 %v6960_v24, %v6959_v4  ;;  %v6952_v4 = vld [vmem:[#allocation3 + $0x48] sm:$0xff]  ;;  %v6969_v24 = vld [vmem:[#allocation3 + $0xd0] sm:$0xff] }
0x2a57   : > { %10404 = vrcp.f32 %v6268_v41 }
0x2a61   : > { %v10405_v48 = vpop.eup %10404 }
0x2a62   : > { %v6282_v1 = vsub.f32 1.0, %v10405_v48  ;;  %v6288_v3 = vmul.f32 %v10405_v48, %v11899_v25 }
0x2ab8   : > { %v6273_v23 = vpop.permute.xlu0 %6272 }
0x2ab9   : > { %v6275_v58 = vmul.f32 %v10405_v48, %v6273_v23  ;;  %v6975_v23 = vld [vmem:[#allocation3 + $0x100] sm:$0xff] }
0x2abb   : > { %6277 = vrot.lane.b32.xlu1 %v6275_v58, %s10534_s18  ;;  %v6976_v58 = vld [vmem:[#allocation3 + $0x108] sm:$0xff] }
0x2b2d   : > { %v6278_v9 = vpop.permute.xlu1 %6277 }
0x2b2e   : > { %v6280_v5 = vadd.f32 %v6278_v9, %v6178_v32  ;;  %v6943_v9 = vld [vmem:[#allocation3] sm:$0xff] }
0x2b30   : > { %10406 = vtanh.f32 %v6280_v5  ;;  %v6944_v5 = vld [vmem:[#allocation3 + $0x8] sm:$0xff] }
0x2b3a   : > { %v10407_v43 = vpop.eup %10406 }
0x2b3b   : > { %6284 = vrot.lane.b32.xlu0 %v10407_v43, %s10536_s14  ;;  %v6961_v43 = vld [vmem:[#allocation3 + $0x90] sm:$0xff] }
0x2b3f   : > { %6471 = vperm.xlu0 %10329, %v11968_v27  }
0x2bad   : > { %v6285_v37 = vpop.permute.xlu0 %6284 }
0x2bae   : > { %v6287_v50 = vmul.f32 %v6285_v37, %v6282_v1  ;;  %v12166_v37 = vpack.c.bf16 %v6976_v58, %v6975_v23  ;;  %v6985_v23 = vld [vmem:[#allocation3 + $0x150] sm:$0xff] }
0x2bb0   : > { %v12065_v53 = vadd.f32 %v6288_v3, %v6287_v50  ;;  %v6977_v3 = vld [vmem:[#allocation3 + $0x110] sm:$0xff]  ;;  %v12168_v50 = vpack.c.bf16 %v6944_v5, %v6943_v9  ;;  %v6986_v9 = vld [vmem:[#allocation3 + $0x158] sm:$0xff] }
0x2bb2   : > { %6301 = vrot.lane.b32.xlu1 %v12065_v53, %s10536_s14 }
0x2bb6   : > { %6466 = vperm.xlu1 %10332, %v11968_v27  }
0x2c24   : > { %v12070_v21 = vpop.permute.xlu1 %6301 }
0x2c25   : > { %9465 = vmatmul.mubr.msk.f32.vlgmr.msra.gmra.mrb[68].mxu1 %vm1324_vm6, %v12070_v21 }
0x2c26   : > { %10058 = vmatpush3.bf16.msra.mxu1 %v11910_v42  ;;  %9475 = vmatprep.mubr.msk.f32.mxu1 %vm10528_vm0, %v12649_v26  ;;  %v6485_v42 = vld [vmem:[%s12581_s3] sm:$0xf] }
0x2c27   : > { %10059 = vmatprep.subr.bf16.mxu1 %v12650_v8 }
0x2c2a   : > { %10061 = vmatpush3.bf16.msra.mxu1 %v11926_v36 }
0x2c2b   : > { %9478 = vmatprep.subr.mxu1 %v12649_v26 }
0x2c35   : > { %v6467_v39 = vpop.permute.xlu1 %6466 }
0x2cf8   : > { %v6374_v25 = vpop.f32.mrb[68].mxu1 }
0x2cf9   : > { %v6375_v13 = vadd.f32 %v11933_v54, %v6374_v25  ;;  %v9466_v27 = vpop.f32.mrb[69].mxu1  ;;  %v6472_v54 = vpop.permute.xlu0 %6471 }
0x2cfa   : > { %v12171_v27 = vpack.c.bf16 %v6962_v46, %v6961_v43  ;;  %v6953_v43 = vld [vmem:[#allocation3 + $0x50] sm:$0xff]  ;;  %v6954_v46 = vld [vmem:[#allocation3 + $0x58] sm:$0xff] }
0x2cfb   : > { %v6378_v29 = vmax.f32 %v6375_v13, 0.0  ;;  %v6978_v13 = vld [vmem:[#allocation3 + $0x118] sm:$0xff] }
0x2cfd   : > { %9476 = vmatmul.mubr.msk.f32.vlgmr.msra.gmra.mrb[70].mxu1 %vm1530_vm7, %v6378_v29  ;;  %v6945_v29 = vld [vmem:[#allocation3 + $0x10] sm:$0xff] }
0x2cfe   : > { %9480 = vmatprep.mubr.msk.f32.mxu1 %vm10528_vm0, %v12649_v26  ;;  %9479 = vmatpush3.msk.msra.mxu1 %vm646_vm1, %v6485_v42  ;;  %v6946_v42 = vld [vmem:[#allocation3 + $0x18] sm:$0xff] }
0x2dd0   : > { %v6459_v36 = vpop.f32.mrb[70].mxu1 }
0x2dd1   : > { %v6460_v14 = vadd.f32 %v11946_v30, %v6459_v36  ;;  %v9477_v49 = vpop.f32.mrb[71].mxu1  ;;  %v6963_v36 = vld [vmem:[#allocation3 + $0xa0] sm:$0xff] }
0x2dd2   : > { %v12176_v49 = vpack.c.bf16 %v6978_v13, %v6977_v3  ;;  %v6972_v3 = vld [vmem:[#allocation3 + $0xe8] sm:$0xff]  ;;  %v6987_v13 = vld [vmem:[#allocation3 + $0x160] sm:$0xff] }
0x2dd3   : > { %v6463_v31 = vmul.f32 0.0001, %v6460_v14  ;;  %v6964_v14 = vld [vmem:[#allocation3 + $0xa8] sm:$0xff] }
0x2dd5   : > { %v6474_v38 = vmul.f32 %v6472_v54, %v6463_v31  ;;  %v6469_v60 = vmul.f32 %v6467_v39, %v6463_v31  ;;  %v6979_v31 = vld [vmem:[#allocation3 + $0x120] sm:$0xff]  ;;  %v12179_v54 = vpack.c.bf16 %v6946_v42, %v6945_v29  ;;  %v12183_v39 = vpack.c.bf16 %v6964_v14, %v6963_v36  ;;  %v6988_v42 = vld [vmem:[#allocation3 + $0x168] sm:$0xff] }
0x2dd6   : > { %v12219_v29 = vpack.c.bf16 %v6954_v46, %v6953_v43  ;;  %v6955_v14 = vld [vmem:[#allocation3 + $0x60] sm:$0xff]  ;;  %v6973_v46 = vld [vmem:[#allocation3 + $0xf0] sm:$0xff] }
0x2dd7   : > { %6476 = vrot.lane.b32.xlu0 %v6474_v38, %s10530_s27  ;;  %v6980_v38 = vld [vmem:[#allocation3 + $0x128] sm:$0xff] }
0x2e49   : > { %v6477_v16 = vpop.permute.xlu0 %6476 }
0x2e4a   : > { %v6479_v0 = vadd.f32 %v6477_v16, %v6469_v60  ;;  %v6947_v60 = vld [vmem:[#allocation3 + $0x20] sm:$0xff]  ;;  %v6948_v16 = vld [vmem:[#allocation3 + $0x28] sm:$0xff] }
0x2e4c   : > { %v6480_v18 = vadd.f32 %v6479_v0, %v11961_v15  ;;  %v12104_v15 = vld [vmem:[%s12583_s5] sm:$0xff]  ;;  %v6965_v0 = vld [vmem:[#allocation3 + $0xb0] sm:$0xff] }
0x2e4d   : > { %v12113_v12 = vcombine.high %v12104_v15, %v12104_v15 }
0x2e4e   : > { %8813 = vst.msk [vmem:[%s11072_s15 + $0x28] sm:$0xff] %vm642_vm2, %v6480_v18  ;;  %9481 = vmatmul.mubr.msk.f32.vlgmr.msra.gmra.mrb[72].mxu1 %vm642_vm2, %v6480_v18 }
0x2e4f   : > { %6664 = vmatprep.mubr.f32.mxu1 %v12649_v26  ;;  %8817 = vmatprep.subr.msk.mxu1 %vm646_vm1, %v12113_v12 }
0x2e50   : > { %8818 = vmatpush1.msk.msra.mxu1 %vm646_vm1, %v12104_v15 }
0x2e51   : > { %8823 = vmatprep.subr.msk.mxu1 %vm922_vm4, %v12141_v61 }
0x2f21   : > { %v12095_v30 = vpop.f32.mrb[72].mxu1 }
0x2f22   : > { %v6562_v33 = vsub.f32 %v6480_v18, %v12095_v30  ;;  %6571 = vrot.lane.b32.xlu1 %v12095_v30, %s10530_s27  ;;  %v9482_v59 = vpop.f32.mrb[73].mxu1  ;;  %v6966_v18 = vld [vmem:[#allocation3 + $0xb8] sm:$0xff] }
0x2f23   : > { %v6981_v59 = vld [vmem:[#allocation3 + $0x130] sm:$0xff] }
0x2f24   : > { %v6563_v11 = vmul.f32 %v6562_v33, %v6562_v33 }
0x2f26   : > { %v6564_v35 = vsel %vm642_vm2, %v6563_v11, 0.0  ;;  %v12189_v11 = vpack.c.bf16 %v6948_v16, %v6947_v60  ;;  %v6989_v16 = vld [vmem:[#allocation3 + $0x170] sm:$0xff] }
0x2f27   : > { %6565 = vadd.xlane.f32.xlu0 %v6564_v35  ;;  %v6982_v35 = vld [vmem:[#allocation3 + $0x138] sm:$0xff] }
0x2f28   : > { %v12196_v7 = vpack.c.bf16 %v6982_v35, %v6981_v59  ;;  %v6991_v59 = vld [vmem:[#allocation3 + $0x180] sm:$0xff]  ;;  %v6992_v35 = vld [vmem:[#allocation3 + $0x188] sm:$0xff] }
0x2f94   : > { %v6572_v10 = vpop.permute.xlu1 %6571 }
0x2f95   : > { %v12128_v40 = vsub.f32 %v8814_v51, %v6572_v10  ;;  %v12193_v51 = vpack.c.bf16 %v6966_v18, %v6965_v0  ;;  %v6949_v10 = vld [vmem:[#allocation3 + $0x30] sm:$0xff]  ;;  %v6990_v0 = vld [vmem:[#allocation3 + $0x178] sm:$0xff] }
0x2f96   : > { %v12234_v18 = vpack.c.bf16 %v6990_v0, %v6989_v16  ;;  %v7002_v16 = vld [vmem:[#allocation3 + $0x1d8] sm:$0xff] }
0x2f97   : > { %v6575_v47 = vmul.f32 %v12128_v40, %v12128_v40 }
0x2f99   : > { %v6576_v45 = vsel %vm734_vm3, %v6575_v47, 0.0  ;;  %v6950_v47 = vld [vmem:[#allocation3 + $0x38] sm:$0xff] }
0x2f9a   : > { %6577 = vadd.xlane.f32.xlu1 %v6576_v45  ;;  %v6967_v45 = vld [vmem:[#allocation3 + $0xc0] sm:$0xff] }
0x2fb4   : > { %v6566_v32 = vpop.xlane.xlu0 %6565 }
0x2fb5   : > { %v6567_v17 = vmax.f32 %v6566_v32, 1e-24  ;;  %v12199_v32 = vpack.c.bf16 %v6950_v47, %v6949_v10  ;;  %v12239_v10 = vpack.c.bf16 %v6992_v35, %v6991_v59  ;;  %v6993_v47 = vld [vmem:[#allocation3 + $0x190] sm:$0xff]  ;;  %v6913_v59 = vld [vmem:[%s12584_s6] sm:$0xf] }
0x2fb6   : > { %v6918_v35 = vrot.slane %v6913_v59, %v10935_v62 }
0x2fb7   : > { %10408 = vrsqrt.f32 %v6567_v17  ;;  %v6984_v17 = vld [vmem:[#allocation3 + $0x148] sm:$0xff] }
0x2fc1   : > { %v10409_v52 = vpop.eup %10408 }
0x2fc2   : > { %v6569_v44 = vmul.f32 %v10409_v52, %v6562_v33  ;;  %v12186_v33 = vpack.c.bf16 %v6980_v38, %v6979_v31  ;;  %v12203_v52 = vpack.c.bf16 %v6968_v63, %v6967_v45  ;;  %v6956_v31 = vld [vmem:[#allocation3 + $0x68] sm:$0xff]  ;;  %v12226_v38 = vpack.c.bf16 %v6988_v42, %v6987_v13  ;;  %v6994_v45 = vld [vmem:[#allocation3 + $0x198] sm:$0xff]  ;;  %v6957_v13 = vld [vmem:[#allocation3 + $0x70] sm:$0xff] }
0x2fc3   : > { %v12229_v60 = vpack.c.bf16 %v6956_v31, %v6955_v14  ;;  %v12243_v63 = vpack.c.bf16 %v6994_v45, %v6993_v47  ;;  %v6958_v42 = vld [vmem:[#allocation3 + $0x78] sm:$0xff]  ;;  %v7001_v31 = vld [vmem:[#allocation3 + $0x1d0] sm:$0xff]  ;;  %v6926_v47 = vrot.slane %v6913_v59, %v10938_v2  ;;  %v6922_v45 = vrot.slane %v6913_v59, %v12652_v57 }
0x2fc4   : > { %8819 = vmatmul.mubr.msk.f32.vlgmr.msra.gmra.mrb[74].mxu1 %vm642_vm2, %v6569_v44  ;;  %8822 = vmatmul.mubr.msk.f32.vlgmr.msra.gmra.mrb[24].mxu0 %vm642_vm2, %v6569_v44  ;;  %v6951_v44 = vld [vmem:[#allocation3 + $0x40] sm:$0xff]  ;;  %v12261_v14 = vpack.c.bf16 %v6958_v42, %v6957_v13  ;;  %v12265_v0 = vpack.c.bf16 %v7002_v16, %v7001_v31 }
0x2fc5   : > { %8824 = vmatpush1.msk.msra.mxu1 %vm922_vm4, %v12137_v20  ;;  %6835 = vmatprep.mubr.f32.mxu1 %v12649_v26  ;;  %v12209_v58 = vpack.c.bf16 %v6952_v4, %v6951_v44  ;;  %v6997_v4 = vld [vmem:[#allocation3 + $0x1b0] sm:$0xff] }
0x2fc6   : > { %8827 = vmatpush1.msk.msra.mxu0 %vm922_vm4, %v12144_v34  ;;  %6906 = vmatprep.mubr.f32.mxu0 %v12649_v26 }
0x2fc7   : > { %10094 = vmatprep.subr.bf16.mxu0 %v12650_v8  ;;  %10063 = vmatprep.subr.bf16.mxu1 %v12163_v55 }
0x3027   : > { %v6578_v41 = vpop.xlane.xlu1 %6577 }
0x3028   : > { %v6579_v48 = vmax.f32 %v6578_v41, 1e-24  ;;  %v6970_v41 = vld [vmem:[#allocation3 + $0xd8] sm:$0xff] }
0x3029   : > { %v12213_v5 = vpack.c.bf16 %v6970_v41, %v6969_v24  ;;  %v6998_v24 = vld [vmem:[#allocation3 + $0x1b8] sm:$0xff] }
0x302a   : > { %10410 = vrsqrt.f32 %v6579_v48  ;;  %v12206_v48 = vpack.c.bf16 %v6984_v17, %v6983_v6  ;;  %v6995_v6 = vld [vmem:[#allocation3 + $0x1a0] sm:$0xff]  ;;  %v6996_v17 = vld [vmem:[#allocation3 + $0x1a8] sm:$0xff]  ;;  %v12251_v41 = vpack.c.bf16 %v6998_v24, %v6997_v4 }
0x302b   : > { %v12247_v44 = vpack.c.bf16 %v6996_v17, %v6995_v6  ;;  %v6930_v6 = vrot.slane %v6913_v59, %v12653_v19 }
0x3034   : > { %v10411_v1 = vpop.eup %10410 }
0x3035   : > { %v6581_v25 = vmul.f32 %v10411_v1, %v12128_v40  ;;  %v6971_v1 = vld [vmem:[#allocation3 + $0xe0] sm:$0xff] }
0x3036   : > { %v12223_v36 = vpack.c.bf16 %v6972_v3, %v6971_v1  ;;  %v6974_v1 = vld [vmem:[#allocation3 + $0xf8] sm:$0xff] }
0x3037   : > { %8825 = vmatmul.mubr.msk.f32.vlgmr.msra.gmra.mrb[74].mxu1 %vm734_vm3, %v6581_v25  ;;  %8828 = vmatmul.mubr.msk.f32.vlgmr.msra.gmra.mrb[24].mxu0 %vm734_vm3, %v6581_v25  ;;  %v12216_v25 = vpack.c.bf16 %v6986_v9, %v6985_v23  ;;  %v6999_v23 = vld [vmem:[#allocation3 + $0x1c0] sm:$0xff]  ;;  %v7000_v9 = vld [vmem:[#allocation3 + $0x1c8] sm:$0xff]  ;;  %v12259_v3 = vpack.c.bf16 %v6974_v1, %v6973_v46 }
0x3038   : > { %10096 = vmatpush1.bf16.msra.mxu0 %v12166_v37  ;;  %10065 = vmatpush3.bf16.msra.mxu1 %v12168_v50  ;;  %v12256_v43 = vpack.c.bf16 %v7000_v9, %v6999_v23  ;;  %v7154_v1 = vld [vmem:[%s12587_s9 + $0x8] sm:$0xff] }
0x3039   : > { %10097 = vmatprep.subr.bf16.mxu0 %v12650_v8  ;;  %10067 = vmatprep.subr.bf16.mxu1 %v12171_v27 }
0x303c   : > { %10099 = vmatpush1.bf16.msra.mxu0 %v12176_v49  ;;  %10069 = vmatpush3.bf16.msra.mxu1 %v12179_v54 }
0x303d   : > { %10100 = vmatprep.subr.bf16.mxu0 %v12650_v8  ;;  %10071 = vmatprep.subr.bf16.mxu1 %v12183_v39 }
0x3040   : > { %10102 = vmatpush1.bf16.msra.mxu0 %v12186_v33  ;;  %10073 = vmatpush3.bf16.msra.mxu1 %v12189_v11 }
0x3041   : > { %10103 = vmatprep.subr.bf16.mxu0 %v12650_v8  ;;  %10075 = vmatprep.subr.bf16.mxu1 %v12193_v51 }
0x3044   : > { %10105 = vmatpush1.bf16.msra.mxu0 %v12196_v7  ;;  %10077 = vmatpush3.bf16.msra.mxu1 %v12199_v32 }
0x3045   : > { %10106 = vmatprep.subr.bf16.mxu0 %v12650_v8  ;;  %10079 = vmatprep.subr.bf16.mxu1 %v12203_v52 }
0x3048   : > { %10108 = vmatpush1.bf16.msra.mxu0 %v12206_v48  ;;  %10081 = vmatpush3.bf16.msra.mxu1 %v12209_v58 }
0x3049   : > { %10109 = vmatprep.subr.bf16.mxu0 %v12650_v8  ;;  %10083 = vmatprep.subr.bf16.mxu1 %v12213_v5 }
0x304c   : > { %10111 = vmatpush1.bf16.msra.mxu0 %v12216_v25  ;;  %10085 = vmatpush3.bf16.msra.mxu1 %v12219_v29 }
0x304d   : > { %10112 = vmatprep.subr.bf16.mxu0 %v12650_v8  ;;  %10087 = vmatprep.subr.bf16.mxu1 %v12223_v36 }
0x3050   : > { %10114 = vmatpush1.bf16.msra.mxu0 %v12226_v38  ;;  %10089 = vmatpush3.bf16.msra.mxu1 %v12229_v60 }
0x3051   : > { %10115 = vmatprep.subr.bf16.mxu0 %v12650_v8  ;;  %10091 = vmatprep.subr.bf16.mxu1 %v12259_v3 }
0x3054   : > { %10117 = vmatpush1.bf16.msra.mxu0 %v12234_v18  ;;  %10093 = vmatpush3.bf16.msra.mxu1 %v12261_v14 }
0x3055   : > { %10118 = vmatprep.subr.bf16.mxu0 %v12650_v8  ;;  %10136 = vmatprep.subr.bf16.mxu1 %v12650_v8 }
0x3058   : > { %10120 = vmatpush1.bf16.msra.mxu0 %v12239_v10 }
0x3059   : > { %10121 = vmatprep.subr.bf16.mxu0 %v12650_v8 }
0x305c   : > { %10123 = vmatpush1.bf16.msra.mxu0 %v12243_v63 }
0x305d   : > { %10124 = vmatprep.subr.bf16.mxu0 %v12650_v8 }
0x3060   : > { %10126 = vmatpush1.bf16.msra.mxu0 %v12247_v44 }
0x3061   : > { %10127 = vmatprep.subr.bf16.mxu0 %v12650_v8 }
0x3064   : > { %10129 = vmatpush1.bf16.msra.mxu0 %v12251_v41 }
0x3065   : > { %10130 = vmatprep.subr.bf16.mxu0 %v12650_v8 }
0x3068   : > { %10132 = vmatpush1.bf16.msra.mxu0 %v12256_v43 }
0x3069   : > { %10133 = vmatprep.subr.bf16.mxu0 %v12650_v8 }
0x306c   : > { %10135 = vmatpush1.bf16.msra.mxu0 %v12265_v0 }
0x306d   : > { %8847 = vmatprep.subr.msk.mxu0 %vm646_vm1, %v12117_v56  ;;  %v7153_v56 = vld [vmem:[%s12587_s9] sm:$0xff] }
0x306e   : > { %v12285_v57 = vpack.c.bf16 %v7154_v1, %v7153_v56 }
0x310a   : > { %v6837_v17 = vpop.f32.mrb[74].mxu1  ;;  %v6908_v4 = vpop.f32.mrb[24].mxu0 }
0x310b   : > { %v6935_v24 = vadd.f32 %v6918_v35, %v6837_v17  ;;  %v6937_v23 = vadd.f32 %v6926_v47, %v6908_v4  ;;  %v6839_v9 = vpop.f32.mrb[75].mxu1  ;;  %v6910_v46 = vpop.f32.mrb[25].mxu0  ;;  %v7155_v35 = vld [vmem:[%s12587_s9 + $0x10] sm:$0xf] }
0x310c   : > { %v6936_v13 = vadd.f32 %v6922_v45, %v6839_v9  ;;  %v6938_v42 = vadd.f32 %v6930_v6, %v6910_v46 }
0x310d   : > { %v6939_v59 = vmax.f32 %v6935_v24, 0.0  ;;  %v6941_v19 = vmax.f32 %v6937_v23, 0.0 }
0x310e   : > { %v6940_v31 = vmax.f32 %v6936_v13, 0.0  ;;  %v6942_v16 = vmax.f32 %v6938_v42, 0.0 }
0x3110   : > { %7077 = vmatprep.mubr.f32.mxu1 %v6940_v31  ;;  %8830 = vmatprep.mubr.msk.f32.mxu0 %vm1170_vm5, %v6942_v16 }
0x3111   : > { %7078 = vmatmul.mubr.f32.vlgmr.msra.gmra.mrb[76].mxu1 %v6939_v59  ;;  %7148 = vmatmul.mubr.f32.vlgmr.msra.gmra.mrb[26].mxu0 %v6941_v19 }
0x3112   : > { %10138 = vmatpush3.bf16.msra.mxu1 %v12285_v57  ;;  %9489 = vmatprep.mubr.msk.f32.mxu1 %vm10528_vm0, %v12649_v26 }
0x3113   : > { %9487 = vmatprep.subr.mxu1 %v12649_v26  ;;  %8848 = vmatpush1.msk.msra.mxu0 %vm646_vm1, %v12109_v22  ;;  %v12309_v22 = vld [vmem:[%s12586_s8] ss:$0 sm:$0xff] }
0x3114   : > { %7707 = vmatprep.mubr.f32.mxu0 %v12649_v26  ;;  %8853 = vmatprep.subr.msk.mxu0 %vm922_vm4, %v12150_v28 }
0x3116   : > { %9488 = vmatpush3.msk.msra.mxu1 %vm646_vm1, %v7155_v35 }
0x3117   : > { %9490 = vmatmul.mubr.msk.f32.vlgmr.msra.gmra.mrb[78].mxu1 %vm1324_vm6, %v12070_v21  ;;  %10139 = vmatprep.subr.bf16.mxu1 %v12650_v8  ;;  %v12315_v21 = vld [vmem:[%s12588_s10] ss:$0 sm:$0xff] }
0x3118   : > { %9498 = vmatprep.mubr.msk.f32.mxu1 %vm10528_vm0, %v12649_v26 }
0x31e4   : > { %v9208_v19 = vpop.f32.mrb[76].mxu1  ;;  %v7149_v47 = vpop.f32.mrb[26].mxu0 }
0x31e5   : > { %v9209_v45 = vpop.f32.mrb[77].mxu1  ;;  %v7151_v6 = vpop.f32.mrb[27].mxu0 }
0x31e6   : > { %v9210_v28 = vadd.f32 %v9209_v45, %v9208_v19  ;;  %v7263_v45 = vld [vmem:[%s12589_s11 + $0x8] sm:$0xff] }
0x31e8   : > { %v7080_v17 = vadd.f32 %v9210_v28, %v12309_v22  ;;  %v7264_v28 = vld [vmem:[%s12589_s11 + $0x10] sm:$0xf] }
0x31ea   : > { %v7150_v4 = vadd.f32 %v7149_v47, %v7080_v17  ;;  %v7232_v24 = vpop.f32.mrb[78].mxu1  ;;  %v7262_v47 = vld [vmem:[%s12589_s11] sm:$0xff]  ;;  %v12655_v17 = vmov 0  }
0x31eb   : > { %v7233_v23 = vadd.f32 %v12315_v21, %v7232_v24  ;;  %v9491_v9 = vpop.f32.mrb[79].mxu1  ;;  %v12328_v6 = vpack.c.bf16 %v7263_v45, %v7262_v47 }
0x31ed   : > { %7244 = vrot.lane.b32.xlu0 %v7233_v23, %s10533_s30  ;;  %v7236_v46 = vadd.f32 %v7233_v23, %v7150_v4  ;;  %10141 = vmatpush3.bf16.msra.mxu1 %v12328_v6 }
0x31ee   : > { %9496 = vmatprep.subr.mxu1 %v12649_v26 }
0x31ef   : > { %v8834_v56 = vmul.f32 -1.442695, %v7236_v46 }
0x31f1   : > { %10412 = vpow2.f32 %v8834_v56  ;;  %9497 = vmatpush3.msk.msra.mxu1 %vm646_vm1, %v7264_v28  ;;  %v12656_v56 = vmov 1   ;;  %v7457_v28 = vld [vmem:[%s12581_s3] sm:$0xf] }
0x31f2   : > { %10142 = vmatprep.subr.bf16.mxu1 %v12650_v8 }
0x31fb   : > { %v10413_v1 = vpop.eup %10412 }
0x31fc   : > { %v7240_v13 = vadd.f32 1.0, %v10413_v1  ;;  %v7351_v1 = vld [vmem:[%s12591_s13] sm:$0xff] }
0x31fe   : > { %10414 = vrcp.f32 %v7240_v13  ;;  %v7352_v13 = vld [vmem:[%s12591_s13 + $0x8] sm:$0xff] }
0x3208   : > { %v10415_v42 = vpop.eup %10414 }
0x3209   : > { %v7260_v23 = vmul.f32 %v10415_v42, %v12065_v53 }
0x325f   : > { %v7245_v31 = vpop.permute.xlu0 %7244 }
0x3260   : > { %v7247_v16 = vmul.f32 %v10415_v42, %v7245_v31  ;;  %v12351_v31 = vpack.c.bf16 %v7352_v13, %v7351_v1 }
0x3262   : > { %7249 = vrot.lane.b32.xlu1 %v7247_v16, %s10534_s18 }
0x32d4   : > { %v7250_v59 = vpop.permute.xlu1 %7249 }
0x32d5   : > { %v7252_v35 = vadd.f32 %v7250_v59, %v7150_v4  ;;  %v7254_v4 = vsub.f32 1.0, %v10415_v42  ;;  %v7354_v42 = vld [vmem:[%s12591_s13 + $0x18] sm:$0xff]  ;;  %v12374_v59 = vld [vmem:[%s12590_s12] ss:$0 sm:$0xff] }
0x32d7   : > { %10416 = vtanh.f32 %v7252_v35 }
0x32e1   : > { %v10417_v19 = vpop.eup %10416 }
0x32e2   : > { %7256 = vrot.lane.b32.xlu0 %v10417_v19, %s10536_s14 }
0x32e6   : > { %7443 = vperm.xlu0 %10329, %v12128_v40  }
0x32ea   : > { %10333 = vset.pattern.permute.xlu0 %v12655_v17  ;;  %v12387_v17 = vld [vmem:[%s12647_s29] ss:$0 sm:$0xff] }
0x3354   : > { %v7257_v24 = vpop.permute.xlu0 %7256 }
0x3355   : > { %v7259_v9 = vmul.f32 %v7257_v24, %v7254_v4 }
0x3357   : > { %v12339_v46 = vadd.f32 %v7260_v23, %v7259_v9 }
0x3359   : > { %7273 = vrot.lane.b32.xlu1 %v12339_v46, %s10536_s14 }
0x335d   : > { %7438 = vperm.xlu1 %10332, %v12128_v40   ;;  %v7353_v40 = vld [vmem:[%s12591_s13 + $0x10] sm:$0xff] }
0x335e   : > { %v12367_v16 = vpack.c.bf16 %v7354_v42, %v7353_v40 }
0x3361   : > { %10334 = vset.pattern.permute.xlu1 %v12656_v56 }
0x3365   : > { %v7444_v1 = vpop.permute.xlu0 %7443 }
0x33cb   : > { %v12353_v53 = vpop.permute.xlu1 %7273 }
0x33cc   : > { %9499 = vmatmul.mubr.msk.f32.vlgmr.msra.gmra.mrb[80].mxu1 %vm1324_vm6, %v12353_v53 }
0x33cd   : > { %10144 = vmatpush3.bf16.msra.mxu1 %v12351_v31  ;;  %9509 = vmatprep.mubr.msk.f32.mxu1 %vm10528_vm0, %v12649_v26 }
0x33ce   : > { %10145 = vmatprep.subr.bf16.mxu1 %v12650_v8 }
0x33d1   : > { %10147 = vmatpush3.bf16.msra.mxu1 %v12367_v16 }
0x33d2   : > { %9512 = vmatprep.subr.mxu1 %v12649_v26 }
0x33dc   : > { %v7439_v40 = vpop.permute.xlu1 %7438 }
0x349f   : > { %v7346_v35 = vpop.f32.mrb[80].mxu1 }
0x34a0   : > { %v7347_v19 = vadd.f32 %v12374_v59, %v7346_v35  ;;  %v9500_v47 = vpop.f32.mrb[81].mxu1 }
0x34a2   : > { %v7350_v45 = vmax.f32 %v7347_v19, 0.0 }
0x34a4   : > { %9510 = vmatmul.mubr.msk.f32.vlgmr.msra.gmra.mrb[82].mxu1 %vm1530_vm7, %v7350_v45 }
0x34a5   : > { %9514 = vmatprep.mubr.msk.f32.mxu1 %vm10528_vm0, %v12649_v26  ;;  %9513 = vmatpush3.msk.msra.mxu1 %vm646_vm1, %v7457_v28 }
0x34a6   : > { %8844 = vmatprep.subr.msk.mxu1 %vm646_vm1, %v12113_v12 }
0x3577   : > { %v7431_v4 = vpop.f32.mrb[82].mxu1 }
0x3578   : > { %v7432_v24 = vadd.f32 %v12387_v17, %v7431_v4  ;;  %v9511_v23 = vpop.f32.mrb[83].mxu1 }
0x357a   : > { %v7435_v9 = vmul.f32 0.0001, %v7432_v24  ;;  %v8841_v24 = vld [vmem:[%s10724_s21 + $0x38] sm:$0xff] }
0x357c   : > { %v7446_v13 = vmul.f32 %v7444_v1, %v7435_v9  ;;  %v7441_v42 = vmul.f32 %v7439_v40, %v7435_v9 }
0x357e   : > { %7448 = vrot.lane.b32.xlu0 %v7446_v13, %s10530_s27 }
0x35f0   : > { %v7449_v35 = vpop.permute.xlu0 %7448 }
0x35f1   : > { %v7451_v19 = vadd.f32 %v7449_v35, %v7441_v42 }
0x35f3   : > { %v7452_v47 = vadd.f32 %v7451_v19, %v12095_v30 }
0x35f5   : > { %8840 = vst.msk [vmem:[%s11072_s15 + $0x30] sm:$0xff] %vm642_vm2, %v7452_v47  ;;  %9515 = vmatmul.mubr.msk.f32.vlgmr.msra.gmra.mrb[84].mxu1 %vm642_vm2, %v7452_v47 }
0x35f6   : > { %8845 = vmatpush1.msk.msra.mxu1 %vm646_vm1, %v12104_v15  ;;  %7636 = vmatprep.mubr.f32.mxu1 %v12649_v26 }
0x35f7   : > { %8850 = vmatprep.subr.msk.mxu1 %vm922_vm4, %v12141_v61 }
0x36c8   : > { %v12402_v12 = vpop.f32.mrb[84].mxu1 }
0x36c9   : > { %v7534_v45 = vsub.f32 %v7452_v47, %v12402_v12  ;;  %7543 = vrot.lane.b32.xlu1 %v12402_v12, %s10530_s27  ;;  %v9516_v30 = vpop.f32.mrb[85].mxu1 }
0x36cb   : > { %v7535_v28 = vmul.f32 %v7534_v45, %v7534_v45 }
0x36cd   : > { %v7536_v4 = vsel %vm642_vm2, %v7535_v28, 0.0 }
0x36ce   : > { %7537 = vadd.xlane.f32.xlu0 %v7536_v4 }
0x373b   : > { %v7544_v23 = vpop.permute.xlu1 %7543 }
0x373c   : > { %v12409_v15 = vsub.f32 %v8841_v24, %v7544_v23 }
0x373e   : > { %v7547_v9 = vmul.f32 %v12409_v15, %v12409_v15 }
0x3740   : > { %v7548_v61 = vsel %vm734_vm3, %v7547_v9, 0.0 }
0x3741   : > { %7549 = vadd.xlane.f32.xlu1 %v7548_v61 }
0x375b   : > { %v7538_v1 = vpop.xlane.xlu0 %7537 }
0x375c   : > { %v7539_v13 = vmax.f32 %v7538_v1, 1e-24 }
0x375e   : > { %10418 = vrsqrt.f32 %v7539_v13 }
0x3768   : > { %v10419_v40 = vpop.eup %10418 }
0x3769   : > { %v7541_v42 = vmul.f32 %v10419_v40, %v7534_v45 }
0x376b   : > { %8846 = vmatmul.mubr.msk.f32.vlgmr.msra.gmra.mrb[86].mxu1 %vm642_vm2, %v7541_v42  ;;  %8849 = vmatmul.mubr.msk.f32.vlgmr.msra.gmra.mrb[28].mxu0 %vm642_vm2, %v7541_v42 }
0x376c   : > { %8851 = vmatpush1.msk.msra.mxu1 %vm922_vm4, %v12137_v20  ;;  %7807 = vmatprep.mubr.f32.mxu1 %v12649_v26  ;;  %v7885_v20 = vld [vmem:[%s12584_s6] sm:$0xf] }
0x376d   : > { %8854 = vmatpush1.msk.msra.mxu0 %vm922_vm4, %v12144_v34  ;;  %7878 = vmatprep.mubr.f32.mxu0 %v12649_v26  ;;  %v7890_v34 = vrot.slane %v7885_v20, %v10935_v62  ;;  %v8127_v62 = vld [vmem:[%s12587_s9 + $0x10] sm:$0xf] }
0x376e   : > { %10180 = vmatprep.subr.bf16.mxu0 %v12650_v8  ;;  %10149 = vmatprep.subr.bf16.mxu1 %v12163_v55  ;;  %v7898_v55 = vrot.slane %v7885_v20, %v10938_v2 }
0x37ce   : > { %v7550_v35 = vpop.xlane.xlu1 %7549 }
0x37cf   : > { %v7551_v19 = vmax.f32 %v7550_v35, 1e-24 }
0x37d1   : > { %10420 = vrsqrt.f32 %v7551_v19 }
0x37db   : > { %v10421_v47 = vpop.eup %10420 }
0x37dc   : > { %v7553_v45 = vmul.f32 %v10421_v47, %v12409_v15 }
0x37de   : > { %8852 = vmatmul.mubr.msk.f32.vlgmr.msra.gmra.mrb[86].mxu1 %vm734_vm3, %v7553_v45  ;;  %8855 = vmatmul.mubr.msk.f32.vlgmr.msra.gmra.mrb[28].mxu0 %vm734_vm3, %v7553_v45 }
0x37df   : > { %10182 = vmatpush1.bf16.msra.mxu0 %v12166_v37  ;;  %10151 = vmatpush3.bf16.msra.mxu1 %v12168_v50  ;;  %v12657_v37 = vld [vmem:[#allocation16_spill] sm:$0xff] }
0x37e0   : > { %10183 = vmatprep.subr.bf16.mxu0 %v12650_v8  ;;  %10153 = vmatprep.subr.bf16.mxu1 %v12171_v27  ;;  %v7894_v50 = vrot.slane %v7885_v20, %v12657_v37  ;;  %v12658_v27 = vld [vmem:[#allocation17_spill] sm:$0xff]  ;;  %v8494_v37 = vld [vmem:[%s11072_s15 + $0x28] sm:$0xff] (%p12660_p12) }
0x37e3   : > { %10185 = vmatpush1.bf16.msra.mxu0 %v12176_v49  ;;  %10155 = vmatpush3.bf16.msra.mxu1 %v12179_v54  ;;  %v7902_v49 = vrot.slane %v7885_v20, %v12658_v27  ;;  %v8486_v20 = vld [vmem:[%s11072_s15 + $0x8] sm:$0xff] (%p12660_p12) }
0x37e4   : > { %10186 = vmatprep.subr.bf16.mxu0 %v12650_v8  ;;  %10157 = vmatprep.subr.bf16.mxu1 %v12183_v39 }
0x37e7   : > { %10188 = vmatpush1.bf16.msra.mxu0 %v12186_v33  ;;  %10159 = vmatpush3.bf16.msra.mxu1 %v12189_v11 }
0x37e8   : > { %10189 = vmatprep.subr.bf16.mxu0 %v12650_v8  ;;  %10161 = vmatprep.subr.bf16.mxu1 %v12193_v51 }
0x37eb   : > { %10191 = vmatpush1.bf16.msra.mxu0 %v12196_v7  ;;  %10163 = vmatpush3.bf16.msra.mxu1 %v12199_v32 }
0x37ec   : > { %10192 = vmatprep.subr.bf16.mxu0 %v12650_v8  ;;  %10165 = vmatprep.subr.bf16.mxu1 %v12203_v52 }
0x37ef   : > { %10194 = vmatpush1.bf16.msra.mxu0 %v12206_v48  ;;  %10167 = vmatpush3.bf16.msra.mxu1 %v12209_v58 }
0x37f0   : > { %10195 = vmatprep.subr.bf16.mxu0 %v12650_v8  ;;  %10169 = vmatprep.subr.bf16.mxu1 %v12213_v5 }
0x37f3   : > { %10197 = vmatpush1.bf16.msra.mxu0 %v12216_v25  ;;  %10171 = vmatpush3.bf16.msra.mxu1 %v12219_v29 }
0x37f4   : > { %10198 = vmatprep.subr.bf16.mxu0 %v12650_v8  ;;  %10173 = vmatprep.subr.bf16.mxu1 %v12223_v36 }
0x37f7   : > { %10200 = vmatpush1.bf16.msra.mxu0 %v12226_v38  ;;  %10175 = vmatpush3.bf16.msra.mxu1 %v12229_v60 }
0x37f8   : > { %10201 = vmatprep.subr.bf16.mxu0 %v12650_v8  ;;  %10177 = vmatprep.subr.bf16.mxu1 %v12259_v3 }
0x37fb   : > { %10203 = vmatpush1.bf16.msra.mxu0 %v12234_v18  ;;  %10179 = vmatpush3.bf16.msra.mxu1 %v12261_v14 }
0x37fc   : > { %10204 = vmatprep.subr.bf16.mxu0 %v12650_v8  ;;  %10222 = vmatprep.subr.bf16.mxu1 %v12650_v8 }
0x37ff   : > { %10206 = vmatpush1.bf16.msra.mxu0 %v12239_v10 }
0x3800   : > { %10207 = vmatprep.subr.bf16.mxu0 %v12650_v8 }
0x3803   : > { %10209 = vmatpush1.bf16.msra.mxu0 %v12243_v63 }
0x3804   : > { %10210 = vmatprep.subr.bf16.mxu0 %v12650_v8 }
0x3807   : > { %10212 = vmatpush1.bf16.msra.mxu0 %v12247_v44 }
0x3808   : > { %10213 = vmatprep.subr.bf16.mxu0 %v12650_v8 }
0x380b   : > { %10215 = vmatpush1.bf16.msra.mxu0 %v12251_v41 }
0x380c   : > { %10216 = vmatprep.subr.bf16.mxu0 %v12650_v8 }
0x380f   : > { %10218 = vmatpush1.bf16.msra.mxu0 %v12256_v43 }
0x3810   : > { %10219 = vmatprep.subr.bf16.mxu0 %v12650_v8 }
0x3813   : > { %10221 = vmatpush1.bf16.msra.mxu0 %v12265_v0 }
0x38b1   : > { %v7809_v54 = vpop.f32.mrb[86].mxu1  ;;  %v7880_v39 = vpop.f32.mrb[28].mxu0 }
0x38b2   : > { %v7907_v33 = vadd.f32 %v7890_v34, %v7809_v54  ;;  %v7909_v11 = vadd.f32 %v7898_v55, %v7880_v39  ;;  %v7811_v51 = vpop.f32.mrb[87].mxu1  ;;  %v7882_v7 = vpop.f32.mrb[29].mxu0  ;;  %v8488_v34 = vld [vmem:[%s11072_s15 + $0x10] sm:$0xff] (%p12660_p12)  ;;  %v8492_v55 = vld [vmem:[%s11072_s15 + $0x20] sm:$0xff] (%p12660_p12) }
0x38b3   : > { %v7908_v32 = vadd.f32 %v7894_v50, %v7811_v51  ;;  %v7910_v52 = vadd.f32 %v7902_v49, %v7882_v7  ;;  %v8496_v50 = vld [vmem:[%s11072_s15 + $0x30] sm:$0xff] (%p12660_p12) }
0x38b4   : > { %v7911_v5 = vmax.f32 %v7907_v33, 0.0  ;;  %v7913_v25 = vmax.f32 %v7909_v11, 0.0 }
0x38b5   : > { %v7912_v48 = vmax.f32 %v7908_v32, 0.0  ;;  %v7914_v58 = vmax.f32 %v7910_v52, 0.0 }
0x38b7   : > { %8049 = vmatprep.mubr.f32.mxu1 %v7912_v48  ;;  %8857 = vmatprep.mubr.msk.f32.mxu0 %vm1170_vm5, %v7914_v58 }
0x38b8   : > { %8050 = vmatmul.mubr.f32.vlgmr.msra.gmra.mrb[88].mxu1 %v7911_v5  ;;  %8120 = vmatmul.mubr.f32.vlgmr.msra.gmra.mrb[30].mxu0 %v7913_v25 }
0x38b9   : > { %10224 = vmatpush3.bf16.msra.mxu1 %v12285_v57  ;;  %9523 = vmatprep.mubr.msk.f32.mxu1 %vm10528_vm0, %v12649_v26 }
0x38ba   : > { %9521 = vmatprep.subr.mxu1 %v12649_v26 }
0x38bd   : > { %9522 = vmatpush3.msk.msra.mxu1 %vm646_vm1, %v8127_v62 }
0x38be   : > { %9524 = vmatmul.mubr.msk.f32.vlgmr.msra.gmra.mrb[90].mxu1 %vm1324_vm6, %v12353_v53  ;;  %10225 = vmatprep.subr.bf16.mxu1 %v12650_v8 }
0x38bf   : > { %10227 = vmatpush3.bf16.msra.mxu1 %v12328_v6  ;;  %9532 = vmatprep.mubr.msk.f32.mxu1 %vm10528_vm0, %v12649_v26 }
0x38c0   : > { %9530 = vmatprep.subr.mxu1 %v12649_v26 }
0x398b   : > { %v9258_v2 = vpop.f32.mrb[88].mxu1  ;;  %v8121_v57 = vpop.f32.mrb[30].mxu0 }
0x398c   : > { %v9259_v29 = vpop.f32.mrb[89].mxu1  ;;  %v8123_v36 = vpop.f32.mrb[31].mxu0 }
0x398d   : > { %v9260_v38 = vadd.f32 %v9259_v29, %v9258_v2 }
0x398f   : > { %v8052_v60 = vadd.f32 %v9260_v38, %v12309_v22 }
0x3991   : > { %v8122_v18 = vadd.f32 %v8121_v57, %v8052_v60  ;;  %v8204_v10 = vpop.f32.mrb[90].mxu1 }
0x3992   : > { %v8205_v63 = vadd.f32 %v12315_v21, %v8204_v10  ;;  %v9525_v44 = vpop.f32.mrb[91].mxu1  ;;  %v8236_v21 = vld [vmem:[%s12589_s11 + $0x10] sm:$0xf] }
0x3993   : > { %9531 = vmatpush3.msk.msra.mxu1 %vm646_vm1, %v8236_v21 }
0x3994   : > { %8216 = vrot.lane.b32.xlu0 %v8205_v63, %s10533_s30  ;;  %v8208_v41 = vadd.f32 %v8205_v63, %v8122_v18  ;;  %10228 = vmatprep.subr.bf16.mxu1 %v12650_v8 }
0x3996   : > { %v8861_v43 = vmul.f32 -1.442695, %v8208_v41 }
0x3998   : > { %10422 = vpow2.f32 %v8861_v43 }
0x39a2   : > { %v10423_v3 = vpop.eup %10422 }
0x39a3   : > { %v8212_v14 = vadd.f32 1.0, %v10423_v3 }
0x39a5   : > { %10424 = vrcp.f32 %v8212_v14 }
0x39af   : > { %v10425_v0 = vpop.eup %10424 }
0x39b0   : > { %v8226_v4 = vsub.f32 1.0, %v10425_v0  ;;  %v8232_v23 = vmul.f32 %v10425_v0, %v12339_v46 }
0x3a06   : > { %v8217_v6 = vpop.permute.xlu0 %8216 }
0x3a07   : > { %v8219_v53 = vmul.f32 %v10425_v0, %v8217_v6 }
0x3a09   : > { %8221 = vrot.lane.b32.xlu1 %v8219_v53, %s10534_s18  ;;  %s8651_s18 = sshll.u32 %s10719_s0, 3 }
0x3a0a   : > { %s12509_s26 = scalar_lea.vmem [#allocation7], %s8651_s18 }
0x3a7b   : > { %v8222_v30 = vpop.permute.xlu1 %8221 }
0x3a7c   : > { %v8224_v22 = vadd.f32 %v8222_v30, %v8122_v18 }
0x3a7e   : > { %10426 = vtanh.f32 %v8224_v22 }
0x3a88   : > { %v10427_v28 = vpop.eup %10426 }
0x3a89   : > { %8228 = vrot.lane.b32.xlu0 %v10427_v28, %s10536_s14 }
0x3a8d   : > { %8410 = vperm.xlu0 %10333, %v12409_v15  }
0x3a91   : > { %10335 = vset.pattern.permute.xlu0 %v12656_v56 }
0x3afb   : > { %v8229_v24 = vpop.permute.xlu0 %8228 }
0x3afc   : > { %v8231_v9 = vmul.f32 %v8229_v24, %v8226_v4 }
0x3afe   : > { %v8233_v61 = vadd.f32 %v8232_v23, %v8231_v9 }
0x3b00   : > { %8245 = vrot.lane.b32.xlu1 %v8233_v61, %s10536_s14 }
0x3b04   : > { %8415 = vperm.xlu1 %10334, %v12409_v15  }
0x3b72   : > { %v8246_v1 = vpop.permute.xlu1 %8245 }
0x3b73   : > { %8428 = vst.msk [vmem:[%s12509_s26] sm:$0xff] %vm1324_vm6, %v8246_v1  ;;  %9533 = vmatmul.mubr.msk.f32.vlgmr.msra.gmra.mrb[92].mxu1 %vm1324_vm6, %v8246_v1 }
0x3b74   : > { %10230 = vmatpush3.bf16.msra.mxu1 %v12351_v31  ;;  %9543 = vmatprep.mubr.msk.f32.mxu1 %vm10528_vm0, %v12649_v26 }
0x3b75   : > { %10231 = vmatprep.subr.bf16.mxu1 %v12650_v8  ;;  %v8411_v8 = vpop.permute.xlu0 %8410 }
0x3b78   : > { %10233 = vmatpush3.bf16.msra.mxu1 %v12367_v16 }
0x3b83   : > { %v8416_v19 = vpop.permute.xlu1 %8415 }
0x3c46   : > { %v8318_v46 = vpop.f32.mrb[92].mxu1 }
0x3c47   : > { %v8319_v56 = vadd.f32 %v12374_v59, %v8318_v46  ;;  %v9534_v15 = vpop.f32.mrb[93].mxu1 }
0x3c49   : > { %v8322_v13 = vmax.f32 %v8319_v56, 0.0 }
0x3c4b   : > { %9544 = vmatmul.mubr.msk.f32.vlgmr.msra.gmra.mrb[94].mxu1 %vm1530_vm7, %v8322_v13 }
0x3d1e   : > { %v8403_v40 = vpop.f32.mrb[94].mxu1 }
0x3d1f   : > { %v8404_v42 = vadd.f32 %v12387_v17, %v8403_v40  ;;  %v9545_v31 = vpop.f32.mrb[95].mxu1  ;;  %v8484_v17 = vld [vmem:[%s11072_s15] sm:$0xff] (%p12660_p12) }
0x3d21   : > { %v8407_v35 = vmul.f32 0.0001, %v8404_v42 }
0x3d23   : > { %v8418_v26 = vmul.f32 %v8416_v19, %v8407_v35  ;;  %v8413_v16 = vmul.f32 %v8411_v8, %v8407_v35 }
0x3d25   : > { %8420 = vrot.lane.b32.xlu1 %v8418_v26, %s10530_s27  ;;  %s8870_s27 = sshll.u32 (%p12660_p12), %s10645_s25, 3 }
0x3d26   : > { %s8442_s20 = scalar_lea.vmem (%p12660_p12), %s12661_s16, %s8870_s27 }
0x3d27   : > { %8485 = vst [vmem:[%s8442_s20] sm:$0xff] (%p12660_p12), %v8484_v17  ;;  %8487 = vst [vmem:[%s8442_s20 + $0x10] sm:$0xff] (%p12660_p12), %v8486_v20 }
0x3d28   : > { %8489 = vst [vmem:[%s8442_s20 + $0x20] sm:$0xff] (%p12660_p12), %v8488_v34  ;;  %8493 = vst [vmem:[%s8442_s20 + $0x40] sm:$0xff] (%p12660_p12), %v8492_v55 }
0x3d29   : > { %8495 = vst [vmem:[%s8442_s20 + $0x50] sm:$0xff] (%p12660_p12), %v8494_v37  ;;  %8497 = vst [vmem:[%s8442_s20 + $0x60] sm:$0xff] (%p12660_p12), %v8496_v50 }
0x3d96   : > { %8440 = sbr.rel (!%p12660_p12) target bundleno = 15781 (0x3da5), region = 126 }
0x3d97   : > { %v8421_v47 = vpop.permute.xlu1 %8420 }
0x3d98   : > { %v8423_v45 = vadd.f32 %v8421_v47, %v8413_v16 }
0x3d9a   : > { %v8424_v59 = vadd.f32 %v8423_v45, %v12402_v12  ;;  %v8490_v12 = vld [vmem:[%s11072_s15 + $0x18] sm:$0xff] (%p12660_p12) }
0x3d9b   : > { %8491 = vst [vmem:[%s8442_s20 + $0x30] sm:$0xff] (%p12660_p12), %v8490_v12 }
0x3d9c   : > { %8867 = vst.msk [vmem:[%s11072_s15 + $0x38] sm:$0xff] %vm642_vm2, %v8424_v59 }
0x3da3   : > { %v8498_v27 = vld [vmem:[%s11072_s15 + $0x38] sm:$0xff] }
0x3da4   : > { %8499 = vst [vmem:[%s8442_s20 + $0x70] sm:$0xff] %v8498_v27 }
0x3da5 PF: > { %s12662_s19 = sld [smem:[#allocation13_spill]]  ;;  %s8871_s30 = sshll.u32 %s10645_s25, 7 }
0x3da6   : > { %s8512_s18 = sshll.u32 %s12509_s26, 4  ;;  %s12663_s21 = sld [smem:[#allocation22_spill]]  ;;  %s8513_s18 = int_to_ptr.vmem [resolvable:$true] %s8512_s18 }
0x3da7   : > { %s10456_s14 = scalar_lea.vmem %s8513_s18, 128  ;;  %s10538_s1 = smov [#allocation7]  }
0x3da8   : > { %p10457_p0 = scmp.ne.s32.totalorder %s8513_s18, %s10456_s14  ;;  %s10460_s15 = sshll.u32 %s10538_s1, 4  ;;  %s10461_s15 = int_to_ptr.vmem [resolvable:$false] %s10460_s15 }
0x3da9   : > { %s10462_s20 = scalar_lea.vmem %s10461_s15, 256  ;;  %p10463_p8 = scmp.lt.s32.totalorder %s8513_s18, %s10461_s15 }
0x3daa   : > { %p10464_p9 = scmp.lt.s32.totalorder %s10462_s20, %s10456_s14 }
0x3dab   : > { %p12665_p3 = scmp.ne.s32.totalorder %s12662_s19, 0 }
0x3dac   : > { %s12664_s17 = smov %s12663_s21  ;;  %s8510_s16 = scalar_lea.hbm %s12663_s21, %s8871_s30 }
0x3dad   : > { %p10458_p4 = pnand %p10457_p0, %p12665_p3  ;;  %p10465_p13 = por %p10464_p9, %p10463_p8 }
0x3daf   : > { %p10459_p7 = pneg %p10458_p4 }
0x3db1   : > { %p10466_p2 = pnand %p10465_p13, %p10459_p7 }
0x3db3   : > { %10469 = shalt.err (!%p10466_p2)
}
0x3db4   : > { %s10470_s25 = scalar_lea.hbm %s8510_s16, 128  ;;  %s10474_s28 = scalar_lea.hbm %s12664_s17, 256 }
0x3db5   : > { %p10471_p5 = scmp.ne.s32.totalorder %s8510_s16, %s10470_s25  ;;  %p10475_p11 = scmp.lt.u32.totalorder %s8510_s16, %s12664_s17 }
0x3db6   : > { %p10476_p12 = scmp.lt.u32.totalorder %s10474_s28, %s10470_s25  ;;  %p10478_p4 = scmp.lt.u32.totalorder %s10470_s25, %s8510_s16 }
0x3db7   : > { %p10472_p6 = pnand %p10471_p5, %p12665_p3 }
0x3db8   : > { %p10477_p0 = por %p10476_p12, %p10475_p11 }
0x3db9   : > { %p10473_p10 = pneg %p10472_p6 }
0x3dba   : > { %p10479_p8 = por %p10478_p4, %p10477_p0 }
0x3dbc   : > { %p10480_p7 = pnand %p10479_p8, %p10473_p10 }
0x3dbe   : > { %10483 = shalt.err (!%p10480_p7)
}
0x3dbf   : > { %s12666_s1 = scalar_lea.sflag [#allocation5], %s10719_s0 }
0x3dc0   : > { %10270 = dma.vmem_to_hbm [thread:$0]  (%p12665_p3), %s8513_s18, 128, %s8510_s16, %s12666_s1  }
0x3dc1 PF: > { %s12667_s14 = sld [smem:[#allocation10_spill]]  ;;  %s12668_s15 = sld [smem:[#allocation14_spill]] }
0x3dc7   : > { %s8531_s20 = sand.u32 1, %s12667_s14   ;;  %p12669_p9 = scmp.ne.s32.totalorder %s12668_s15, 0 }
0x3dc8   : > { %s8532_s26 = scalar_lea.sflag [#allocation5], %s8531_s20 }
0x3dc9   : > { %p10277_p13 = pnand %p8644_p1, %p12669_p9 }
0x3dcb   : > { %10505 = dma.done.wait (!%p10277_p13), %s8532_s26, 128  }
0x3dcc   : > { %10507 = vsyncadd (!%p10277_p13), %s8532_s26, 4294967168  ;;  %s12670_s24 = sld [smem:[#allocation11_spill]]  ;;  %s12671_s25 = sld [smem:[#allocation12_spill]] }
0x3dcd   : > { %s12672_s21 = smov %s10514_s22  ;;  %s12673_s22 = smov %s10518_s23 }
0x3dd2   : > { %p28_p2 = scmp.ge.s32.totalorder %s12670_s24, 4   ;;  %s12674_s23 = smov %s12671_s25 }
0x3dd4   :  { %30 = sbr.rel (!%p28_p2) target bundleno = 10 (0xa), region = 233 }
0x3ddb   :  { %8537 = vsyncpa [#allocation4], 1 }
0x3ddc   :  { %8539 = vsyncpa [#allocation4 + $0x1], 1 }
0x3ddd   :  { %8540 = vsyncpa [#allocation5], 1 }
0x3dde   :  { %8542 = vsyncpa [#allocation5 + $0x1], 1 }

</bundles_post_ra>
